<compile_context>
chip_gen: v6e
topology: v6e:2x2x1
jax: 0.10.0
libtpu: 0.0.40
codegen_flags: <defaults>
</compile_context>

<pallas_src>
import math
import functools

import jax
import jax.numpy as jnp
from jax import lax
from jax.experimental import pallas as pl
from jax.experimental.pallas import tpu as pltpu


def _hmha_kernel(q_ref, h_ref, wq_ref, wkv_ref, wo_ref, o_ref, *, S1, H, K, E):
    Bblk, G, D = q_ref.shape
    T = G - S1
    HK = H * K

    def mm(a, b):
        return lax.dot_general(a, b, (((1,), (0,)), ((), ())),
                               preferred_element_type=jnp.float32)

    def mm_qk(a, b):  # a @ b.T without materializing an XLU transpose of b
        return lax.dot_general(a, b, (((1,), (1,)), ((), ())),
                               preferred_element_type=jnp.float32)

    def softmax(x):
        m = jnp.max(x, axis=-1, keepdims=True)
        e = jnp.exp(x - m)
        return e * pl.reciprocal(jnp.sum(e, axis=-1, keepdims=True), approx=True)

    wq = wq_ref[...]    # (D, 3*HK); norm_factor already folded in
    wkv = wkv_ref[...]  # (D, 4*HK)
    wo = wo_ref[...]    # (HK, E)

    # One dense projection over the whole batch block (lane-packed over heads
    # and projection types).  Rows projected with the "wrong" weights (stations
    # through customer query weights, etc.) are never read — the waste is tiny
    # compared to doing 8 separate 8-lane matmuls per head.
    qp = mm(q_ref[...].reshape(Bblk * G, D), wq)    # (Bblk*G, 3*HK)
    hp = mm(h_ref[...].reshape(Bblk * G, D), wkv)   # (Bblk*G, 4*HK)

    for b in range(Bblk):                       # static, fully unrolled
        qb = qp[b * G:(b + 1) * G]
        hb = hp[b * G:(b + 1) * G]
        q_c1 = qb[S1:, 0 * HK:1 * HK]           # W_query_custom_1   (T, HK)
        q_c0 = qb[S1:, 1 * HK:2 * HK]           # W_query_custom     (T, HK)
        q_ch1 = qb[:S1, 2 * HK:3 * HK]          # W_query_charge_1   (S1, HK)
        k_cu = hb[S1:, 0 * HK:1 * HK]           # W_key_custom       (T, HK)
        v_cu = hb[S1:, 1 * HK:2 * HK]           # W_val_custom       (T, HK)
        k_ch = hb[:S1, 2 * HK:3 * HK]           # W_key_charge       (S1, HK)
        v_st = hb[:S1, 3 * HK:4 * HK]           # W_val_charge       (S1, HK)

        out_cu = jnp.zeros((T, E), jnp.float32)
        out_st = jnp.zeros((S1, E), jnp.float32)
        for hd in range(H):                     # static unrolled loop over heads
            sl = slice(hd * K, (hd + 1) * K)
            wo_h = wo[sl, :]                    # (K, E)
            # 1) customers attend to customers
            ht = mm(softmax(mm_qk(q_c1[:, sl], k_cu[:, sl])), v_cu[:, sl])
            # 2) customers attend to stations
            ht = ht + mm(softmax(mm_qk(q_c0[:, sl], k_ch[:, sl])), v_st[:, sl])
            # 3) stations attend to customers
            hs = mm(softmax(mm_qk(q_ch1[:, sl], k_cu[:, sl])), v_cu[:, sl])
            # accumulate this head's contribution straight into the output rows
            out_cu = out_cu + mm(ht, wo_h)
            out_st = out_st + mm(hs, wo_h)

        o_ref[b, :S1, :] = out_st.astype(o_ref.dtype)   # stations first (torch.cat order)
        o_ref[b, S1:, :] = out_cu.astype(o_ref.dtype)


def _pack_heads_lanewise(w):
    """(H, D, K) -> (D, H*K), head h occupies lanes [h*K:(h+1)*K]."""
    H, D, K = w.shape
    return jnp.transpose(w, (1, 0, 2)).reshape(D, H * K)


def hmha_forward(q, h, params, num_station, num_heads, key_dim, embed_dim,
                 *, block_b=None):
    """q, h: (B, G, D) float32.  Returns (B, G, embed_dim)."""
    if h is None:
        h = q
    B, G, D = h.shape
    S1 = num_station + 1
    norm = 1.0 / math.sqrt(key_dim)
    HK = num_heads * key_dim

    # One-time weight prep (outside the hot path): fold norm_factor into the
    # query projections and lane-pack all per-head weights.
    wq_packed = jnp.concatenate(
        [_pack_heads_lanewise(params["W_query_custom_1"] * norm),
         _pack_heads_lanewise(params["W_query_custom"] * norm),
         _pack_heads_lanewise(params["W_query_charge_1"] * norm)], axis=1)   # (D, 3*HK)
    wkv_packed = jnp.concatenate(
        [_pack_heads_lanewise(params["W_key_custom"]),
         _pack_heads_lanewise(params["W_val_custom"]),
         _pack_heads_lanewise(params["W_key_charge"]),
         _pack_heads_lanewise(params["W_val_charge"])], axis=1)              # (D, 4*HK)
    wo_packed = params["W_out"].reshape(HK, embed_dim)                       # (HK, E)

    if block_b is None:
        block_b = 1
        for cand in (8, 4, 2, 1):
            if B % cand == 0:
                block_b = cand
                break
    assert B % block_b == 0

    kernel = functools.partial(_hmha_kernel, S1=S1, H=num_heads, K=key_dim,
                               E=embed_dim)

    seq_spec = pl.BlockSpec((block_b, G, D), lambda b: (b, 0, 0))
    out_spec = pl.BlockSpec((block_b, G, embed_dim), lambda b: (b, 0, 0))
    full2d = lambda shape: pl.BlockSpec(shape, lambda b: (0, 0))

    return pl.pallas_call(
        kernel,
        out_shape=jax.ShapeDtypeStruct((B, G, embed_dim), jnp.float32),
        grid_spec=pltpu.PrefetchScalarGridSpec(
            num_scalar_prefetch=0,
            grid=(B // block_b,),
            in_specs=[seq_spec, seq_spec,
                      full2d(wq_packed.shape),
                      full2d(wkv_packed.shape),
                      full2d(wo_packed.shape)],
            out_specs=out_spec),
        compiler_params=pltpu.CompilerParams(
            dimension_semantics=("parallel",)),
    )(q, h, wq_packed, wkv_packed, wo_packed)


def hmha_reference(q, h, params, num_station, num_heads, key_dim, embed_dim):
    """Pure-JAX transcription of the PyTorch forward (for verification)."""
    B, G, D = h.shape
    S1 = num_station + 1
    norm = 1.0 / math.sqrt(key_dim)
    hi = jax.lax.Precision.HIGHEST

    h_cu, q_cu = h[:, S1:], q[:, S1:]          # (B, T, D)
    h_st, q_st = h[:, :S1], q[:, :S1]          # (B, S1, D)

    proj = lambda x, w: jnp.einsum("bnd,hdk->hbnk", x, w, precision=hi)

    K_custom = proj(h_cu, params["W_key_custom"])
    V_custom = proj(h_cu, params["W_val_custom"])
    K_charge = proj(h_st, params["W_key_charge"])
    V_station = proj(h_st, params["W_val_charge"])

    def attend(Q, Kk, V):
        c = norm * jnp.einsum("hbqk,hbnk->hbqn", Q, Kk, precision=hi)
        a = jax.nn.softmax(c, axis=-1)
        return jnp.einsum("hbqn,hbnk->hbqk", a, V, precision=hi)

    heads_targe = attend(proj(q_cu, params["W_query_custom_1"]), K_custom, V_custom)
    heads_targe = heads_targe + attend(proj(q_cu, params["W_query_custom"]),
                                       K_charge, V_station)
    heads_station = attend(proj(q_st, params["W_query_charge_1"]), K_custom, V_custom)

    heads = jnp.concatenate([heads_station, heads_targe], axis=2)  # (H, B, G, K)
    out = jnp.einsum("hbgk,hke->bge", heads, params["W_out"], precision=hi)
    return out


def init_params(key, num_heads, input_dim, key_dim, embed_dim):
    names_shapes = [
        ("W_query_custom",   (num_heads, input_dim, key_dim)),
        ("W_query_custom_1", (num_heads, input_dim, key_dim)),
        ("W_key_custom",     (num_heads, input_dim, key_dim)),
        ("W_val_custom",     (num_heads, input_dim, key_dim)),
        ("W_query_charge",   (num_heads, input_dim, key_dim)),   # unused in forward
        ("W_query_charge_1", (num_heads, input_dim, key_dim)),
        ("W_key_charge",     (num_heads, input_dim, key_dim)),
        ("W_val_charge",     (num_heads, input_dim, key_dim)),
        ("W_out",            (num_heads, key_dim, embed_dim)),
    ]
    params = {}
    for name, shp in names_shapes:
        key, sub = jax.random.split(key)
        stdv = 1.0 / math.sqrt(shp[-1])
        params[name] = jax.random.uniform(sub, shp, jnp.float32, -stdv, stdv)
    return params


if __name__ == "__main__":
    # small shapes consistent with the module
    num_heads = 4
    input_dim = 16
    embed_dim = 32
    key_dim = val_dim = embed_dim // num_heads      # 8
    num_station = 7                                 # stations + depot = 8
    batch = 2
    num_task = 24
    graph_size = 1 + num_station + num_task         # 32

    root = jax.random.PRNGKey(0)
    k_params, k_q = jax.random.split(root)
    params = init_params(k_params, num_heads, input_dim, key_dim, embed_dim)

    q = jax.random.normal(k_q, (batch, graph_size, input_dim), jnp.float32)
    h = q  # forward default: h = q

    out = hmha_forward(q, h, params, num_station, num_heads, key_dim, embed_dim)
    out = jax.block_until_ready(out)

    ref = hmha_reference(q, h, params, num_station, num_heads, key_dim, embed_dim)
    assert out.shape == (batch, graph_size, embed_dim)
    assert jnp.allclose(out, ref, rtol=1e-2, atol=1e-2), "mismatch vs reference"

    print("KERNEL_OK")
</pallas_src>

<mosaic_0001>
module attributes {stable_mosaic.version = 11 : i64} {
  func.func @_hmha_kernel(%arg0: i32, %arg1: memref<2x32x16xf32, #tpu.memory_space<vmem>>, %arg2: memref<2x32x16xf32, #tpu.memory_space<vmem>>, %arg3: memref<16x96xf32, #tpu.memory_space<vmem>>, %arg4: memref<16x128xf32, #tpu.memory_space<vmem>>, %arg5: memref<32x32xf32, #tpu.memory_space<vmem>>, %arg6: memref<2x32x32xf32, #tpu.memory_space<vmem>>) attributes {dimension_semantics = [#tpu.dimension_semantics<parallel>], iteration_bounds = array<i64: 1>, scalar_prefetch = 0 : i64, scratch_operands = 0 : i64, tpu.core_type = #tpu.core_type<tc>, window_params = [{transform_indices = @transform_0, window_bounds = array<i64: 2, 32, 16>}, {transform_indices = @transform_1, window_bounds = array<i64: 2, 32, 16>}, {pipeline_mode = #tpu.pipeline_mode<synchronous>, transform_indices = @transform_2, window_bounds = array<i64: 16, 96>}, {pipeline_mode = #tpu.pipeline_mode<synchronous>, transform_indices = @transform_3, window_bounds = array<i64: 16, 128>}, {pipeline_mode = #tpu.pipeline_mode<synchronous>, transform_indices = @transform_4, window_bounds = array<i64: 32, 32>}, {transform_indices = @transform_5, window_bounds = array<i64: 2, 32, 32>}]} {
    %c0 = arith.constant 0 : index
    %c0_0 = arith.constant 0 : index
    %0 = vector.load %arg3[%c0, %c0_0] : memref<16x96xf32, #tpu.memory_space<vmem>>, vector<16x96xf32>
    %c0_1 = arith.constant 0 : index
    %c0_2 = arith.constant 0 : index
    %1 = vector.load %arg4[%c0_1, %c0_2] : memref<16x128xf32, #tpu.memory_space<vmem>>, vector<16x128xf32>
    %c0_3 = arith.constant 0 : index
    %c0_4 = arith.constant 0 : index
    %2 = vector.load %arg5[%c0_3, %c0_4] : memref<32x32xf32, #tpu.memory_space<vmem>>, vector<32x32xf32>
    %c0_5 = arith.constant 0 : index
    %c0_6 = arith.constant 0 : index
    %c0_7 = arith.constant 0 : index
    %3 = vector.load %arg1[%c0_5, %c0_6, %c0_7] : memref<2x32x16xf32, #tpu.memory_space<vmem>>, vector<2x32x16xf32>
    %4 = vector.shape_cast %3 : vector<2x32x16xf32> to vector<64x16xf32>
    %cst = arith.constant dense<0.000000e+00> : vector<64x96xf32>
    %5 = tpu.matmul %4, %0, %cst {dimension_numbers = #tpu.dot_dimension_numbers<[1], [0], [0], [1], [0, 0, 1, 1], [], []>} : vector<64x16xf32>, vector<16x96xf32>, vector<64x96xf32> -> vector<64x96xf32>
    %c0_8 = arith.constant 0 : index
    %c0_9 = arith.constant 0 : index
    %c0_10 = arith.constant 0 : index
    %6 = vector.load %arg2[%c0_8, %c0_9, %c0_10] : memref<2x32x16xf32, #tpu.memory_space<vmem>>, vector<2x32x16xf32>
    %7 = vector.shape_cast %6 : vector<2x32x16xf32> to vector<64x16xf32>
    %cst_11 = arith.constant dense<0.000000e+00> : vector<64x128xf32>
    %8 = tpu.matmul %7, %1, %cst_11 {dimension_numbers = #tpu.dot_dimension_numbers<[1], [0], [0], [1], [0, 0, 1, 1], [], []>} : vector<64x16xf32>, vector<16x128xf32>, vector<64x128xf32> -> vector<64x128xf32>
    %9 = vector.extract_strided_slice %5 {offsets = [0, 0], sizes = [32, 96], strides = [1, 1]} : vector<64x96xf32> to vector<32x96xf32>
    %10 = vector.extract_strided_slice %8 {offsets = [0, 0], sizes = [32, 128], strides = [1, 1]} : vector<64x128xf32> to vector<32x128xf32>
    %11 = vector.extract_strided_slice %9 {offsets = [8, 0], sizes = [24, 32], strides = [1, 1]} : vector<32x96xf32> to vector<24x32xf32>
    %12 = vector.extract_strided_slice %9 {offsets = [8, 32], sizes = [24, 32], strides = [1, 1]} : vector<32x96xf32> to vector<24x32xf32>
    %13 = vector.extract_strided_slice %9 {offsets = [0, 64], sizes = [8, 32], strides = [1, 1]} : vector<32x96xf32> to vector<8x32xf32>
    %14 = vector.extract_strided_slice %10 {offsets = [8, 0], sizes = [24, 32], strides = [1, 1]} : vector<32x128xf32> to vector<24x32xf32>
    %15 = vector.extract_strided_slice %10 {offsets = [8, 32], sizes = [24, 32], strides = [1, 1]} : vector<32x128xf32> to vector<24x32xf32>
    %16 = vector.extract_strided_slice %10 {offsets = [0, 64], sizes = [8, 32], strides = [1, 1]} : vector<32x128xf32> to vector<8x32xf32>
    %17 = vector.extract_strided_slice %10 {offsets = [0, 96], sizes = [8, 32], strides = [1, 1]} : vector<32x128xf32> to vector<8x32xf32>
    %cst_12 = arith.constant 0.000000e+00 : f32
    %18 = vector.broadcast %cst_12 : f32 to vector<24x32xf32>
    %cst_13 = arith.constant 0.000000e+00 : f32
    %19 = vector.broadcast %cst_13 : f32 to vector<8x32xf32>
    %20 = vector.extract_strided_slice %2 {offsets = [0, 0], sizes = [8, 32], strides = [1, 1]} : vector<32x32xf32> to vector<8x32xf32>
    %21 = vector.extract_strided_slice %11 {offsets = [0, 0], sizes = [24, 8], strides = [1, 1]} : vector<24x32xf32> to vector<24x8xf32>
    %22 = vector.extract_strided_slice %14 {offsets = [0, 0], sizes = [24, 8], strides = [1, 1]} : vector<24x32xf32> to vector<24x8xf32>
    %cst_14 = arith.constant dense<0.000000e+00> : vector<24x24xf32>
    %23 = tpu.matmul %21, %22, %cst_14 {dimension_numbers = #tpu.dot_dimension_numbers<[1], [1], [0], [0], [0, 0, 1, 0], [], []>} : vector<24x8xf32>, vector<24x8xf32>, vector<24x24xf32> -> vector<24x24xf32>
    %cst_15 = arith.constant dense<0xFF800000> : vector<24xf32>
    %24 = vector.multi_reduction <maximumf>, %23, %cst_15 [1] : vector<24x24xf32> to vector<24xf32>
    %25 = vector.shape_cast %24 : vector<24xf32> to vector<24x1xf32>
    %26 = vector.broadcast %25 : vector<24x1xf32> to vector<24x24xf32>
    %27 = arith.subf %23, %26 : vector<24x24xf32>
    %28 = math.exp %27 : vector<24x24xf32>
    %cst_16 = arith.constant dense<0.000000e+00> : vector<24xf32>
    %29 = vector.multi_reduction <add>, %28, %cst_16 [1] : vector<24x24xf32> to vector<24xf32>
    %30 = vector.shape_cast %29 : vector<24xf32> to vector<24x1xf32>
    %31 = tpu.reciprocal %30 {approx = true} : vector<24x1xf32> -> vector<24x1xf32>
    %32 = vector.broadcast %31 : vector<24x1xf32> to vector<24x24xf32>
    %33 = arith.mulf %28, %32 : vector<24x24xf32>
    %34 = vector.extract_strided_slice %15 {offsets = [0, 0], sizes = [24, 8], strides = [1, 1]} : vector<24x32xf32> to vector<24x8xf32>
    %cst_17 = arith.constant dense<0.000000e+00> : vector<24x8xf32>
    %35 = tpu.matmul %33, %34, %cst_17 {dimension_numbers = #tpu.dot_dimension_numbers<[1], [0], [0], [1], [0, 0, 1, 1], [], []>} : vector<24x24xf32>, vector<24x8xf32>, vector<24x8xf32> -> vector<24x8xf32>
    %36 = vector.extract_strided_slice %12 {offsets = [0, 0], sizes = [24, 8], strides = [1, 1]} : vector<24x32xf32> to vector<24x8xf32>
    %37 = vector.extract_strided_slice %16 {offsets = [0, 0], sizes = [8, 8], strides = [1, 1]} : vector<8x32xf32> to vector<8x8xf32>
    %cst_18 = arith.constant dense<0.000000e+00> : vector<24x8xf32>
    %38 = tpu.matmul %36, %37, %cst_18 {dimension_numbers = #tpu.dot_dimension_numbers<[1], [1], [0], [0], [0, 0, 1, 0], [], []>} : vector<24x8xf32>, vector<8x8xf32>, vector<24x8xf32> -> vector<24x8xf32>
    %cst_19 = arith.constant dense<0xFF800000> : vector<24xf32>
    %39 = vector.multi_reduction <maximumf>, %38, %cst_19 [1] : vector<24x8xf32> to vector<24xf32>
    %40 = vector.shape_cast %39 : vector<24xf32> to vector<24x1xf32>
    %41 = vector.broadcast %40 : vector<24x1xf32> to vector<24x8xf32>
    %42 = arith.subf %38, %41 : vector<24x8xf32>
    %43 = math.exp %42 : vector<24x8xf32>
    %cst_20 = arith.constant dense<0.000000e+00> : vector<24xf32>
    %44 = vector.multi_reduction <add>, %43, %cst_20 [1] : vector<24x8xf32> to vector<24xf32>
    %45 = vector.shape_cast %44 : vector<24xf32> to vector<24x1xf32>
    %46 = tpu.reciprocal %45 {approx = true} : vector<24x1xf32> -> vector<24x1xf32>
    %47 = vector.broadcast %46 : vector<24x1xf32> to vector<24x8xf32>
    %48 = arith.mulf %43, %47 : vector<24x8xf32>
    %49 = vector.extract_strided_slice %17 {offsets = [0, 0], sizes = [8, 8], strides = [1, 1]} : vector<8x32xf32> to vector<8x8xf32>
    %cst_21 = arith.constant dense<0.000000e+00> : vector<24x8xf32>
    %50 = tpu.matmul %48, %49, %cst_21 {dimension_numbers = #tpu.dot_dimension_numbers<[1], [0], [0], [1], [0, 0, 1, 1], [], []>} : vector<24x8xf32>, vector<8x8xf32>, vector<24x8xf32> -> vector<24x8xf32>
    %51 = arith.addf %35, %50 : vector<24x8xf32>
    %52 = vector.extract_strided_slice %13 {offsets = [0, 0], sizes = [8, 8], strides = [1, 1]} : vector<8x32xf32> to vector<8x8xf32>
    %53 = vector.extract_strided_slice %14 {offsets = [0, 0], sizes = [24, 8], strides = [1, 1]} : vector<24x32xf32> to vector<24x8xf32>
    %cst_22 = arith.constant dense<0.000000e+00> : vector<8x24xf32>
    %54 = tpu.matmul %52, %53, %cst_22 {dimension_numbers = #tpu.dot_dimension_numbers<[1], [1], [0], [0], [0, 0, 1, 0], [], []>} : vector<8x8xf32>, vector<24x8xf32>, vector<8x24xf32> -> vector<8x24xf32>
    %cst_23 = arith.constant dense<0xFF800000> : vector<8xf32>
    %55 = vector.multi_reduction <maximumf>, %54, %cst_23 [1] : vector<8x24xf32> to vector<8xf32>
    %56 = vector.shape_cast %55 : vector<8xf32> to vector<8x1xf32>
    %57 = vector.broadcast %56 : vector<8x1xf32> to vector<8x24xf32>
    %58 = arith.subf %54, %57 : vector<8x24xf32>
    %59 = math.exp %58 : vector<8x24xf32>
    %cst_24 = arith.constant dense<0.000000e+00> : vector<8xf32>
    %60 = vector.multi_reduction <add>, %59, %cst_24 [1] : vector<8x24xf32> to vector<8xf32>
    %61 = vector.shape_cast %60 : vector<8xf32> to vector<8x1xf32>
    %62 = tpu.reciprocal %61 {approx = true} : vector<8x1xf32> -> vector<8x1xf32>
    %63 = vector.broadcast %62 : vector<8x1xf32> to vector<8x24xf32>
    %64 = arith.mulf %59, %63 : vector<8x24xf32>
    %65 = vector.extract_strided_slice %15 {offsets = [0, 0], sizes = [24, 8], strides = [1, 1]} : vector<24x32xf32> to vector<24x8xf32>
    %cst_25 = arith.constant dense<0.000000e+00> : vector<8x8xf32>
    %66 = tpu.matmul %64, %65, %cst_25 {dimension_numbers = #tpu.dot_dimension_numbers<[1], [0], [0], [1], [0, 0, 1, 1], [], []>} : vector<8x24xf32>, vector<24x8xf32>, vector<8x8xf32> -> vector<8x8xf32>
    %cst_26 = arith.constant dense<0.000000e+00> : vector<24x32xf32>
    %67 = tpu.matmul %51, %20, %cst_26 {dimension_numbers = #tpu.dot_dimension_numbers<[1], [0], [0], [1], [0, 0, 1, 1], [], []>} : vector<24x8xf32>, vector<8x32xf32>, vector<24x32xf32> -> vector<24x32xf32>
    %68 = arith.addf %18, %67 : vector<24x32xf32>
    %cst_27 = arith.constant dense<0.000000e+00> : vector<8x32xf32>
    %69 = tpu.matmul %66, %20, %cst_27 {dimension_numbers = #tpu.dot_dimension_numbers<[1], [0], [0], [1], [0, 0, 1, 1], [], []>} : vector<8x8xf32>, vector<8x32xf32>, vector<8x32xf32> -> vector<8x32xf32>
    %70 = arith.addf %19, %69 : vector<8x32xf32>
    %71 = vector.extract_strided_slice %2 {offsets = [8, 0], sizes = [8, 32], strides = [1, 1]} : vector<32x32xf32> to vector<8x32xf32>
    %72 = vector.extract_strided_slice %11 {offsets = [0, 8], sizes = [24, 8], strides = [1, 1]} : vector<24x32xf32> to vector<24x8xf32>
    %73 = vector.extract_strided_slice %14 {offsets = [0, 8], sizes = [24, 8], strides = [1, 1]} : vector<24x32xf32> to vector<24x8xf32>
    %cst_28 = arith.constant dense<0.000000e+00> : vector<24x24xf32>
    %74 = tpu.matmul %72, %73, %cst_28 {dimension_numbers = #tpu.dot_dimension_numbers<[1], [1], [0], [0], [0, 0, 1, 0], [], []>} : vector<24x8xf32>, vector<24x8xf32>, vector<24x24xf32> -> vector<24x24xf32>
    %cst_29 = arith.constant dense<0xFF800000> : vector<24xf32>
    %75 = vector.multi_reduction <maximumf>, %74, %cst_29 [1] : vector<24x24xf32> to vector<24xf32>
    %76 = vector.shape_cast %75 : vector<24xf32> to vector<24x1xf32>
    %77 = vector.broadcast %76 : vector<24x1xf32> to vector<24x24xf32>
    %78 = arith.subf %74, %77 : vector<24x24xf32>
    %79 = math.exp %78 : vector<24x24xf32>
    %cst_30 = arith.constant dense<0.000000e+00> : vector<24xf32>
    %80 = vector.multi_reduction <add>, %79, %cst_30 [1] : vector<24x24xf32> to vector<24xf32>
    %81 = vector.shape_cast %80 : vector<24xf32> to vector<24x1xf32>
    %82 = tpu.reciprocal %81 {approx = true} : vector<24x1xf32> -> vector<24x1xf32>
    %83 = vector.broadcast %82 : vector<24x1xf32> to vector<24x24xf32>
    %84 = arith.mulf %79, %83 : vector<24x24xf32>
    %85 = vector.extract_strided_slice %15 {offsets = [0, 8], sizes = [24, 8], strides = [1, 1]} : vector<24x32xf32> to vector<24x8xf32>
    %cst_31 = arith.constant dense<0.000000e+00> : vector<24x8xf32>
    %86 = tpu.matmul %84, %85, %cst_31 {dimension_numbers = #tpu.dot_dimension_numbers<[1], [0], [0], [1], [0, 0, 1, 1], [], []>} : vector<24x24xf32>, vector<24x8xf32>, vector<24x8xf32> -> vector<24x8xf32>
    %87 = vector.extract_strided_slice %12 {offsets = [0, 8], sizes = [24, 8], strides = [1, 1]} : vector<24x32xf32> to vector<24x8xf32>
    %88 = vector.extract_strided_slice %16 {offsets = [0, 8], sizes = [8, 8], strides = [1, 1]} : vector<8x32xf32> to vector<8x8xf32>
    %cst_32 = arith.constant dense<0.000000e+00> : vector<24x8xf32>
    %89 = tpu.matmul %87, %88, %cst_32 {dimension_numbers = #tpu.dot_dimension_numbers<[1], [1], [0], [0], [0, 0, 1, 0], [], []>} : vector<24x8xf32>, vector<8x8xf32>, vector<24x8xf32> -> vector<24x8xf32>
    %cst_33 = arith.constant dense<0xFF800000> : vector<24xf32>
    %90 = vector.multi_reduction <maximumf>, %89, %cst_33 [1] : vector<24x8xf32> to vector<24xf32>
    %91 = vector.shape_cast %90 : vector<24xf32> to vector<24x1xf32>
    %92 = vector.broadcast %91 : vector<24x1xf32> to vector<24x8xf32>
    %93 = arith.subf %89, %92 : vector<24x8xf32>
    %94 = math.exp %93 : vector<24x8xf32>
    %cst_34 = arith.constant dense<0.000000e+00> : vector<24xf32>
    %95 = vector.multi_reduction <add>, %94, %cst_34 [1] : vector<24x8xf32> to vector<24xf32>
    %96 = vector.shape_cast %95 : vector<24xf32> to vector<24x1xf32>
    %97 = tpu.reciprocal %96 {approx = true} : vector<24x1xf32> -> vector<24x1xf32>
    %98 = vector.broadcast %97 : vector<24x1xf32> to vector<24x8xf32>
    %99 = arith.mulf %94, %98 : vector<24x8xf32>
    %100 = vector.extract_strided_slice %17 {offsets = [0, 8], sizes = [8, 8], strides = [1, 1]} : vector<8x32xf32> to vector<8x8xf32>
    %cst_35 = arith.constant dense<0.000000e+00> : vector<24x8xf32>
    %101 = tpu.matmul %99, %100, %cst_35 {dimension_numbers = #tpu.dot_dimension_numbers<[1], [0], [0], [1], [0, 0, 1, 1], [], []>} : vector<24x8xf32>, vector<8x8xf32>, vector<24x8xf32> -> vector<24x8xf32>
    %102 = arith.addf %86, %101 : vector<24x8xf32>
    %103 = vector.extract_strided_slice %13 {offsets = [0, 8], sizes = [8, 8], strides = [1, 1]} : vector<8x32xf32> to vector<8x8xf32>
    %104 = vector.extract_strided_slice %14 {offsets = [0, 8], sizes = [24, 8], strides = [1, 1]} : vector<24x32xf32> to vector<24x8xf32>
    %cst_36 = arith.constant dense<0.000000e+00> : vector<8x24xf32>
    %105 = tpu.matmul %103, %104, %cst_36 {dimension_numbers = #tpu.dot_dimension_numbers<[1], [1], [0], [0], [0, 0, 1, 0], [], []>} : vector<8x8xf32>, vector<24x8xf32>, vector<8x24xf32> -> vector<8x24xf32>
    %cst_37 = arith.constant dense<0xFF800000> : vector<8xf32>
    %106 = vector.multi_reduction <maximumf>, %105, %cst_37 [1] : vector<8x24xf32> to vector<8xf32>
    %107 = vector.shape_cast %106 : vector<8xf32> to vector<8x1xf32>
    %108 = vector.broadcast %107 : vector<8x1xf32> to vector<8x24xf32>
    %109 = arith.subf %105, %108 : vector<8x24xf32>
    %110 = math.exp %109 : vector<8x24xf32>
    %cst_38 = arith.constant dense<0.000000e+00> : vector<8xf32>
    %111 = vector.multi_reduction <add>, %110, %cst_38 [1] : vector<8x24xf32> to vector<8xf32>
    %112 = vector.shape_cast %111 : vector<8xf32> to vector<8x1xf32>
    %113 = tpu.reciprocal %112 {approx = true} : vector<8x1xf32> -> vector<8x1xf32>
    %114 = vector.broadcast %113 : vector<8x1xf32> to vector<8x24xf32>
    %115 = arith.mulf %110, %114 : vector<8x24xf32>
    %116 = vector.extract_strided_slice %15 {offsets = [0, 8], sizes = [24, 8], strides = [1, 1]} : vector<24x32xf32> to vector<24x8xf32>
    %cst_39 = arith.constant dense<0.000000e+00> : vector<8x8xf32>
    %117 = tpu.matmul %115, %116, %cst_39 {dimension_numbers = #tpu.dot_dimension_numbers<[1], [0], [0], [1], [0, 0, 1, 1], [], []>} : vector<8x24xf32>, vector<24x8xf32>, vector<8x8xf32> -> vector<8x8xf32>
    %cst_40 = arith.constant dense<0.000000e+00> : vector<24x32xf32>
    %118 = tpu.matmul %102, %71, %cst_40 {dimension_numbers = #tpu.dot_dimension_numbers<[1], [0], [0], [1], [0, 0, 1, 1], [], []>} : vector<24x8xf32>, vector<8x32xf32>, vector<24x32xf32> -> vector<24x32xf32>
    %119 = arith.addf %68, %118 : vector<24x32xf32>
    %cst_41 = arith.constant dense<0.000000e+00> : vector<8x32xf32>
    %120 = tpu.matmul %117, %71, %cst_41 {dimension_numbers = #tpu.dot_dimension_numbers<[1], [0], [0], [1], [0, 0, 1, 1], [], []>} : vector<8x8xf32>, vector<8x32xf32>, vector<8x32xf32> -> vector<8x32xf32>
    %121 = arith.addf %70, %120 : vector<8x32xf32>
    %122 = vector.extract_strided_slice %2 {offsets = [16, 0], sizes = [8, 32], strides = [1, 1]} : vector<32x32xf32> to vector<8x32xf32>
    %123 = vector.extract_strided_slice %11 {offsets = [0, 16], sizes = [24, 8], strides = [1, 1]} : vector<24x32xf32> to vector<24x8xf32>
    %124 = vector.extract_strided_slice %14 {offsets = [0, 16], sizes = [24, 8], strides = [1, 1]} : vector<24x32xf32> to vector<24x8xf32>
    %cst_42 = arith.constant dense<0.000000e+00> : vector<24x24xf32>
    %125 = tpu.matmul %123, %124, %cst_42 {dimension_numbers = #tpu.dot_dimension_numbers<[1], [1], [0], [0], [0, 0, 1, 0], [], []>} : vector<24x8xf32>, vector<24x8xf32>, vector<24x24xf32> -> vector<24x24xf32>
    %cst_43 = arith.constant dense<0xFF800000> : vector<24xf32>
    %126 = vector.multi_reduction <maximumf>, %125, %cst_43 [1] : vector<24x24xf32> to vector<24xf32>
    %127 = vector.shape_cast %126 : vector<24xf32> to vector<24x1xf32>
    %128 = vector.broadcast %127 : vector<24x1xf32> to vector<24x24xf32>
    %129 = arith.subf %125, %128 : vector<24x24xf32>
    %130 = math.exp %129 : vector<24x24xf32>
    %cst_44 = arith.constant dense<0.000000e+00> : vector<24xf32>
    %131 = vector.multi_reduction <add>, %130, %cst_44 [1] : vector<24x24xf32> to vector<24xf32>
    %132 = vector.shape_cast %131 : vector<24xf32> to vector<24x1xf32>
    %133 = tpu.reciprocal %132 {approx = true} : vector<24x1xf32> -> vector<24x1xf32>
    %134 = vector.broadcast %133 : vector<24x1xf32> to vector<24x24xf32>
    %135 = arith.mulf %130, %134 : vector<24x24xf32>
    %136 = vector.extract_strided_slice %15 {offsets = [0, 16], sizes = [24, 8], strides = [1, 1]} : vector<24x32xf32> to vector<24x8xf32>
    %cst_45 = arith.constant dense<0.000000e+00> : vector<24x8xf32>
    %137 = tpu.matmul %135, %136, %cst_45 {dimension_numbers = #tpu.dot_dimension_numbers<[1], [0], [0], [1], [0, 0, 1, 1], [], []>} : vector<24x24xf32>, vector<24x8xf32>, vector<24x8xf32> -> vector<24x8xf32>
    %138 = vector.extract_strided_slice %12 {offsets = [0, 16], sizes = [24, 8], strides = [1, 1]} : vector<24x32xf32> to vector<24x8xf32>
    %139 = vector.extract_strided_slice %16 {offsets = [0, 16], sizes = [8, 8], strides = [1, 1]} : vector<8x32xf32> to vector<8x8xf32>
    %cst_46 = arith.constant dense<0.000000e+00> : vector<24x8xf32>
    %140 = tpu.matmul %138, %139, %cst_46 {dimension_numbers = #tpu.dot_dimension_numbers<[1], [1], [0], [0], [0, 0, 1, 0], [], []>} : vector<24x8xf32>, vector<8x8xf32>, vector<24x8xf32> -> vector<24x8xf32>
    %cst_47 = arith.constant dense<0xFF800000> : vector<24xf32>
    %141 = vector.multi_reduction <maximumf>, %140, %cst_47 [1] : vector<24x8xf32> to vector<24xf32>
    %142 = vector.shape_cast %141 : vector<24xf32> to vector<24x1xf32>
    %143 = vector.broadcast %142 : vector<24x1xf32> to vector<24x8xf32>
    %144 = arith.subf %140, %143 : vector<24x8xf32>
    %145 = math.exp %144 : vector<24x8xf32>
    %cst_48 = arith.constant dense<0.000000e+00> : vector<24xf32>
    %146 = vector.multi_reduction <add>, %145, %cst_48 [1] : vector<24x8xf32> to vector<24xf32>
    %147 = vector.shape_cast %146 : vector<24xf32> to vector<24x1xf32>
    %148 = tpu.reciprocal %147 {approx = true} : vector<24x1xf32> -> vector<24x1xf32>
    %149 = vector.broadcast %148 : vector<24x1xf32> to vector<24x8xf32>
    %150 = arith.mulf %145, %149 : vector<24x8xf32>
    %151 = vector.extract_strided_slice %17 {offsets = [0, 16], sizes = [8, 8], strides = [1, 1]} : vector<8x32xf32> to vector<8x8xf32>
    %cst_49 = arith.constant dense<0.000000e+00> : vector<24x8xf32>
    %152 = tpu.matmul %150, %151, %cst_49 {dimension_numbers = #tpu.dot_dimension_numbers<[1], [0], [0], [1], [0, 0, 1, 1], [], []>} : vector<24x8xf32>, vector<8x8xf32>, vector<24x8xf32> -> vector<24x8xf32>
    %153 = arith.addf %137, %152 : vector<24x8xf32>
    %154 = vector.extract_strided_slice %13 {offsets = [0, 16], sizes = [8, 8], strides = [1, 1]} : vector<8x32xf32> to vector<8x8xf32>
    %155 = vector.extract_strided_slice %14 {offsets = [0, 16], sizes = [24, 8], strides = [1, 1]} : vector<24x32xf32> to vector<24x8xf32>
    %cst_50 = arith.constant dense<0.000000e+00> : vector<8x24xf32>
    %156 = tpu.matmul %154, %155, %cst_50 {dimension_numbers = #tpu.dot_dimension_numbers<[1], [1], [0], [0], [0, 0, 1, 0], [], []>} : vector<8x8xf32>, vector<24x8xf32>, vector<8x24xf32> -> vector<8x24xf32>
    %cst_51 = arith.constant dense<0xFF800000> : vector<8xf32>
    %157 = vector.multi_reduction <maximumf>, %156, %cst_51 [1] : vector<8x24xf32> to vector<8xf32>
    %158 = vector.shape_cast %157 : vector<8xf32> to vector<8x1xf32>
    %159 = vector.broadcast %158 : vector<8x1xf32> to vector<8x24xf32>
    %160 = arith.subf %156, %159 : vector<8x24xf32>
    %161 = math.exp %160 : vector<8x24xf32>
    %cst_52 = arith.constant dense<0.000000e+00> : vector<8xf32>
    %162 = vector.multi_reduction <add>, %161, %cst_52 [1] : vector<8x24xf32> to vector<8xf32>
    %163 = vector.shape_cast %162 : vector<8xf32> to vector<8x1xf32>
    %164 = tpu.reciprocal %163 {approx = true} : vector<8x1xf32> -> vector<8x1xf32>
    %165 = vector.broadcast %164 : vector<8x1xf32> to vector<8x24xf32>
    %166 = arith.mulf %161, %165 : vector<8x24xf32>
    %167 = vector.extract_strided_slice %15 {offsets = [0, 16], sizes = [24, 8], strides = [1, 1]} : vector<24x32xf32> to vector<24x8xf32>
    %cst_53 = arith.constant dense<0.000000e+00> : vector<8x8xf32>
    %168 = tpu.matmul %166, %167, %cst_53 {dimension_numbers = #tpu.dot_dimension_numbers<[1], [0], [0], [1], [0, 0, 1, 1], [], []>} : vector<8x24xf32>, vector<24x8xf32>, vector<8x8xf32> -> vector<8x8xf32>
    %cst_54 = arith.constant dense<0.000000e+00> : vector<24x32xf32>
    %169 = tpu.matmul %153, %122, %cst_54 {dimension_numbers = #tpu.dot_dimension_numbers<[1], [0], [0], [1], [0, 0, 1, 1], [], []>} : vector<24x8xf32>, vector<8x32xf32>, vector<24x32xf32> -> vector<24x32xf32>
    %170 = arith.addf %119, %169 : vector<24x32xf32>
    %cst_55 = arith.constant dense<0.000000e+00> : vector<8x32xf32>
    %171 = tpu.matmul %168, %122, %cst_55 {dimension_numbers = #tpu.dot_dimension_numbers<[1], [0], [0], [1], [0, 0, 1, 1], [], []>} : vector<8x8xf32>, vector<8x32xf32>, vector<8x32xf32> -> vector<8x32xf32>
    %172 = arith.addf %121, %171 : vector<8x32xf32>
    %173 = vector.extract_strided_slice %2 {offsets = [24, 0], sizes = [8, 32], strides = [1, 1]} : vector<32x32xf32> to vector<8x32xf32>
    %174 = vector.extract_strided_slice %11 {offsets = [0, 24], sizes = [24, 8], strides = [1, 1]} : vector<24x32xf32> to vector<24x8xf32>
    %175 = vector.extract_strided_slice %14 {offsets = [0, 24], sizes = [24, 8], strides = [1, 1]} : vector<24x32xf32> to vector<24x8xf32>
    %cst_56 = arith.constant dense<0.000000e+00> : vector<24x24xf32>
    %176 = tpu.matmul %174, %175, %cst_56 {dimension_numbers = #tpu.dot_dimension_numbers<[1], [1], [0], [0], [0, 0, 1, 0], [], []>} : vector<24x8xf32>, vector<24x8xf32>, vector<24x24xf32> -> vector<24x24xf32>
    %cst_57 = arith.constant dense<0xFF800000> : vector<24xf32>
    %177 = vector.multi_reduction <maximumf>, %176, %cst_57 [1] : vector<24x24xf32> to vector<24xf32>
    %178 = vector.shape_cast %177 : vector<24xf32> to vector<24x1xf32>
    %179 = vector.broadcast %178 : vector<24x1xf32> to vector<24x24xf32>
    %180 = arith.subf %176, %179 : vector<24x24xf32>
    %181 = math.exp %180 : vector<24x24xf32>
    %cst_58 = arith.constant dense<0.000000e+00> : vector<24xf32>
    %182 = vector.multi_reduction <add>, %181, %cst_58 [1] : vector<24x24xf32> to vector<24xf32>
    %183 = vector.shape_cast %182 : vector<24xf32> to vector<24x1xf32>
    %184 = tpu.reciprocal %183 {approx = true} : vector<24x1xf32> -> vector<24x1xf32>
    %185 = vector.broadcast %184 : vector<24x1xf32> to vector<24x24xf32>
    %186 = arith.mulf %181, %185 : vector<24x24xf32>
    %187 = vector.extract_strided_slice %15 {offsets = [0, 24], sizes = [24, 8], strides = [1, 1]} : vector<24x32xf32> to vector<24x8xf32>
    %cst_59 = arith.constant dense<0.000000e+00> : vector<24x8xf32>
    %188 = tpu.matmul %186, %187, %cst_59 {dimension_numbers = #tpu.dot_dimension_numbers<[1], [0], [0], [1], [0, 0, 1, 1], [], []>} : vector<24x24xf32>, vector<24x8xf32>, vector<24x8xf32> -> vector<24x8xf32>
    %189 = vector.extract_strided_slice %12 {offsets = [0, 24], sizes = [24, 8], strides = [1, 1]} : vector<24x32xf32> to vector<24x8xf32>
    %190 = vector.extract_strided_slice %16 {offsets = [0, 24], sizes = [8, 8], strides = [1, 1]} : vector<8x32xf32> to vector<8x8xf32>
    %cst_60 = arith.constant dense<0.000000e+00> : vector<24x8xf32>
    %191 = tpu.matmul %189, %190, %cst_60 {dimension_numbers = #tpu.dot_dimension_numbers<[1], [1], [0], [0], [0, 0, 1, 0], [], []>} : vector<24x8xf32>, vector<8x8xf32>, vector<24x8xf32> -> vector<24x8xf32>
    %cst_61 = arith.constant dense<0xFF800000> : vector<24xf32>
    %192 = vector.multi_reduction <maximumf>, %191, %cst_61 [1] : vector<24x8xf32> to vector<24xf32>
    %193 = vector.shape_cast %192 : vector<24xf32> to vector<24x1xf32>
    %194 = vector.broadcast %193 : vector<24x1xf32> to vector<24x8xf32>
    %195 = arith.subf %191, %194 : vector<24x8xf32>
    %196 = math.exp %195 : vector<24x8xf32>
    %cst_62 = arith.constant dense<0.000000e+00> : vector<24xf32>
    %197 = vector.multi_reduction <add>, %196, %cst_62 [1] : vector<24x8xf32> to vector<24xf32>
    %198 = vector.shape_cast %197 : vector<24xf32> to vector<24x1xf32>
    %199 = tpu.reciprocal %198 {approx = true} : vector<24x1xf32> -> vector<24x1xf32>
    %200 = vector.broadcast %199 : vector<24x1xf32> to vector<24x8xf32>
    %201 = arith.mulf %196, %200 : vector<24x8xf32>
    %202 = vector.extract_strided_slice %17 {offsets = [0, 24], sizes = [8, 8], strides = [1, 1]} : vector<8x32xf32> to vector<8x8xf32>
    %cst_63 = arith.constant dense<0.000000e+00> : vector<24x8xf32>
    %203 = tpu.matmul %201, %202, %cst_63 {dimension_numbers = #tpu.dot_dimension_numbers<[1], [0], [0], [1], [0, 0, 1, 1], [], []>} : vector<24x8xf32>, vector<8x8xf32>, vector<24x8xf32> -> vector<24x8xf32>
    %204 = arith.addf %188, %203 : vector<24x8xf32>
    %205 = vector.extract_strided_slice %13 {offsets = [0, 24], sizes = [8, 8], strides = [1, 1]} : vector<8x32xf32> to vector<8x8xf32>
    %206 = vector.extract_strided_slice %14 {offsets = [0, 24], sizes = [24, 8], strides = [1, 1]} : vector<24x32xf32> to vector<24x8xf32>
    %cst_64 = arith.constant dense<0.000000e+00> : vector<8x24xf32>
    %207 = tpu.matmul %205, %206, %cst_64 {dimension_numbers = #tpu.dot_dimension_numbers<[1], [1], [0], [0], [0, 0, 1, 0], [], []>} : vector<8x8xf32>, vector<24x8xf32>, vector<8x24xf32> -> vector<8x24xf32>
    %cst_65 = arith.constant dense<0xFF800000> : vector<8xf32>
    %208 = vector.multi_reduction <maximumf>, %207, %cst_65 [1] : vector<8x24xf32> to vector<8xf32>
    %209 = vector.shape_cast %208 : vector<8xf32> to vector<8x1xf32>
    %210 = vector.broadcast %209 : vector<8x1xf32> to vector<8x24xf32>
    %211 = arith.subf %207, %210 : vector<8x24xf32>
    %212 = math.exp %211 : vector<8x24xf32>
    %cst_66 = arith.constant dense<0.000000e+00> : vector<8xf32>
    %213 = vector.multi_reduction <add>, %212, %cst_66 [1] : vector<8x24xf32> to vector<8xf32>
    %214 = vector.shape_cast %213 : vector<8xf32> to vector<8x1xf32>
    %215 = tpu.reciprocal %214 {approx = true} : vector<8x1xf32> -> vector<8x1xf32>
    %216 = vector.broadcast %215 : vector<8x1xf32> to vector<8x24xf32>
    %217 = arith.mulf %212, %216 : vector<8x24xf32>
    %218 = vector.extract_strided_slice %15 {offsets = [0, 24], sizes = [24, 8], strides = [1, 1]} : vector<24x32xf32> to vector<24x8xf32>
    %cst_67 = arith.constant dense<0.000000e+00> : vector<8x8xf32>
    %219 = tpu.matmul %217, %218, %cst_67 {dimension_numbers = #tpu.dot_dimension_numbers<[1], [0], [0], [1], [0, 0, 1, 1], [], []>} : vector<8x24xf32>, vector<24x8xf32>, vector<8x8xf32> -> vector<8x8xf32>
    %cst_68 = arith.constant dense<0.000000e+00> : vector<24x32xf32>
    %220 = tpu.matmul %204, %173, %cst_68 {dimension_numbers = #tpu.dot_dimension_numbers<[1], [0], [0], [1], [0, 0, 1, 1], [], []>} : vector<24x8xf32>, vector<8x32xf32>, vector<24x32xf32> -> vector<24x32xf32>
    %221 = arith.addf %170, %220 : vector<24x32xf32>
    %cst_69 = arith.constant dense<0.000000e+00> : vector<8x32xf32>
    %222 = tpu.matmul %219, %173, %cst_69 {dimension_numbers = #tpu.dot_dimension_numbers<[1], [0], [0], [1], [0, 0, 1, 1], [], []>} : vector<8x8xf32>, vector<8x32xf32>, vector<8x32xf32> -> vector<8x32xf32>
    %223 = arith.addf %172, %222 : vector<8x32xf32>
    %c0_70 = arith.constant 0 : index
    %c0_71 = arith.constant 0 : index
    %c0_72 = arith.constant 0 : index
    %224 = vector.load %arg6[%c0_70, %c0_71, %c0_72] : memref<2x32x32xf32, #tpu.memory_space<vmem>>, vector<1x8x32xf32>
    %225 = vector.shape_cast %224 : vector<1x8x32xf32> to vector<8x32xf32>
    %226 = vector.shape_cast %223 : vector<8x32xf32> to vector<1x8x32xf32>
    tpu.vector_store %arg6[%c0_70, %c0_71, %c0_72], %226 {strides = array<i32>} : memref<2x32x32xf32, #tpu.memory_space<vmem>>, vector<1x8x32xf32>,
    %c0_73 = arith.constant 0 : index
    %c8 = arith.constant 8 : index
    %c0_74 = arith.constant 0 : index
    %227 = vector.load %arg6[%c0_73, %c8, %c0_74] : memref<2x32x32xf32, #tpu.memory_space<vmem>>, vector<1x24x32xf32>
    %228 = vector.shape_cast %227 : vector<1x24x32xf32> to vector<24x32xf32>
    %229 = vector.shape_cast %221 : vector<24x32xf32> to vector<1x24x32xf32>
    tpu.vector_store %arg6[%c0_73, %c8, %c0_74], %229 {strides = array<i32>} : memref<2x32x32xf32, #tpu.memory_space<vmem>>, vector<1x24x32xf32>,
    %230 = vector.extract_strided_slice %5 {offsets = [32, 0], sizes = [32, 96], strides = [1, 1]} : vector<64x96xf32> to vector<32x96xf32>
    %231 = vector.extract_strided_slice %8 {offsets = [32, 0], sizes = [32, 128], strides = [1, 1]} : vector<64x128xf32> to vector<32x128xf32>
    %232 = vector.extract_strided_slice %230 {offsets = [8, 0], sizes = [24, 32], strides = [1, 1]} : vector<32x96xf32> to vector<24x32xf32>
    %233 = vector.extract_strided_slice %230 {offsets = [8, 32], sizes = [24, 32], strides = [1, 1]} : vector<32x96xf32> to vector<24x32xf32>
    %234 = vector.extract_strided_slice %230 {offsets = [0, 64], sizes = [8, 32], strides = [1, 1]} : vector<32x96xf32> to vector<8x32xf32>
    %235 = vector.extract_strided_slice %231 {offsets = [8, 0], sizes = [24, 32], strides = [1, 1]} : vector<32x128xf32> to vector<24x32xf32>
    %236 = vector.extract_strided_slice %231 {offsets = [8, 32], sizes = [24, 32], strides = [1, 1]} : vector<32x128xf32> to vector<24x32xf32>
    %237 = vector.extract_strided_slice %231 {offsets = [0, 64], sizes = [8, 32], strides = [1, 1]} : vector<32x128xf32> to vector<8x32xf32>
    %238 = vector.extract_strided_slice %231 {offsets = [0, 96], sizes = [8, 32], strides = [1, 1]} : vector<32x128xf32> to vector<8x32xf32>
    %cst_75 = arith.constant 0.000000e+00 : f32
    %239 = vector.broadcast %cst_75 : f32 to vector<24x32xf32>
    %cst_76 = arith.constant 0.000000e+00 : f32
    %240 = vector.broadcast %cst_76 : f32 to vector<8x32xf32>
    %241 = vector.extract_strided_slice %2 {offsets = [0, 0], sizes = [8, 32], strides = [1, 1]} : vector<32x32xf32> to vector<8x32xf32>
    %242 = vector.extract_strided_slice %232 {offsets = [0, 0], sizes = [24, 8], strides = [1, 1]} : vector<24x32xf32> to vector<24x8xf32>
    %243 = vector.extract_strided_slice %235 {offsets = [0, 0], sizes = [24, 8], strides = [1, 1]} : vector<24x32xf32> to vector<24x8xf32>
    %cst_77 = arith.constant dense<0.000000e+00> : vector<24x24xf32>
    %244 = tpu.matmul %242, %243, %cst_77 {dimension_numbers = #tpu.dot_dimension_numbers<[1], [1], [0], [0], [0, 0, 1, 0], [], []>} : vector<24x8xf32>, vector<24x8xf32>, vector<24x24xf32> -> vector<24x24xf32>
    %cst_78 = arith.constant dense<0xFF800000> : vector<24xf32>
    %245 = vector.multi_reduction <maximumf>, %244, %cst_78 [1] : vector<24x24xf32> to vector<24xf32>
    %246 = vector.shape_cast %245 : vector<24xf32> to vector<24x1xf32>
    %247 = vector.broadcast %246 : vector<24x1xf32> to vector<24x24xf32>
    %248 = arith.subf %244, %247 : vector<24x24xf32>
    %249 = math.exp %248 : vector<24x24xf32>
    %cst_79 = arith.constant dense<0.000000e+00> : vector<24xf32>
    %250 = vector.multi_reduction <add>, %249, %cst_79 [1] : vector<24x24xf32> to vector<24xf32>
    %251 = vector.shape_cast %250 : vector<24xf32> to vector<24x1xf32>
    %252 = tpu.reciprocal %251 {approx = true} : vector<24x1xf32> -> vector<24x1xf32>
    %253 = vector.broadcast %252 : vector<24x1xf32> to vector<24x24xf32>
    %254 = arith.mulf %249, %253 : vector<24x24xf32>
    %255 = vector.extract_strided_slice %236 {offsets = [0, 0], sizes = [24, 8], strides = [1, 1]} : vector<24x32xf32> to vector<24x8xf32>
    %cst_80 = arith.constant dense<0.000000e+00> : vector<24x8xf32>
    %256 = tpu.matmul %254, %255, %cst_80 {dimension_numbers = #tpu.dot_dimension_numbers<[1], [0], [0], [1], [0, 0, 1, 1], [], []>} : vector<24x24xf32>, vector<24x8xf32>, vector<24x8xf32> -> vector<24x8xf32>
    %257 = vector.extract_strided_slice %233 {offsets = [0, 0], sizes = [24, 8], strides = [1, 1]} : vector<24x32xf32> to vector<24x8xf32>
    %258 = vector.extract_strided_slice %237 {offsets = [0, 0], sizes = [8, 8], strides = [1, 1]} : vector<8x32xf32> to vector<8x8xf32>
    %cst_81 = arith.constant dense<0.000000e+00> : vector<24x8xf32>
    %259 = tpu.matmul %257, %258, %cst_81 {dimension_numbers = #tpu.dot_dimension_numbers<[1], [1], [0], [0], [0, 0, 1, 0], [], []>} : vector<24x8xf32>, vector<8x8xf32>, vector<24x8xf32> -> vector<24x8xf32>
    %cst_82 = arith.constant dense<0xFF800000> : vector<24xf32>
    %260 = vector.multi_reduction <maximumf>, %259, %cst_82 [1] : vector<24x8xf32> to vector<24xf32>
    %261 = vector.shape_cast %260 : vector<24xf32> to vector<24x1xf32>
    %262 = vector.broadcast %261 : vector<24x1xf32> to vector<24x8xf32>
    %263 = arith.subf %259, %262 : vector<24x8xf32>
    %264 = math.exp %263 : vector<24x8xf32>
    %cst_83 = arith.constant dense<0.000000e+00> : vector<24xf32>
    %265 = vector.multi_reduction <add>, %264, %cst_83 [1] : vector<24x8xf32> to vector<24xf32>
    %266 = vector.shape_cast %265 : vector<24xf32> to vector<24x1xf32>
    %267 = tpu.reciprocal %266 {approx = true} : vector<24x1xf32> -> vector<24x1xf32>
    %268 = vector.broadcast %267 : vector<24x1xf32> to vector<24x8xf32>
    %269 = arith.mulf %264, %268 : vector<24x8xf32>
    %270 = vector.extract_strided_slice %238 {offsets = [0, 0], sizes = [8, 8], strides = [1, 1]} : vector<8x32xf32> to vector<8x8xf32>
    %cst_84 = arith.constant dense<0.000000e+00> : vector<24x8xf32>
    %271 = tpu.matmul %269, %270, %cst_84 {dimension_numbers = #tpu.dot_dimension_numbers<[1], [0], [0], [1], [0, 0, 1, 1], [], []>} : vector<24x8xf32>, vector<8x8xf32>, vector<24x8xf32> -> vector<24x8xf32>
    %272 = arith.addf %256, %271 : vector<24x8xf32>
    %273 = vector.extract_strided_slice %234 {offsets = [0, 0], sizes = [8, 8], strides = [1, 1]} : vector<8x32xf32> to vector<8x8xf32>
    %274 = vector.extract_strided_slice %235 {offsets = [0, 0], sizes = [24, 8], strides = [1, 1]} : vector<24x32xf32> to vector<24x8xf32>
    %cst_85 = arith.constant dense<0.000000e+00> : vector<8x24xf32>
    %275 = tpu.matmul %273, %274, %cst_85 {dimension_numbers = #tpu.dot_dimension_numbers<[1], [1], [0], [0], [0, 0, 1, 0], [], []>} : vector<8x8xf32>, vector<24x8xf32>, vector<8x24xf32> -> vector<8x24xf32>
    %cst_86 = arith.constant dense<0xFF800000> : vector<8xf32>
    %276 = vector.multi_reduction <maximumf>, %275, %cst_86 [1] : vector<8x24xf32> to vector<8xf32>
    %277 = vector.shape_cast %276 : vector<8xf32> to vector<8x1xf32>
    %278 = vector.broadcast %277 : vector<8x1xf32> to vector<8x24xf32>
    %279 = arith.subf %275, %278 : vector<8x24xf32>
    %280 = math.exp %279 : vector<8x24xf32>
    %cst_87 = arith.constant dense<0.000000e+00> : vector<8xf32>
    %281 = vector.multi_reduction <add>, %280, %cst_87 [1] : vector<8x24xf32> to vector<8xf32>
    %282 = vector.shape_cast %281 : vector<8xf32> to vector<8x1xf32>
    %283 = tpu.reciprocal %282 {approx = true} : vector<8x1xf32> -> vector<8x1xf32>
    %284 = vector.broadcast %283 : vector<8x1xf32> to vector<8x24xf32>
    %285 = arith.mulf %280, %284 : vector<8x24xf32>
    %286 = vector.extract_strided_slice %236 {offsets = [0, 0], sizes = [24, 8], strides = [1, 1]} : vector<24x32xf32> to vector<24x8xf32>
    %cst_88 = arith.constant dense<0.000000e+00> : vector<8x8xf32>
    %287 = tpu.matmul %285, %286, %cst_88 {dimension_numbers = #tpu.dot_dimension_numbers<[1], [0], [0], [1], [0, 0, 1, 1], [], []>} : vector<8x24xf32>, vector<24x8xf32>, vector<8x8xf32> -> vector<8x8xf32>
    %cst_89 = arith.constant dense<0.000000e+00> : vector<24x32xf32>
    %288 = tpu.matmul %272, %241, %cst_89 {dimension_numbers = #tpu.dot_dimension_numbers<[1], [0], [0], [1], [0, 0, 1, 1], [], []>} : vector<24x8xf32>, vector<8x32xf32>, vector<24x32xf32> -> vector<24x32xf32>
    %289 = arith.addf %239, %288 : vector<24x32xf32>
    %cst_90 = arith.constant dense<0.000000e+00> : vector<8x32xf32>
    %290 = tpu.matmul %287, %241, %cst_90 {dimension_numbers = #tpu.dot_dimension_numbers<[1], [0], [0], [1], [0, 0, 1, 1], [], []>} : vector<8x8xf32>, vector<8x32xf32>, vector<8x32xf32> -> vector<8x32xf32>
    %291 = arith.addf %240, %290 : vector<8x32xf32>
    %292 = vector.extract_strided_slice %2 {offsets = [8, 0], sizes = [8, 32], strides = [1, 1]} : vector<32x32xf32> to vector<8x32xf32>
    %293 = vector.extract_strided_slice %232 {offsets = [0, 8], sizes = [24, 8], strides = [1, 1]} : vector<24x32xf32> to vector<24x8xf32>
    %294 = vector.extract_strided_slice %235 {offsets = [0, 8], sizes = [24, 8], strides = [1, 1]} : vector<24x32xf32> to vector<24x8xf32>
    %cst_91 = arith.constant dense<0.000000e+00> : vector<24x24xf32>
    %295 = tpu.matmul %293, %294, %cst_91 {dimension_numbers = #tpu.dot_dimension_numbers<[1], [1], [0], [0], [0, 0, 1, 0], [], []>} : vector<24x8xf32>, vector<24x8xf32>, vector<24x24xf32> -> vector<24x24xf32>
    %cst_92 = arith.constant dense<0xFF800000> : vector<24xf32>
    %296 = vector.multi_reduction <maximumf>, %295, %cst_92 [1] : vector<24x24xf32> to vector<24xf32>
    %297 = vector.shape_cast %296 : vector<24xf32> to vector<24x1xf32>
    %298 = vector.broadcast %297 : vector<24x1xf32> to vector<24x24xf32>
    %299 = arith.subf %295, %298 : vector<24x24xf32>
    %300 = math.exp %299 : vector<24x24xf32>
    %cst_93 = arith.constant dense<0.000000e+00> : vector<24xf32>
    %301 = vector.multi_reduction <add>, %300, %cst_93 [1] : vector<24x24xf32> to vector<24xf32>
    %302 = vector.shape_cast %301 : vector<24xf32> to vector<24x1xf32>
    %303 = tpu.reciprocal %302 {approx = true} : vector<24x1xf32> -> vector<24x1xf32>
    %304 = vector.broadcast %303 : vector<24x1xf32> to vector<24x24xf32>
    %305 = arith.mulf %300, %304 : vector<24x24xf32>
    %306 = vector.extract_strided_slice %236 {offsets = [0, 8], sizes = [24, 8], strides = [1, 1]} : vector<24x32xf32> to vector<24x8xf32>
    %cst_94 = arith.constant dense<0.000000e+00> : vector<24x8xf32>
    %307 = tpu.matmul %305, %306, %cst_94 {dimension_numbers = #tpu.dot_dimension_numbers<[1], [0], [0], [1], [0, 0, 1, 1], [], []>} : vector<24x24xf32>, vector<24x8xf32>, vector<24x8xf32> -> vector<24x8xf32>
    %308 = vector.extract_strided_slice %233 {offsets = [0, 8], sizes = [24, 8], strides = [1, 1]} : vector<24x32xf32> to vector<24x8xf32>
    %309 = vector.extract_strided_slice %237 {offsets = [0, 8], sizes = [8, 8], strides = [1, 1]} : vector<8x32xf32> to vector<8x8xf32>
    %cst_95 = arith.constant dense<0.000000e+00> : vector<24x8xf32>
    %310 = tpu.matmul %308, %309, %cst_95 {dimension_numbers = #tpu.dot_dimension_numbers<[1], [1], [0], [0], [0, 0, 1, 0], [], []>} : vector<24x8xf32>, vector<8x8xf32>, vector<24x8xf32> -> vector<24x8xf32>
    %cst_96 = arith.constant dense<0xFF800000> : vector<24xf32>
    %311 = vector.multi_reduction <maximumf>, %310, %cst_96 [1] : vector<24x8xf32> to vector<24xf32>
    %312 = vector.shape_cast %311 : vector<24xf32> to vector<24x1xf32>
    %313 = vector.broadcast %312 : vector<24x1xf32> to vector<24x8xf32>
    %314 = arith.subf %310, %313 : vector<24x8xf32>
    %315 = math.exp %314 : vector<24x8xf32>
    %cst_97 = arith.constant dense<0.000000e+00> : vector<24xf32>
    %316 = vector.multi_reduction <add>, %315, %cst_97 [1] : vector<24x8xf32> to vector<24xf32>
    %317 = vector.shape_cast %316 : vector<24xf32> to vector<24x1xf32>
    %318 = tpu.reciprocal %317 {approx = true} : vector<24x1xf32> -> vector<24x1xf32>
    %319 = vector.broadcast %318 : vector<24x1xf32> to vector<24x8xf32>
    %320 = arith.mulf %315, %319 : vector<24x8xf32>
    %321 = vector.extract_strided_slice %238 {offsets = [0, 8], sizes = [8, 8], strides = [1, 1]} : vector<8x32xf32> to vector<8x8xf32>
    %cst_98 = arith.constant dense<0.000000e+00> : vector<24x8xf32>
    %322 = tpu.matmul %320, %321, %cst_98 {dimension_numbers = #tpu.dot_dimension_numbers<[1], [0], [0], [1], [0, 0, 1, 1], [], []>} : vector<24x8xf32>, vector<8x8xf32>, vector<24x8xf32> -> vector<24x8xf32>
    %323 = arith.addf %307, %322 : vector<24x8xf32>
    %324 = vector.extract_strided_slice %234 {offsets = [0, 8], sizes = [8, 8], strides = [1, 1]} : vector<8x32xf32> to vector<8x8xf32>
    %325 = vector.extract_strided_slice %235 {offsets = [0, 8], sizes = [24, 8], strides = [1, 1]} : vector<24x32xf32> to vector<24x8xf32>
    %cst_99 = arith.constant dense<0.000000e+00> : vector<8x24xf32>
    %326 = tpu.matmul %324, %325, %cst_99 {dimension_numbers = #tpu.dot_dimension_numbers<[1], [1], [0], [0], [0, 0, 1, 0], [], []>} : vector<8x8xf32>, vector<24x8xf32>, vector<8x24xf32> -> vector<8x24xf32>
    %cst_100 = arith.constant dense<0xFF800000> : vector<8xf32>
    %327 = vector.multi_reduction <maximumf>, %326, %cst_100 [1] : vector<8x24xf32> to vector<8xf32>
    %328 = vector.shape_cast %327 : vector<8xf32> to vector<8x1xf32>
    %329 = vector.broadcast %328 : vector<8x1xf32> to vector<8x24xf32>
    %330 = arith.subf %326, %329 : vector<8x24xf32>
    %331 = math.exp %330 : vector<8x24xf32>
    %cst_101 = arith.constant dense<0.000000e+00> : vector<8xf32>
    %332 = vector.multi_reduction <add>, %331, %cst_101 [1] : vector<8x24xf32> to vector<8xf32>
    %333 = vector.shape_cast %332 : vector<8xf32> to vector<8x1xf32>
    %334 = tpu.reciprocal %333 {approx = true} : vector<8x1xf32> -> vector<8x1xf32>
    %335 = vector.broadcast %334 : vector<8x1xf32> to vector<8x24xf32>
    %336 = arith.mulf %331, %335 : vector<8x24xf32>
    %337 = vector.extract_strided_slice %236 {offsets = [0, 8], sizes = [24, 8], strides = [1, 1]} : vector<24x32xf32> to vector<24x8xf32>
    %cst_102 = arith.constant dense<0.000000e+00> : vector<8x8xf32>
    %338 = tpu.matmul %336, %337, %cst_102 {dimension_numbers = #tpu.dot_dimension_numbers<[1], [0], [0], [1], [0, 0, 1, 1], [], []>} : vector<8x24xf32>, vector<24x8xf32>, vector<8x8xf32> -> vector<8x8xf32>
    %cst_103 = arith.constant dense<0.000000e+00> : vector<24x32xf32>
    %339 = tpu.matmul %323, %292, %cst_103 {dimension_numbers = #tpu.dot_dimension_numbers<[1], [0], [0], [1], [0, 0, 1, 1], [], []>} : vector<24x8xf32>, vector<8x32xf32>, vector<24x32xf32> -> vector<24x32xf32>
    %340 = arith.addf %289, %339 : vector<24x32xf32>
    %cst_104 = arith.constant dense<0.000000e+00> : vector<8x32xf32>
    %341 = tpu.matmul %338, %292, %cst_104 {dimension_numbers = #tpu.dot_dimension_numbers<[1], [0], [0], [1], [0, 0, 1, 1], [], []>} : vector<8x8xf32>, vector<8x32xf32>, vector<8x32xf32> -> vector<8x32xf32>
    %342 = arith.addf %291, %341 : vector<8x32xf32>
    %343 = vector.extract_strided_slice %2 {offsets = [16, 0], sizes = [8, 32], strides = [1, 1]} : vector<32x32xf32> to vector<8x32xf32>
    %344 = vector.extract_strided_slice %232 {offsets = [0, 16], sizes = [24, 8], strides = [1, 1]} : vector<24x32xf32> to vector<24x8xf32>
    %345 = vector.extract_strided_slice %235 {offsets = [0, 16], sizes = [24, 8], strides = [1, 1]} : vector<24x32xf32> to vector<24x8xf32>
    %cst_105 = arith.constant dense<0.000000e+00> : vector<24x24xf32>
    %346 = tpu.matmul %344, %345, %cst_105 {dimension_numbers = #tpu.dot_dimension_numbers<[1], [1], [0], [0], [0, 0, 1, 0], [], []>} : vector<24x8xf32>, vector<24x8xf32>, vector<24x24xf32> -> vector<24x24xf32>
    %cst_106 = arith.constant dense<0xFF800000> : vector<24xf32>
    %347 = vector.multi_reduction <maximumf>, %346, %cst_106 [1] : vector<24x24xf32> to vector<24xf32>
    %348 = vector.shape_cast %347 : vector<24xf32> to vector<24x1xf32>
    %349 = vector.broadcast %348 : vector<24x1xf32> to vector<24x24xf32>
    %350 = arith.subf %346, %349 : vector<24x24xf32>
    %351 = math.exp %350 : vector<24x24xf32>
    %cst_107 = arith.constant dense<0.000000e+00> : vector<24xf32>
    %352 = vector.multi_reduction <add>, %351, %cst_107 [1] : vector<24x24xf32> to vector<24xf32>
    %353 = vector.shape_cast %352 : vector<24xf32> to vector<24x1xf32>
    %354 = tpu.reciprocal %353 {approx = true} : vector<24x1xf32> -> vector<24x1xf32>
    %355 = vector.broadcast %354 : vector<24x1xf32> to vector<24x24xf32>
    %356 = arith.mulf %351, %355 : vector<24x24xf32>
    %357 = vector.extract_strided_slice %236 {offsets = [0, 16], sizes = [24, 8], strides = [1, 1]} : vector<24x32xf32> to vector<24x8xf32>
    %cst_108 = arith.constant dense<0.000000e+00> : vector<24x8xf32>
    %358 = tpu.matmul %356, %357, %cst_108 {dimension_numbers = #tpu.dot_dimension_numbers<[1], [0], [0], [1], [0, 0, 1, 1], [], []>} : vector<24x24xf32>, vector<24x8xf32>, vector<24x8xf32> -> vector<24x8xf32>
    %359 = vector.extract_strided_slice %233 {offsets = [0, 16], sizes = [24, 8], strides = [1, 1]} : vector<24x32xf32> to vector<24x8xf32>
    %360 = vector.extract_strided_slice %237 {offsets = [0, 16], sizes = [8, 8], strides = [1, 1]} : vector<8x32xf32> to vector<8x8xf32>
    %cst_109 = arith.constant dense<0.000000e+00> : vector<24x8xf32>
    %361 = tpu.matmul %359, %360, %cst_109 {dimension_numbers = #tpu.dot_dimension_numbers<[1], [1], [0], [0], [0, 0, 1, 0], [], []>} : vector<24x8xf32>, vector<8x8xf32>, vector<24x8xf32> -> vector<24x8xf32>
    %cst_110 = arith.constant dense<0xFF800000> : vector<24xf32>
    %362 = vector.multi_reduction <maximumf>, %361, %cst_110 [1] : vector<24x8xf32> to vector<24xf32>
    %363 = vector.shape_cast %362 : vector<24xf32> to vector<24x1xf32>
    %364 = vector.broadcast %363 : vector<24x1xf32> to vector<24x8xf32>
    %365 = arith.subf %361, %364 : vector<24x8xf32>
    %366 = math.exp %365 : vector<24x8xf32>
    %cst_111 = arith.constant dense<0.000000e+00> : vector<24xf32>
    %367 = vector.multi_reduction <add>, %366, %cst_111 [1] : vector<24x8xf32> to vector<24xf32>
    %368 = vector.shape_cast %367 : vector<24xf32> to vector<24x1xf32>
    %369 = tpu.reciprocal %368 {approx = true} : vector<24x1xf32> -> vector<24x1xf32>
    %370 = vector.broadcast %369 : vector<24x1xf32> to vector<24x8xf32>
    %371 = arith.mulf %366, %370 : vector<24x8xf32>
    %372 = vector.extract_strided_slice %238 {offsets = [0, 16], sizes = [8, 8], strides = [1, 1]} : vector<8x32xf32> to vector<8x8xf32>
    %cst_112 = arith.constant dense<0.000000e+00> : vector<24x8xf32>
    %373 = tpu.matmul %371, %372, %cst_112 {dimension_numbers = #tpu.dot_dimension_numbers<[1], [0], [0], [1], [0, 0, 1, 1], [], []>} : vector<24x8xf32>, vector<8x8xf32>, vector<24x8xf32> -> vector<24x8xf32>
    %374 = arith.addf %358, %373 : vector<24x8xf32>
    %375 = vector.extract_strided_slice %234 {offsets = [0, 16], sizes = [8, 8], strides = [1, 1]} : vector<8x32xf32> to vector<8x8xf32>
    %376 = vector.extract_strided_slice %235 {offsets = [0, 16], sizes = [24, 8], strides = [1, 1]} : vector<24x32xf32> to vector<24x8xf32>
    %cst_113 = arith.constant dense<0.000000e+00> : vector<8x24xf32>
    %377 = tpu.matmul %375, %376, %cst_113 {dimension_numbers = #tpu.dot_dimension_numbers<[1], [1], [0], [0], [0, 0, 1, 0], [], []>} : vector<8x8xf32>, vector<24x8xf32>, vector<8x24xf32> -> vector<8x24xf32>
    %cst_114 = arith.constant dense<0xFF800000> : vector<8xf32>
    %378 = vector.multi_reduction <maximumf>, %377, %cst_114 [1] : vector<8x24xf32> to vector<8xf32>
    %379 = vector.shape_cast %378 : vector<8xf32> to vector<8x1xf32>
    %380 = vector.broadcast %379 : vector<8x1xf32> to vector<8x24xf32>
    %381 = arith.subf %377, %380 : vector<8x24xf32>
    %382 = math.exp %381 : vector<8x24xf32>
    %cst_115 = arith.constant dense<0.000000e+00> : vector<8xf32>
    %383 = vector.multi_reduction <add>, %382, %cst_115 [1] : vector<8x24xf32> to vector<8xf32>
    %384 = vector.shape_cast %383 : vector<8xf32> to vector<8x1xf32>
    %385 = tpu.reciprocal %384 {approx = true} : vector<8x1xf32> -> vector<8x1xf32>
    %386 = vector.broadcast %385 : vector<8x1xf32> to vector<8x24xf32>
    %387 = arith.mulf %382, %386 : vector<8x24xf32>
    %388 = vector.extract_strided_slice %236 {offsets = [0, 16], sizes = [24, 8], strides = [1, 1]} : vector<24x32xf32> to vector<24x8xf32>
    %cst_116 = arith.constant dense<0.000000e+00> : vector<8x8xf32>
    %389 = tpu.matmul %387, %388, %cst_116 {dimension_numbers = #tpu.dot_dimension_numbers<[1], [0], [0], [1], [0, 0, 1, 1], [], []>} : vector<8x24xf32>, vector<24x8xf32>, vector<8x8xf32> -> vector<8x8xf32>
    %cst_117 = arith.constant dense<0.000000e+00> : vector<24x32xf32>
    %390 = tpu.matmul %374, %343, %cst_117 {dimension_numbers = #tpu.dot_dimension_numbers<[1], [0], [0], [1], [0, 0, 1, 1], [], []>} : vector<24x8xf32>, vector<8x32xf32>, vector<24x32xf32> -> vector<24x32xf32>
    %391 = arith.addf %340, %390 : vector<24x32xf32>
    %cst_118 = arith.constant dense<0.000000e+00> : vector<8x32xf32>
    %392 = tpu.matmul %389, %343, %cst_118 {dimension_numbers = #tpu.dot_dimension_numbers<[1], [0], [0], [1], [0, 0, 1, 1], [], []>} : vector<8x8xf32>, vector<8x32xf32>, vector<8x32xf32> -> vector<8x32xf32>
    %393 = arith.addf %342, %392 : vector<8x32xf32>
    %394 = vector.extract_strided_slice %2 {offsets = [24, 0], sizes = [8, 32], strides = [1, 1]} : vector<32x32xf32> to vector<8x32xf32>
    %395 = vector.extract_strided_slice %232 {offsets = [0, 24], sizes = [24, 8], strides = [1, 1]} : vector<24x32xf32> to vector<24x8xf32>
    %396 = vector.extract_strided_slice %235 {offsets = [0, 24], sizes = [24, 8], strides = [1, 1]} : vector<24x32xf32> to vector<24x8xf32>
    %cst_119 = arith.constant dense<0.000000e+00> : vector<24x24xf32>
    %397 = tpu.matmul %395, %396, %cst_119 {dimension_numbers = #tpu.dot_dimension_numbers<[1], [1], [0], [0], [0, 0, 1, 0], [], []>} : vector<24x8xf32>, vector<24x8xf32>, vector<24x24xf32> -> vector<24x24xf32>
    %cst_120 = arith.constant dense<0xFF800000> : vector<24xf32>
    %398 = vector.multi_reduction <maximumf>, %397, %cst_120 [1] : vector<24x24xf32> to vector<24xf32>
    %399 = vector.shape_cast %398 : vector<24xf32> to vector<24x1xf32>
    %400 = vector.broadcast %399 : vector<24x1xf32> to vector<24x24xf32>
    %401 = arith.subf %397, %400 : vector<24x24xf32>
    %402 = math.exp %401 : vector<24x24xf32>
    %cst_121 = arith.constant dense<0.000000e+00> : vector<24xf32>
    %403 = vector.multi_reduction <add>, %402, %cst_121 [1] : vector<24x24xf32> to vector<24xf32>
    %404 = vector.shape_cast %403 : vector<24xf32> to vector<24x1xf32>
    %405 = tpu.reciprocal %404 {approx = true} : vector<24x1xf32> -> vector<24x1xf32>
    %406 = vector.broadcast %405 : vector<24x1xf32> to vector<24x24xf32>
    %407 = arith.mulf %402, %406 : vector<24x24xf32>
    %408 = vector.extract_strided_slice %236 {offsets = [0, 24], sizes = [24, 8], strides = [1, 1]} : vector<24x32xf32> to vector<24x8xf32>
    %cst_122 = arith.constant dense<0.000000e+00> : vector<24x8xf32>
    %409 = tpu.matmul %407, %408, %cst_122 {dimension_numbers = #tpu.dot_dimension_numbers<[1], [0], [0], [1], [0, 0, 1, 1], [], []>} : vector<24x24xf32>, vector<24x8xf32>, vector<24x8xf32> -> vector<24x8xf32>
    %410 = vector.extract_strided_slice %233 {offsets = [0, 24], sizes = [24, 8], strides = [1, 1]} : vector<24x32xf32> to vector<24x8xf32>
    %411 = vector.extract_strided_slice %237 {offsets = [0, 24], sizes = [8, 8], strides = [1, 1]} : vector<8x32xf32> to vector<8x8xf32>
    %cst_123 = arith.constant dense<0.000000e+00> : vector<24x8xf32>
    %412 = tpu.matmul %410, %411, %cst_123 {dimension_numbers = #tpu.dot_dimension_numbers<[1], [1], [0], [0], [0, 0, 1, 0], [], []>} : vector<24x8xf32>, vector<8x8xf32>, vector<24x8xf32> -> vector<24x8xf32>
    %cst_124 = arith.constant dense<0xFF800000> : vector<24xf32>
    %413 = vector.multi_reduction <maximumf>, %412, %cst_124 [1] : vector<24x8xf32> to vector<24xf32>
    %414 = vector.shape_cast %413 : vector<24xf32> to vector<24x1xf32>
    %415 = vector.broadcast %414 : vector<24x1xf32> to vector<24x8xf32>
    %416 = arith.subf %412, %415 : vector<24x8xf32>
    %417 = math.exp %416 : vector<24x8xf32>
    %cst_125 = arith.constant dense<0.000000e+00> : vector<24xf32>
    %418 = vector.multi_reduction <add>, %417, %cst_125 [1] : vector<24x8xf32> to vector<24xf32>
    %419 = vector.shape_cast %418 : vector<24xf32> to vector<24x1xf32>
    %420 = tpu.reciprocal %419 {approx = true} : vector<24x1xf32> -> vector<24x1xf32>
    %421 = vector.broadcast %420 : vector<24x1xf32> to vector<24x8xf32>
    %422 = arith.mulf %417, %421 : vector<24x8xf32>
    %423 = vector.extract_strided_slice %238 {offsets = [0, 24], sizes = [8, 8], strides = [1, 1]} : vector<8x32xf32> to vector<8x8xf32>
    %cst_126 = arith.constant dense<0.000000e+00> : vector<24x8xf32>
    %424 = tpu.matmul %422, %423, %cst_126 {dimension_numbers = #tpu.dot_dimension_numbers<[1], [0], [0], [1], [0, 0, 1, 1], [], []>} : vector<24x8xf32>, vector<8x8xf32>, vector<24x8xf32> -> vector<24x8xf32>
    %425 = arith.addf %409, %424 : vector<24x8xf32>
    %426 = vector.extract_strided_slice %234 {offsets = [0, 24], sizes = [8, 8], strides = [1, 1]} : vector<8x32xf32> to vector<8x8xf32>
    %427 = vector.extract_strided_slice %235 {offsets = [0, 24], sizes = [24, 8], strides = [1, 1]} : vector<24x32xf32> to vector<24x8xf32>
    %cst_127 = arith.constant dense<0.000000e+00> : vector<8x24xf32>
    %428 = tpu.matmul %426, %427, %cst_127 {dimension_numbers = #tpu.dot_dimension_numbers<[1], [1], [0], [0], [0, 0, 1, 0], [], []>} : vector<8x8xf32>, vector<24x8xf32>, vector<8x24xf32> -> vector<8x24xf32>
    %cst_128 = arith.constant dense<0xFF800000> : vector<8xf32>
    %429 = vector.multi_reduction <maximumf>, %428, %cst_128 [1] : vector<8x24xf32> to vector<8xf32>
    %430 = vector.shape_cast %429 : vector<8xf32> to vector<8x1xf32>
    %431 = vector.broadcast %430 : vector<8x1xf32> to vector<8x24xf32>
    %432 = arith.subf %428, %431 : vector<8x24xf32>
    %433 = math.exp %432 : vector<8x24xf32>
    %cst_129 = arith.constant dense<0.000000e+00> : vector<8xf32>
    %434 = vector.multi_reduction <add>, %433, %cst_129 [1] : vector<8x24xf32> to vector<8xf32>
    %435 = vector.shape_cast %434 : vector<8xf32> to vector<8x1xf32>
    %436 = tpu.reciprocal %435 {approx = true} : vector<8x1xf32> -> vector<8x1xf32>
    %437 = vector.broadcast %436 : vector<8x1xf32> to vector<8x24xf32>
    %438 = arith.mulf %433, %437 : vector<8x24xf32>
    %439 = vector.extract_strided_slice %236 {offsets = [0, 24], sizes = [24, 8], strides = [1, 1]} : vector<24x32xf32> to vector<24x8xf32>
    %cst_130 = arith.constant dense<0.000000e+00> : vector<8x8xf32>
    %440 = tpu.matmul %438, %439, %cst_130 {dimension_numbers = #tpu.dot_dimension_numbers<[1], [0], [0], [1], [0, 0, 1, 1], [], []>} : vector<8x24xf32>, vector<24x8xf32>, vector<8x8xf32> -> vector<8x8xf32>
    %cst_131 = arith.constant dense<0.000000e+00> : vector<24x32xf32>
    %441 = tpu.matmul %425, %394, %cst_131 {dimension_numbers = #tpu.dot_dimension_numbers<[1], [0], [0], [1], [0, 0, 1, 1], [], []>} : vector<24x8xf32>, vector<8x32xf32>, vector<24x32xf32> -> vector<24x32xf32>
    %442 = arith.addf %391, %441 : vector<24x32xf32>
    %cst_132 = arith.constant dense<0.000000e+00> : vector<8x32xf32>
    %443 = tpu.matmul %440, %394, %cst_132 {dimension_numbers = #tpu.dot_dimension_numbers<[1], [0], [0], [1], [0, 0, 1, 1], [], []>} : vector<8x8xf32>, vector<8x32xf32>, vector<8x32xf32> -> vector<8x32xf32>
    %444 = arith.addf %393, %443 : vector<8x32xf32>
    %c1 = arith.constant 1 : index
    %c0_133 = arith.constant 0 : index
    %c0_134 = arith.constant 0 : index
    %445 = vector.load %arg6[%c1, %c0_133, %c0_134] : memref<2x32x32xf32, #tpu.memory_space<vmem>>, vector<1x8x32xf32>
    %446 = vector.shape_cast %445 : vector<1x8x32xf32> to vector<8x32xf32>
    %447 = vector.shape_cast %444 : vector<8x32xf32> to vector<1x8x32xf32>
    tpu.vector_store %arg6[%c1, %c0_133, %c0_134], %447 {strides = array<i32>} : memref<2x32x32xf32, #tpu.memory_space<vmem>>, vector<1x8x32xf32>,
    %c1_135 = arith.constant 1 : index
    %c8_136 = arith.constant 8 : index
    %c0_137 = arith.constant 0 : index
    %448 = vector.load %arg6[%c1_135, %c8_136, %c0_137] : memref<2x32x32xf32, #tpu.memory_space<vmem>>, vector<1x24x32xf32>
    %449 = vector.shape_cast %448 : vector<1x24x32xf32> to vector<24x32xf32>
    %450 = vector.shape_cast %442 : vector<24x32xf32> to vector<1x24x32xf32>
    tpu.vector_store %arg6[%c1_135, %c8_136, %c0_137], %450 {strides = array<i32>} : memref<2x32x32xf32, #tpu.memory_space<vmem>>, vector<1x24x32xf32>,
    return
  }
  func.func @transform_0(%arg0: i32) -> (i32, i32, i32) {
    %c0_i32 = arith.constant 0 : i32
    %c0_i32_0 = arith.constant 0 : i32
    %c0_i32_1 = arith.constant 0 : i32
    return %arg0, %c0_i32, %c0_i32_0 : i32, i32, i32
  }
  func.func @transform_1(%arg0: i32) -> (i32, i32, i32) {
    %c0_i32 = arith.constant 0 : i32
    %c0_i32_0 = arith.constant 0 : i32
    %c0_i32_1 = arith.constant 0 : i32
    return %arg0, %c0_i32, %c0_i32_0 : i32, i32, i32
  }
  func.func @transform_2(%arg0: i32) -> (i32, i32) {
    %c0_i32 = arith.constant 0 : i32
    %c0_i32_0 = arith.constant 0 : i32
    %c0_i32_1 = arith.constant 0 : i32
    return %c0_i32, %c0_i32_0 : i32, i32
  }
  func.func @transform_3(%arg0: i32) -> (i32, i32) {
    %c0_i32 = arith.constant 0 : i32
    %c0_i32_0 = arith.constant 0 : i32
    %c0_i32_1 = arith.constant 0 : i32
    return %c0_i32, %c0_i32_0 : i32, i32
  }
  func.func @transform_4(%arg0: i32) -> (i32, i32) {
    %c0_i32 = arith.constant 0 : i32
    %c0_i32_0 = arith.constant 0 : i32
    %c0_i32_1 = arith.constant 0 : i32
    return %c0_i32, %c0_i32_0 : i32, i32
  }
  func.func @transform_5(%arg0: i32) -> (i32, i32, i32) {
    %c0_i32 = arith.constant 0 : i32
    %c0_i32_0 = arith.constant 0 : i32
    %c0_i32_1 = arith.constant 0 : i32
    return %arg0, %c0_i32, %c0_i32_0 : i32, i32, i32
  }
}

</mosaic_0001>

<bundles_post_ra>
// kernel: tpu_custom_call.1
= control target key start
LH: loop header
LB: loop body
LE: loop exit
PB: predicated region body
PF: predicated region fallthrough
CT: control target
= control target key end

     0   :  { %vm37_vm0 = vcmask 130048   ;;  %s9435_s0 = inlined_call_operand.vmem [shape: f32[2,32,16], index: 0, kind: input, shape index: {}]   ;;  %s9436_s1 = inlined_call_operand.vmem [shape: f32[2,32,16], index: 1, kind: input, shape index: {}]   ;;  %s9437_s2 = inlined_call_operand.vmem [shape: f32[16,96], index: 2, kind: input, shape index: {}]   ;;  %s9438_s3 = inlined_call_operand.vmem [shape: f32[16,128], index: 3, kind: input, shape index: {}]   ;;  %s9439_s4 = inlined_call_operand.vmem [shape: f32[32,32], index: 4, kind: input, shape index: {}]   ;;  %s9440_s5 = inlined_call_operand.hbm [shape: f32[2,32,32], index: 5, kind: output, shape index: {}]  }
   0x1   :  { %v22_v0 = vld [vmem:[%s9437_s2 + $0x8] sm:$0xff]  ;;  %v21_v1 = vld [vmem:[%s9437_s2] sm:$0xff]  ;;  %v35_v2 = vld [vmem:[%s9435_s0 + $0x30] sm:$0xff] }
   0x2   :  { %7776 = vmatprep.subr.mxu1 %v22_v0  ;;  %7069 = vmatprep.mubr.msk.f32.mxu1 %vm37_vm0, %v35_v2  ;;  %v36_v3 = vld [vmem:[%s9435_s0 + $0x38] sm:$0xff]  ;;  %v24_v4 = vld [vmem:[%s9438_s3 + $0x8] sm:$0xff]  ;;  %v167_v5 = vld [vmem:[%s9436_s1] sm:$0xff] }
   0x3   :  { %7778 = vmatpush3.msra.mxu1 %v22_v0  ;;  %7056 = vmatprep.subr.mxu0 %v22_v0  ;;  %v23_v6 = vld [vmem:[%s9438_s3] sm:$0xff] }
   0x4   :  { %7777 = vmatprep.subr.mxu1 %v21_v1  ;;  %7057 = vmatpush3.msra.mxu0 %v22_v0 }
   0x5   :  { %7779 = vmatpush3.msra.mxu1 %v21_v1  ;;  %7058 = vmatprep.subr.mxu0 %v21_v1 }
   0x6   :  { %10 = vsyncpa [#allocation3], 0  ;;  %7070 = vmatmul.mubr.msk.f32.vlgmr.msra.gmra.mxu1 %vm37_vm0, %v36_v3  ;;  %7072 = vmatprep.subr.mxu1 %v24_v4  ;;  %v29_v7 = vld [vmem:[%s9435_s0] sm:$0xff]  ;;  %v168_v8 = vld [vmem:[%s9436_s1 + $0x8] sm:$0xff]  ;;  %v8049_v14 = vmov 0.0   ;;  %vm8050_vm1 = vmmov 0  }
   0x7   :  { %7073 = vmatpush3.msra.mxu1 %v24_v4  ;;  %7076 = vmatprep.mubr.msk.f32.mxu1 %vm37_vm0, %v167_v5  ;;  %v30_v9 = vld [vmem:[%s9435_s0 + $0x8] sm:$0xff]  ;;  %v169_v10 = vld [vmem:[%s9436_s1 + $0x10] sm:$0xff]  ;;  %v170_v12 = vld [vmem:[%s9436_s1 + $0x18] sm:$0xff]  ;;  %vm304_vm2 = vcmask 64512   ;;  %s8051_s29 = smov 64   ;;  %s8053_s30 = smov 32  }
   0x8   :  { %7074 = vmatprep.subr.mxu1 %v23_v6  ;;  %7059 = vmatpush3.msra.mxu0 %v21_v1  ;;  %v31_v11 = vld [vmem:[%s9435_s0 + $0x10] sm:$0xff]  ;;  %v32_v13 = vld [vmem:[%s9435_s0 + $0x18] sm:$0xff]  ;;  %v33_v15 = vld [vmem:[%s9435_s0 + $0x20] sm:$0xff]  ;;  %vm403_vm3 = vcmask 195584   ;;  %s8054_s6 = smov 56   ;;  %s8055_s7 = smov 88  }
   0x9   :  { %7075 = vmatpush3.msra.mxu1 %v23_v6  ;;  %7060 = vmatprep.mubr.msk.f32.mxu0 %vm37_vm0, %v29_v7  ;;  %v34_v16 = vld [vmem:[%s9435_s0 + $0x28] sm:$0xff]  ;;  %v171_v17 = vld [vmem:[%s9436_s1 + $0x20] sm:$0xff]  ;;  %v173_v19 = vld [vmem:[%s9436_s1 + $0x30] sm:$0xff]  ;;  %s8056_s8 = smov 120   ;;  %s8057_s9 = smov 24   ;;  %vm3414_vm4 = vcmask 261120  }
   0xa   :  { %7077 = vmatmul.mubr.msk.f32.vlgmr.msra.gmra.mxu1 %vm37_vm0, %v168_v8  ;;  %7061 = vmatmul.mubr.msk.f32.vlgmr.msra.gmra.mxu0 %vm37_vm0, %v30_v9  ;;  %v172_v18 = vld [vmem:[%s9436_s1 + $0x28] sm:$0xff]  ;;  %v174_v20 = vld [vmem:[%s9436_s1 + $0x38] sm:$0xff]  ;;  %s8052_s1 = smov 96   ;;  %s8058_s10 = smov 80  }
   0xb   :  { %7079 = vmatprep.mubr.msk.f32.mxu1 %vm37_vm0, %v169_v10  ;;  %7063 = vmatprep.mubr.msk.f32.mxu0 %vm37_vm0, %v31_v11  ;;  %s8059_s11 = smov 48   ;;  %s8060_s13 = smov 112  }
   0xc   :  { %7088 = vmatprep.subr.mxu0 %v8049_v14  ;;  %7103 = vmatprep.subr.mxu1 %v8049_v14  ;;  %s8061_s14 = smov 16   ;;  %s8062_s17 = smov 40  }
   0xd   :  { %s8063_s18 = smov 72   ;;  %s8064_s21 = smov 104  }
   0xe   :  { %7080 = vmatmul.mubr.msk.f32.gmra.mxu1 %vm37_vm0, %v170_v12  ;;  %7064 = vmatmul.mubr.msk.f32.gmra.mxu0 %vm37_vm0, %v32_v13  ;;  %s8065_s22 = smov 8  }
   0xf   :  { %7066 = vmatprep.mubr.msk.f32.mxu0 %vm37_vm0, %v33_v15  ;;  %7082 = vmatprep.mubr.msk.f32.mxu1 %vm37_vm0, %v171_v17 }
  0x12   :  { %7067 = vmatmul.mubr.msk.f32.gmra.mxu0 %vm37_vm0, %v34_v16  ;;  %7083 = vmatmul.mubr.msk.f32.gmra.mxu1 %vm37_vm0, %v172_v18 }
  0x13   :  { %7094 = vmatprep.mubr.msk.f32.mxu0 %vm8050_vm1, %v8049_v14  ;;  %7085 = vmatprep.mubr.msk.f32.mxu1 %vm37_vm0, %v173_v19 }
  0x16   :  { %7086 = vmatmul.mubr.msk.f32.gmra.mxu1 %vm37_vm0, %v174_v20 }
  0x17   :  { %7105 = vmatprep.mubr.msk.f32.mxu1 %vm8050_vm1, %v8049_v14 }
  0xc6   :  { %v8180_v21 = vpop.f32.mrf.mxu1 }
  0xc8   :  { %v8182_v22 = vpop.f32.mrf.mxu1 }
  0xca   :  { %v8184_v23 = vpop.f32.mrf.mxu1  ;;  %v8186_v24 = vpop.f32.mrf.mxu0 }
  0xcc   :  { %v8188_v25 = vpop.f32.mrf.mxu1  ;;  %v8190_v26 = vpop.f32.mrf.mxu0 }
  0xcd   :  { %444 = vrot.lane.b32.xlu0 %v8188_v25, %s8051_s29 }
  0xce   :  { %v8194_v27 = vpop.f32.mrf.mxu1  ;;  %v8196_v28 = vpop.f32.mrf.mxu0 }
  0xcf   :  { %7089 = vmatpush3.xpose.msk.msra.mxu0 %vm304_vm2, %v8194_v27 }
  0xd0   :  { %v8200_v29 = vpop.f32.mrf.mxu1  ;;  %7090 = vmatprep.subr.mxu0 %v8049_v14  ;;  %v8203_v30 = vpop.f32.mrf.mxu0 }
  0xd1   :  { %437 = vrot.lane.b32.xlu0 %v8186_v24, %s8052_s1  ;;  %439 = vrot.lane.b32.xlu1 %v8203_v30, %s8052_s1 }
  0xd2   :  { %v8240_v35 = vpop.f32.mrf.mxu0  ;;  %v8250_v43 = vpop.f32.mrf.mxu1 }
  0xd3   :  { %7091 = vmatpush3.xpose.msk.msra.mxu0 %vm304_vm2, %v8200_v29 }
  0xd4   :  { %7092 = vmatprep.subr.mxu0 %v8049_v14  ;;  %v8242_v36 = vpop.f32.mrf.mxu0  ;;  %v8252_v44 = vpop.f32.mrf.mxu1 }
  0xd5   :  { %441 = vrot.lane.b32.xlu1 %v8196_v28, %s8052_s1 }
  0xd6   :  { %v8254_v45 = vpop.f32.mrf.mxu1 }
  0xd7   :  { %7093 = vmatpush3.xpose.msk.msra.mxu0 %vm304_vm2, %v8184_v23 }
  0xd8   :  { %7114 = vmatprep.subr.mxu0 %v8049_v14  ;;  %v8256_v46 = vpop.f32.mrf.mxu1 }
  0xda   :  { %7095 = vmatmul.mubr.msk.f32.vlgmr.msra.gmra.mxu0 %vm304_vm2, %v8186_v24 }
  0xdb   :  { %7097 = vmatprep.mubr.msk.f32.mxu0 %vm8050_vm1, %v8049_v14 }
  0xde   :  { %7098 = vmatmul.mubr.msk.f32.gmra.mxu0 %vm304_vm2, %v8203_v30 }
  0xdf   :  { %7100 = vmatprep.mubr.msk.f32.mxu0 %vm8050_vm1, %v8049_v14 }
  0xe2   :  { %7101 = vmatmul.mubr.msk.f32.gmra.mxu0 %vm304_vm2, %v8196_v28 }
  0xe3   :  { %7116 = vmatprep.mubr.msk.f32.mxu0 %vm8050_vm1, %v8049_v14 }
 0x13f   :  { %v445_v31 = vpop.permute.xlu0 %444 }
 0x140   :  { %7104 = vmatpush3.xpose.msk.msra.mxu1 %vm304_vm2, %v445_v31 }
 0x141   :  { %7125 = vmatprep.subr.mxu1 %v8049_v14 }
 0x143   :  { %v438_v32 = vpop.permute.xlu0 %437  ;;  %v440_v33 = vpop.permute.xlu1 %439 }
 0x144   :  { %7106 = vmatmul.mubr.msk.f32.vlgmr.msra.gmra.mxu1 %vm304_vm2, %v438_v32 }
 0x145   :  { %7108 = vmatprep.mubr.msk.f32.mxu1 %vm8050_vm1, %v8049_v14 }
 0x147   :  { %v442_v34 = vpop.permute.xlu1 %441 }
 0x148   :  { %7109 = vmatmul.mubr.msk.f32.gmra.mxu1 %vm304_vm2, %v440_v33 }
 0x149   :  { %7111 = vmatprep.mubr.msk.f32.mxu1 %vm8050_vm1, %v8049_v14 }
 0x14c   :  { %7112 = vmatmul.mubr.msk.f32.gmra.mxu1 %vm304_vm2, %v442_v34 }
 0x14d   :  { %7131 = vmatprep.mubr.msk.f32.mxu1 %vm8050_vm1, %v8049_v14 }
 0x19a   :  { %v8244_v37 = vpop.f32.mrf.mxu0 }
 0x19b   :  { %v404_v7 = vsel %vm403_vm3, %v8244_v37, -inf }
 0x19c   :  { %v7096_v38 = vpop.f32.mrf.mxu0 }
 0x19e   :  { %v8246_v39 = vpop.f32.mrf.mxu0 }
 0x19f   :  { %v407_v8 = vsel %vm403_vm3, %v8246_v39, -inf }
 0x1a0   :  { %v7099_v40 = vpop.f32.mrf.mxu0 }
 0x1a2   :  { %v8248_v41 = vpop.f32.mrf.mxu0 }
 0x1a3   :  { %v410_v9 = vsel %vm403_vm3, %v8248_v41, -inf }
 0x1a4   :  { %v7102_v42 = vpop.f32.mrf.mxu0 }
 0x204   :  { %v520_v47 = vpop.f32.mrf.mxu1 }
 0x205   :  { %v534_v48 = vsel %vm304_vm2, %v520_v47, -inf }
 0x206   :  { %535 = vmax.xlane.f32.xlu0 %v534_v48  ;;  %v7107_v49 = vpop.f32.mrf.mxu1 }
 0x208   :  { %v525_v50 = vpop.f32.mrf.mxu1 }
 0x209   :  { %v537_v51 = vsel %vm304_vm2, %v525_v50, -inf }
 0x20a   :  { %538 = vmax.xlane.f32.xlu1 %v537_v51  ;;  %v7110_v52 = vpop.f32.mrf.mxu1 }
 0x20c   :  { %v530_v53 = vpop.f32.mrf.mxu1 }
 0x20d   :  { %v540_v54 = vsel %vm304_vm2, %v530_v53, -inf }
 0x20e   :  { %541 = vmax.xlane.f32.xlu0 %v540_v54  ;;  %v7113_v55 = vpop.f32.mrf.mxu1 }
 0x28f   :  { %v536_v56 = vpop.xlane.xlu0 %535 }
 0x290   :  { %v543_v57 = vsub.f32 %v520_v47, %v536_v56 }
 0x292   :  { %v546_v58 = vmul.f32 1.442695, %v543_v57 }
 0x293   :  { %v539_v59 = vpop.xlane.xlu1 %538 }
 0x294   :  { %7799 = vpow2.f32 %v546_v58  ;;  %v544_v60 = vsub.f32 %v525_v50, %v539_v59 }
 0x296   :  { %v548_v61 = vmul.f32 1.442695, %v544_v60 }
 0x297   :  { %v542_v62 = vpop.xlane.xlu0 %541 }
 0x298   :  { %7801 = vpow2.f32 %v548_v61  ;;  %v545_v63 = vsub.f32 %v530_v53, %v542_v62 }
 0x29a   :  { %v550_v0 = vmul.f32 1.442695, %v545_v63 }
 0x29c   :  { %7803 = vpow2.f32 %v550_v0 }
 0x2a1   :  { %v7800_v1 = vpop.eup %7799 }
 0x2a2   :  { %v552_v2 = vsel %vm304_vm2, %v7800_v1, 0.0 }
 0x2a3   :  { %553 = vadd.xlane.f32.xlu0 %v552_v2 }
 0x2a5   :  { %v7802_v3 = vpop.eup %7801 }
 0x2a6   :  { %v555_v4 = vsel %vm304_vm2, %v7802_v3, 0.0 }
 0x2a7   :  { %556 = vadd.xlane.f32.xlu1 %v555_v4 }
 0x2a9   :  { %v7804_v5 = vpop.eup %7803 }
 0x2aa   :  { %v558_v6 = vsel %vm304_vm2, %v7804_v5, 0.0 }
 0x2ab   :  { %559 = vadd.xlane.f32.xlu0 %v558_v6 }
 0x2b8   :  { %567 = vrot.lane.b32.xlu1 %v8188_v25, %s8053_s30 }
 0x2c1   :  { %758 = vrot.lane.b32.xlu0 %v8190_v26, %s8051_s29 }
 0x2dc   :  { %405 = vmax.xlane.f32.xlu1 %v404_v7 }
 0x2e0   :  { %408 = vmax.xlane.f32.xlu0 %v407_v8  ;;  %411 = vmax.xlane.f32.xlu1 %v410_v9 }
 0x32c   :  { %v554_v10 = vpop.xlane.xlu0 %553 }
 0x32d   :  { %7805 = vrcp.f32 %v554_v10 }
 0x330   :  { %v557_v11 = vpop.xlane.xlu1 %556 }
 0x331   :  { %7807 = vrcp.f32 %v557_v11 }
 0x334   :  { %v560_v12 = vpop.xlane.xlu0 %559  ;;  %v568_v13 = vpop.permute.xlu1 %567 }
 0x335   :  { %7809 = vrcp.f32 %v560_v12  ;;  %7115 = vmatpush3.msra.mxu0 %v568_v13 }
 0x336   :  { %7140 = vmatprep.subr.mxu0 %v8049_v14 }
 0x338   :  { %v759_v31 = vpop.permute.xlu0 %758 }
 0x33a   :  { %v7806_v15 = vpop.eup %7805 }
 0x33b   :  { %v564_v16 = vmul.f32 %v7806_v15, %v7800_v1 }
 0x33d   :  { %7117 = vmatmul.mubr.msk.f32.vlgmr.msra.gmra.mxu0 %vm304_vm2, %v564_v16 }
 0x33e   :  { %v7808_v17 = vpop.eup %7807  ;;  %7141 = vmatpush3.xpose.msk.msra.mxu0 %vm304_vm2, %v8194_v27  ;;  %7119 = vmatprep.mubr.msk.f32.mxu0 %vm8050_vm1, %v8049_v14 }
 0x33f   :  { %7142 = vmatprep.subr.mxu0 %v8049_v14  ;;  %v565_v18 = vmul.f32 %v7808_v17, %v7802_v3 }
 0x341   :  { %7120 = vmatmul.mubr.msk.f32.gmra.mxu0 %vm304_vm2, %v565_v18 }
 0x342   :  { %v7810_v19 = vpop.eup %7809  ;;  %7143 = vmatpush3.xpose.msk.msra.mxu0 %vm304_vm2, %v8200_v29  ;;  %7122 = vmatprep.mubr.msk.f32.mxu0 %vm8050_vm1, %v8049_v14 }
 0x343   :  { %7144 = vmatprep.subr.mxu0 %v8049_v14  ;;  %v566_v20 = vmul.f32 %v7810_v19, %v7804_v5 }
 0x345   :  { %7123 = vmatmul.mubr.msk.f32.gmra.mxu0 %vm304_vm2, %v566_v20 }
 0x346   :  { %7145 = vmatpush3.xpose.msk.msra.mxu0 %vm304_vm2, %v8184_v23  ;;  %7146 = vmatprep.mubr.msk.f32.mxu0 %vm8050_vm1, %v8049_v14 }
 0x347   :  { %7158 = vmatprep.subr.mxu0 %v8049_v14 }
 0x349   :  { %7147 = vmatmul.mubr.msk.f32.vlgmr.msra.gmra.mxu0 %vm304_vm2, %v759_v31 }
 0x34a   :  { %7164 = vmatprep.mubr.msk.f32.mxu0 %vm8050_vm1, %v8049_v14 }
 0x365   :  { %v406_v32 = vpop.xlane.xlu1 %405 }
 0x366   :  { %v413_v33 = vsub.f32 %v8244_v37, %v406_v32 }
 0x368   :  { %v416_v34 = vmul.f32 1.442695, %v413_v33 }
 0x369   :  { %v412_v38 = vpop.xlane.xlu1 %411  ;;  %v409_v37 = vpop.xlane.xlu0 %408 }
 0x36a   :  { %7811 = vpow2.f32 %v416_v34  ;;  %v415_v40 = vsub.f32 %v8248_v41, %v412_v38  ;;  %v414_v41 = vsub.f32 %v8246_v39, %v409_v37 }
 0x36c   :  { %v420_v42 = vmul.f32 1.442695, %v415_v40  ;;  %v418_v51 = vmul.f32 1.442695, %v414_v41 }
 0x36e   :  { %7813 = vpow2.f32 %v420_v42 }
 0x36f   :  { %7815 = vpow2.f32 %v418_v51 }
 0x377   :  { %v7812_v47 = vpop.eup %7811 }
 0x378   :  { %v422_v48 = vsel %vm403_vm3, %v7812_v47, 0.0 }
 0x379   :  { %423 = vadd.xlane.f32.xlu1 %v422_v48 }
 0x37b   :  { %v8299_v49 = vpop.eup %7813 }
 0x37c   :  { %v428_v50 = vsel %vm403_vm3, %v8299_v49, 0.0  ;;  %v7816_v62 = vpop.eup %7815 }
 0x37d   :  { %429 = vadd.xlane.f32.xlu1 %v428_v50  ;;  %v425_v0 = vsel %vm403_vm3, %v7816_v62, 0.0 }
 0x38e   :  { %663 = vrot.lane.b32.xlu1 %v8194_v27, %s8052_s1 }
 0x392   :  { %659 = vrot.lane.b32.xlu1 %v8184_v23, %s8052_s1 }
 0x396   :  { %1059 = vrot.lane.b32.xlu1 %v8188_v25, %s8054_s6 }
 0x39a   :  { %1055 = vrot.lane.b32.xlu1 %v8203_v30, %s8055_s7 }
 0x3fd   :  { %v8312_v52 = vpop.f32.mrf.mxu0 }
 0x3ff   :  { %v7118_v53 = vpop.f32.mrf.mxu0 }
 0x401   :  { %v8314_v54 = vpop.f32.mrf.mxu0 }
 0x402   :  { %v424_v55 = vpop.xlane.xlu1 %423 }
 0x403   :  { %v7121_v56 = vpop.f32.mrf.mxu0 }
 0x405   :  { %v8316_v57 = vpop.f32.mrf.mxu0 }
 0x406   :  { %v430_v58 = vpop.xlane.xlu1 %429 }
 0x407   :  { %v7124_v59 = vpop.f32.mrf.mxu0 }
 0x409   :  { %v828_v60 = vpop.f32.mrf.mxu0 }
 0x40a   :  { %v832_v61 = vsel %vm403_vm3, %v828_v60, -inf  ;;  %v664_v63 = vpop.permute.xlu1 %663 }
 0x40b   :  { %833 = vmax.xlane.f32.xlu0 %v832_v61  ;;  %v7148_v39 = vpop.f32.mrf.mxu0  ;;  %7126 = vmatpush3.msra.mxu1 %v664_v63 }
 0x40c   :  { %7127 = vmatprep.subr.mxu1 %v8049_v14 }
 0x40e   :  { %v660_v11 = vpop.permute.xlu1 %659 }
 0x40f   :  { %426 = vadd.xlane.f32.xlu0 %v425_v0 }
 0x412   :  { %v1060_v19 = vpop.permute.xlu1 %1059 }
 0x416   :  { %v1056_v31 = vpop.permute.xlu1 %1055 }
 0x494   :  { %v834_v1 = vpop.xlane.xlu0 %833 }
 0x495   :  { %v835_v2 = vsub.f32 %v828_v60, %v834_v1 }
 0x497   :  { %v836_v3 = vmul.f32 1.442695, %v835_v2 }
 0x498   :  { %v427_v6 = vpop.xlane.xlu0 %426 }
 0x499   :  { %7817 = vpow2.f32 %v836_v3 }
 0x49a   :  { %7819 = vrcp.f32 %v424_v55 }
 0x49b   :  { %7821 = vrcp.f32 %v427_v6 }
 0x49c   :  { %7823 = vrcp.f32 %v430_v58 }
 0x4a6   :  { %v7818_v4 = vpop.eup %7817 }
 0x4a7   :  { %v838_v5 = vsel %vm403_vm3, %v7818_v4, 0.0  ;;  %v7820_v8 = vpop.eup %7819 }
 0x4a8   :  { %839 = vadd.xlane.f32.xlu0 %v838_v5  ;;  %v434_v10 = vmul.f32 %v7820_v8, %v7812_v47  ;;  %v7822_v12 = vpop.eup %7821 }
 0x4a9   :  { %v435_v13 = vmul.f32 %v7822_v12, %v7816_v62  ;;  %v7824_v15 = vpop.eup %7823 }
 0x4aa   :  { %v436_v16 = vmul.f32 %v7824_v15, %v8299_v49 }
 0x4be   :  { %661 = vrot.lane.b32.xlu0 %v8200_v29, %s8052_s1 }
 0x4c2   :  { %1053 = vrot.lane.b32.xlu0 %v8186_v24, %s8055_s7 }
 0x4c6   :  { %1057 = vrot.lane.b32.xlu0 %v8196_v28, %s8055_s7 }
 0x531   :  { %v840_v7 = vpop.xlane.xlu0 %839 }
 0x532   :  { %7825 = vrcp.f32 %v840_v7 }
 0x535   :  { %v662_v9 = vpop.permute.xlu0 %661 }
 0x536   :  { %7128 = vmatpush3.msra.mxu1 %v662_v9 }
 0x537   :  { %7129 = vmatprep.subr.mxu1 %v8049_v14 }
 0x538   :  { %7130 = vmatpush3.msra.mxu1 %v660_v11 }
 0x539   :  { %7132 = vmatmul.mubr.msk.f32.vlgmr.msra.gmra.mxu1 %vm403_vm3, %v434_v10  ;;  %7149 = vmatprep.subr.mxu1 %v8049_v14  ;;  %v1054_v20 = vpop.permute.xlu0 %1053 }
 0x53a   :  { %7150 = vmatpush3.msra.mxu1 %v664_v63  ;;  %7134 = vmatprep.mubr.msk.f32.mxu1 %vm8050_vm1, %v8049_v14 }
 0x53b   :  { %7151 = vmatprep.subr.mxu1 %v8049_v14 }
 0x53c   :  { %7152 = vmatpush3.msra.mxu1 %v662_v9 }
 0x53d   :  { %7135 = vmatmul.mubr.msk.f32.gmra.mxu1 %vm403_vm3, %v435_v13  ;;  %7153 = vmatprep.subr.mxu1 %v8049_v14  ;;  %v1058_v32 = vpop.permute.xlu0 %1057 }
 0x53e   :  { %7154 = vmatpush3.msra.mxu1 %v660_v11  ;;  %7137 = vmatprep.mubr.msk.f32.mxu1 %vm8050_vm1, %v8049_v14 }
 0x53f   :  { %7173 = vmatprep.subr.mxu1 %v8049_v14  ;;  %v7826_v17 = vpop.eup %7825 }
 0x540   :  { %v842_v18 = vmul.f32 %v7826_v17, %v7818_v4 }
 0x541   :  { %7138 = vmatmul.mubr.msk.f32.gmra.mxu1 %vm403_vm3, %v436_v16 }
 0x542   :  { %7155 = vmatprep.mubr.msk.f32.mxu1 %vm8050_vm1, %v8049_v14 }
 0x545   :  { %7156 = vmatmul.mubr.msk.f32.vlgmr.msra.gmra.mxu1 %vm403_vm3, %v842_v18 }
 0x546   :  { %7174 = vmatpush3.xpose.msk.msra.mxu1 %vm304_vm2, %v1060_v19  ;;  %7175 = vmatprep.mubr.msk.f32.mxu1 %vm8050_vm1, %v8049_v14 }
 0x547   :  { %7184 = vmatprep.subr.mxu1 %v8049_v14 }
 0x549   :  { %7176 = vmatmul.mubr.msk.f32.vlgmr.msra.gmra.mxu1 %vm304_vm2, %v1054_v20 }
 0x54a   :  { %7178 = vmatprep.mubr.msk.f32.mxu1 %vm8050_vm1, %v8049_v14 }
 0x54d   :  { %7179 = vmatmul.mubr.msk.f32.gmra.mxu1 %vm304_vm2, %v1056_v31 }
 0x54e   :  { %7181 = vmatprep.mubr.msk.f32.mxu1 %vm8050_vm1, %v8049_v14 }
 0x551   :  { %7182 = vmatmul.mubr.msk.f32.gmra.mxu1 %vm304_vm2, %v1058_v32 }
 0x552   :  { %7186 = vmatprep.mubr.msk.f32.mxu1 %vm8050_vm1, %v8049_v14 }
 0x5f9   :  { %v8357_v33 = vpop.f32.mrf.mxu1 }
 0x5fb   :  { %v7133_v34 = vpop.f32.mrf.mxu1 }
 0x5fd   :  { %v8359_v38 = vpop.f32.mrf.mxu1 }
 0x5ff   :  { %v7136_v40 = vpop.f32.mrf.mxu1 }
 0x601   :  { %v8361_v42 = vpop.f32.mrf.mxu1 }
 0x603   :  { %v7139_v47 = vpop.f32.mrf.mxu1 }
 0x605   :  { %v8363_v48 = vpop.f32.mrf.mxu1 }
 0x607   :  { %v7157_v49 = vpop.f32.mrf.mxu1 }
 0x609   :  { %v1135_v50 = vpop.f32.mrf.mxu1 }
 0x60a   :  { %v1149_v37 = vsel %vm304_vm2, %v1135_v50, -inf }
 0x60b   :  { %1150 = vmax.xlane.f32.xlu1 %v1149_v37  ;;  %v7177_v41 = vpop.f32.mrf.mxu1 }
 0x60d   :  { %v1140_v51 = vpop.f32.mrf.mxu1 }
 0x60e   :  { %v1152_v53 = vsel %vm304_vm2, %v1140_v51, -inf }
 0x60f   :  { %1153 = vmax.xlane.f32.xlu0 %v1152_v53  ;;  %v7180_v55 = vpop.f32.mrf.mxu1 }
 0x611   :  { %v1145_v56 = vpop.f32.mrf.mxu1 }
 0x612   :  { %v1155_v58 = vsel %vm304_vm2, %v1145_v56, -inf }
 0x613   :  { %1156 = vmax.xlane.f32.xlu0 %v1155_v58  ;;  %v7183_v59 = vpop.f32.mrf.mxu1 }
 0x694   :  { %v1151_v60 = vpop.xlane.xlu1 %1150 }
 0x695   :  { %v1158_v61 = vsub.f32 %v1135_v50, %v1151_v60 }
 0x697   :  { %v1161_v62 = vmul.f32 1.442695, %v1158_v61 }
 0x698   :  { %v1154_v63 = vpop.xlane.xlu0 %1153 }
 0x699   :  { %7827 = vpow2.f32 %v1161_v62  ;;  %v1159_v39 = vsub.f32 %v1140_v51, %v1154_v63 }
 0x69b   :  { %v1163_v0 = vmul.f32 1.442695, %v1159_v39 }
 0x69c   :  { %v1157_v5 = vpop.xlane.xlu0 %1156 }
 0x69d   :  { %7829 = vpow2.f32 %v1163_v0  ;;  %v1160_v6 = vsub.f32 %v1145_v56, %v1157_v5 }
 0x69f   :  { %v1165_v7 = vmul.f32 1.442695, %v1160_v6 }
 0x6a1   :  { %7831 = vpow2.f32 %v1165_v7 }
 0x6a6   :  { %v7828_v1 = vpop.eup %7827 }
 0x6a7   :  { %v1167_v2 = vsel %vm304_vm2, %v7828_v1, 0.0 }
 0x6a8   :  { %1168 = vadd.xlane.f32.xlu1 %v1167_v2 }
 0x6aa   :  { %v7830_v3 = vpop.eup %7829 }
 0x6ab   :  { %v1170_v4 = vsel %vm304_vm2, %v7830_v3, 0.0 }
 0x6ac   :  { %1171 = vadd.xlane.f32.xlu0 %v1170_v4 }
 0x6ae   :  { %v7832_v8 = vpop.eup %7831 }
 0x6af   :  { %v1173_v9 = vsel %vm304_vm2, %v7832_v8, 0.0 }
 0x6b9   :  { %926 = vrot.lane.b32.xlu1 %v8194_v27, %s8056_s8 }
 0x6bd   :  { %924 = vrot.lane.b32.xlu1 %v8200_v29, %s8056_s8 }
 0x6c2   :  { %1182 = vrot.lane.b32.xlu0 %v8188_v25, %s8057_s9 }
 0x6c6   :  { %922 = vrot.lane.b32.xlu0 %v8184_v23, %s8056_s8 }
 0x6ca   :  { %916 = vrot.lane.b32.xlu0 %v8186_v24, %s8056_s8 }
 0x6ce   :  { %920 = vrot.lane.b32.xlu0 %v8196_v28, %s8056_s8 }
 0x6e1   :  { %1174 = vadd.xlane.f32.xlu1 %v1173_v9 }
 0x6f2   :  { %1372 = vrot.lane.b32.xlu1 %v8190_v26, %s8054_s6 }
 0x6f6   :  { %918 = vrot.lane.b32.xlu1 %v8203_v30, %s8056_s8 }
 0x731   :  { %v1169_v10 = vpop.xlane.xlu1 %1168 }
 0x732   :  { %7833 = vrcp.f32 %v1169_v10 }
 0x735   :  { %v927_v11 = vpop.permute.xlu1 %926  ;;  %v1172_v12 = vpop.xlane.xlu0 %1171 }
 0x736   :  { %7835 = vrcp.f32 %v1172_v12  ;;  %7159 = vmatpush3.xpose.msk.msra.mxu0 %vm304_vm2, %v927_v11 }
 0x737   :  { %7160 = vmatprep.subr.mxu0 %v8049_v14 }
 0x739   :  { %v925_v13 = vpop.permute.xlu1 %924  ;;  %v1183_v15 = vpop.permute.xlu0 %1182 }
 0x73a   :  { %7161 = vmatpush3.xpose.msk.msra.mxu0 %vm304_vm2, %v925_v13  ;;  %7185 = vmatpush3.msra.mxu1 %v1183_v15 }
 0x73b   :  { %7162 = vmatprep.subr.mxu0 %v8049_v14  ;;  %7210 = vmatprep.subr.mxu1 %v8049_v14 }
 0x73d   :  { %v923_v16 = vpop.permute.xlu0 %922 }
 0x73e   :  { %7163 = vmatpush3.xpose.msk.msra.mxu0 %vm304_vm2, %v923_v16 }
 0x73f   :  { %v7834_v17 = vpop.eup %7833  ;;  %7195 = vmatprep.subr.mxu0 %v8049_v14 }
 0x740   :  { %v1179_v18 = vmul.f32 %v7834_v17, %v7828_v1 }
 0x741   :  { %v917_v19 = vpop.permute.xlu0 %916 }
 0x742   :  { %7165 = vmatmul.mubr.msk.f32.vlgmr.msra.gmra.mxu0 %vm304_vm2, %v917_v19  ;;  %7187 = vmatmul.mubr.msk.f32.vlgmr.msra.gmra.mxu1 %vm304_vm2, %v1179_v18 }
 0x743   :  { %v7836_v20 = vpop.eup %7835  ;;  %7211 = vmatpush3.xpose.msk.msra.mxu1 %vm304_vm2, %v927_v11  ;;  %7189 = vmatprep.mubr.msk.f32.mxu1 %vm8050_vm1, %v8049_v14 }
 0x744   :  { %7212 = vmatprep.subr.mxu1 %v8049_v14  ;;  %v1180_v31 = vmul.f32 %v7836_v20, %v7830_v3  ;;  %7167 = vmatprep.mubr.msk.f32.mxu0 %vm8050_vm1, %v8049_v14 }
 0x745   :  { %v921_v47 = vpop.permute.xlu0 %920 }
 0x746   :  { %7190 = vmatmul.mubr.msk.f32.gmra.mxu1 %vm304_vm2, %v1180_v31 }
 0x747   :  { %7213 = vmatpush3.xpose.msk.msra.mxu1 %vm304_vm2, %v925_v13  ;;  %7192 = vmatprep.mubr.msk.f32.mxu1 %vm8050_vm1, %v8049_v14 }
 0x748   :  { %7214 = vmatprep.subr.mxu1 %v8049_v14 }
 0x74b   :  { %7215 = vmatpush3.xpose.msk.msra.mxu1 %vm304_vm2, %v923_v16 }
 0x74c   :  { %7219 = vmatprep.subr.mxu1 %v8049_v14 }
 0x76a   :  { %v1175_v32 = vpop.xlane.xlu1 %1174 }
 0x76b   :  { %7837 = vrcp.f32 %v1175_v32 }
 0x76e   :  { %v1373_v34 = vpop.permute.xlu1 %1372 }
 0x772   :  { %v919_v40 = vpop.permute.xlu1 %918 }
 0x773   :  { %7168 = vmatmul.mubr.msk.f32.gmra.mxu0 %vm304_vm2, %v919_v40  ;;  %v25_v40 = vld [vmem:[%s9439_s4] sm:$0xff] }
 0x774   :  { %7170 = vmatprep.mubr.msk.f32.mxu0 %vm8050_vm1, %v8049_v14 }
 0x777   :  { %7171 = vmatmul.mubr.msk.f32.gmra.mxu0 %vm304_vm2, %v921_v47  ;;  %v744_v47 = vadd.f32 %v8357_v33, %v8312_v52  ;;  %v754_v52 = vadd.f32 %v8361_v42, %v8316_v57 }
 0x778   :  { %v7838_v49 = vpop.eup %7837  ;;  %7201 = vmatprep.mubr.msk.f32.mxu0 %vm8050_vm1, %v8049_v14 }
 0x779   :  { %v1181_v50 = vmul.f32 %v7838_v49, %v7832_v8  ;;  %v749_v49 = vadd.f32 %v8359_v38, %v8314_v54 }
 0x77b   :  { %7193 = vmatmul.mubr.msk.f32.gmra.mxu1 %vm304_vm2, %v1181_v50 }
 0x77c   :  { %7216 = vmatprep.mubr.msk.f32.mxu1 %vm8050_vm1, %v8049_v14 }
 0x77f   :  { %7217 = vmatmul.mubr.msk.f32.vlgmr.msra.gmra.mxu1 %vm304_vm2, %v1373_v34 }
 0x780   :  { %7225 = vmatprep.mubr.msk.f32.mxu1 %vm8050_vm1, %v8049_v14 }
 0x802   :  { %v8421_v37 = vpop.f32.mrf.mxu0  ;;  %v8423_v41 = vpop.f32.mrf.mxu1 }
 0x803   :  { %v1020_v16 = vsel %vm403_vm3, %v8421_v37, -inf }
 0x804   :  { %v7166_v51 = vpop.f32.mrf.mxu0  ;;  %v7188_v53 = vpop.f32.mrf.mxu1 }
 0x806   :  { %v8425_v55 = vpop.f32.mrf.mxu1 }
 0x808   :  { %v7191_v56 = vpop.f32.mrf.mxu1 }
 0x833   :  { %v1011_v58 = vpop.f32.mrf.mxu0 }
 0x834   :  { %v1023_v2 = vsel %vm403_vm3, %v1011_v58, -inf }
 0x835   :  { %v7169_v59 = vpop.f32.mrf.mxu0 }
 0x837   :  { %v8427_v60 = vpop.f32.mrf.mxu0 }
 0x838   :  { %v1026_v19 = vsel %vm403_vm3, %v8427_v60, -inf }
 0x839   :  { %v7172_v61 = vpop.f32.mrf.mxu0 }
 0x83b   :  { %v8429_v62 = vpop.f32.mrf.mxu1 }
 0x83d   :  { %v7194_v63 = vpop.f32.mrf.mxu1 }
 0x83f   :  { %v1442_v39 = vpop.f32.mrf.mxu1 }
 0x840   :  { %v1446_v0 = vsel %vm403_vm3, %v1442_v39, -inf }
 0x841   :  { %1447 = vmax.xlane.f32.xlu1 %v1446_v0  ;;  %v7218_v1 = vpop.f32.mrf.mxu1 }
 0x852   :  { %1276 = vrot.lane.b32.xlu1 %v8200_v29, %s8055_s7 }
 0x856   :  { %1274 = vrot.lane.b32.xlu1 %v8184_v23, %s8055_s7 }
 0x85a   :  { %1991 = vrot.lane.b32.xlu1 %v8186_v24, %s8058_s10 }
 0x85e   :  { %1995 = vrot.lane.b32.xlu1 %v8196_v28, %s8058_s10 }
 0x882   :  { %1024 = vmax.xlane.f32.xlu1 %v1023_v2 }
 0x8ca   :  { %v1448_v3 = vpop.xlane.xlu1 %1447 }
 0x8cb   :  { %v1449_v4 = vsub.f32 %v1442_v39, %v1448_v3 }
 0x8cd   :  { %v1450_v5 = vmul.f32 1.442695, %v1449_v4 }
 0x8ce   :  { %v1277_v8 = vpop.permute.xlu1 %1276 }
 0x8cf   :  { %7839 = vpow2.f32 %v1450_v5 }
 0x8d2   :  { %v1275_v9 = vpop.permute.xlu1 %1274 }
 0x8d6   :  { %v1992_v10 = vpop.permute.xlu1 %1991 }
 0x8da   :  { %v1996_v11 = vpop.permute.xlu1 %1995 }
 0x8dc   :  { %v7840_v6 = vpop.eup %7839 }
 0x8dd   :  { %v1452_v7 = vsel %vm403_vm3, %v7840_v6, 0.0 }
 0x8de   :  { %1453 = vadd.xlane.f32.xlu0 %v1452_v7 }
 0x8f4   :  { %1278 = vrot.lane.b32.xlu0 %v8194_v27, %s8055_s7 }
 0x8f8   :  { %1997 = vrot.lane.b32.xlu0 %v8188_v25, %s8059_s11 }
 0x8fc   :  { %1993 = vrot.lane.b32.xlu0 %v8203_v30, %s8058_s10 }
 0x90b   :  { %v1025_v12 = vpop.xlane.xlu1 %1024 }
 0x90c   :  { %v1030_v13 = vsub.f32 %v1011_v58, %v1025_v12 }
 0x90e   :  { %v1034_v15 = vmul.f32 1.442695, %v1030_v13 }
 0x910   :  { %7841 = vpow2.f32 %v1034_v15 }
 0x91b   :  { %1021 = vmax.xlane.f32.xlu0 %v1020_v16 }
 0x91d   :  { %v8450_v17 = vpop.eup %7841 }
 0x91e   :  { %v1041_v18 = vsel %vm403_vm3, %v8450_v17, 0.0 }
 0x91f   :  { %1042 = vadd.xlane.f32.xlu1 %v1041_v18  ;;  %1027 = vmax.xlane.f32.xlu0 %v1026_v19 }
 0x967   :  { %v1454_v20 = vpop.xlane.xlu0 %1453 }
 0x968   :  { %7843 = vrcp.f32 %v1454_v20 }
 0x96b   :  { %v1279_v31 = vpop.permute.xlu0 %1278 }
 0x96c   :  { %7196 = vmatpush3.msra.mxu0 %v1279_v31  ;;  %7220 = vmatpush3.msra.mxu1 %v1279_v31 }
 0x96d   :  { %7197 = vmatprep.subr.mxu0 %v8049_v14  ;;  %7221 = vmatprep.subr.mxu1 %v8049_v14 }
 0x96e   :  { %7198 = vmatpush3.msra.mxu0 %v1277_v8  ;;  %7222 = vmatpush3.msra.mxu1 %v1277_v8 }
 0x96f   :  { %7199 = vmatprep.subr.mxu0 %v8049_v14  ;;  %7223 = vmatprep.subr.mxu1 %v8049_v14  ;;  %v1998_v33 = vpop.permute.xlu0 %1997 }
 0x970   :  { %7200 = vmatpush3.msra.mxu0 %v1275_v9  ;;  %7224 = vmatpush3.msra.mxu1 %v1275_v9 }
 0x971   :  { %7239 = vmatprep.subr.mxu1 %v8049_v14  ;;  %7228 = vmatprep.subr.mxu0 %v8049_v14 }
 0x973   :  { %v1994_v54 = vpop.permute.xlu0 %1993 }
 0x975   :  { %v7844_v32 = vpop.eup %7843 }
 0x976   :  { %v1456_v34 = vmul.f32 %v7844_v32, %v7840_v6 }
 0x978   :  { %7226 = vmatmul.mubr.msk.f32.vlgmr.msra.gmra.mxu1 %vm403_vm3, %v1456_v34 }
 0x979   :  { %7240 = vmatpush3.msra.mxu1 %v25_v40  ;;  %7241 = vmatprep.mubr.msk.f32.mxu1 %vm8050_vm1, %v8049_v14 }
 0x97a   :  { %7255 = vmatprep.subr.mxu1 %v8049_v14 }
 0x97c   :  { %7242 = vmatmul.mubr.msk.f32.vlgmr.msra.gmra.mxu1 %vm304_vm2, %v744_v47 }
 0x97d   :  { %7244 = vmatprep.mubr.msk.f32.mxu1 %vm8050_vm1, %v8049_v14  ;;  %7256 = vmatpush3.msra.mxu1 %v25_v40 }
 0x97e   :  { %7275 = vmatprep.subr.mxu1 %v8049_v14 }
 0x980   :  { %7245 = vmatmul.mubr.msk.f32.gmra.mxu1 %vm304_vm2, %v749_v49 }
 0x981   :  { %7247 = vmatprep.mubr.msk.f32.mxu1 %vm8050_vm1, %v8049_v14 }
 0x984   :  { %7248 = vmatmul.mubr.msk.f32.gmra.mxu1 %vm304_vm2, %v754_v52 }
 0x985   :  { %7257 = vmatprep.mubr.msk.f32.mxu1 %vm8050_vm1, %v8049_v14 }
 0x988   :  { %7258 = vmatmul.mubr.msk.f32.vlgmr.msra.gmra.mxu1 %vm304_vm2, %v8363_v48 }
 0x989   :  { %7276 = vmatpush3.xpose.msk.msra.mxu1 %vm304_vm2, %v1998_v33  ;;  %7277 = vmatprep.mubr.msk.f32.mxu1 %vm8050_vm1, %v8049_v14 }
 0x98a   :  { %7286 = vmatprep.subr.mxu1 %v8049_v14 }
 0x98c   :  { %7278 = vmatmul.mubr.msk.f32.vlgmr.msra.gmra.mxu1 %vm304_vm2, %v1992_v10 }
 0x98d   :  { %7280 = vmatprep.mubr.msk.f32.mxu1 %vm8050_vm1, %v8049_v14 }
 0x990   :  { %7281 = vmatmul.mubr.msk.f32.gmra.mxu1 %vm304_vm2, %v1994_v54 }
 0x991   :  { %7283 = vmatprep.mubr.msk.f32.mxu1 %vm8050_vm1, %v8049_v14 }
 0x994   :  { %7284 = vmatmul.mubr.msk.f32.gmra.mxu1 %vm304_vm2, %v1996_v11 }
 0x995   :  { %7288 = vmatprep.mubr.msk.f32.mxu1 %vm8050_vm1, %v8049_v14 }
 0x9a4   :  { %v1022_v57 = vpop.xlane.xlu0 %1021 }
 0x9a5   :  { %v1029_v38 = vsub.f32 %v8421_v37, %v1022_v57 }
 0x9a7   :  { %v1032_v42 = vmul.f32 1.442695, %v1029_v38 }
 0x9a8   :  { %v1028_v48 = vpop.xlane.xlu0 %1027  ;;  %v1043_v1 = vpop.xlane.xlu1 %1042 }
 0x9a9   :  { %7845 = vpow2.f32 %v1032_v42  ;;  %v1031_v50 = vsub.f32 %v8427_v60, %v1028_v48 }
 0x9ab   :  { %v1036_v51 = vmul.f32 1.442695, %v1031_v50 }
 0x9ad   :  { %7847 = vpow2.f32 %v1036_v51 }
 0x9b6   :  { %v7846_v53 = vpop.eup %7845 }
 0x9b7   :  { %v1038_v56 = vsel %vm403_vm3, %v7846_v53, 0.0 }
 0x9b8   :  { %1039 = vadd.xlane.f32.xlu0 %v1038_v56 }
 0x9ba   :  { %v7848_v58 = vpop.eup %7847 }
 0x9bb   :  { %v1044_v59 = vsel %vm403_vm3, %v7848_v58, 0.0 }
 0x9bc   :  { %1045 = vadd.xlane.f32.xlu0 %v1044_v59 }
 0xa38   :  { %v8504_v61 = vpop.f32.mrf.mxu1 }
 0xa3a   :  { %v7227_v63 = vpop.f32.mrf.mxu1 }
 0xa3c   :  { %v8506_v39 = vpop.f32.mrf.mxu1 }
 0xa3e   :  { %v7243_v37 = vpop.f32.mrf.mxu1 }
 0xa40   :  { %v8508_v0 = vpop.f32.mrf.mxu1 }
 0xa41   :  { %v1040_v60 = vpop.xlane.xlu0 %1039 }
 0xa42   :  { %7849 = vrcp.f32 %v1040_v60  ;;  %v7246_v2 = vpop.f32.mrf.mxu1 }
 0xa43   :  { %7851 = vrcp.f32 %v1043_v1 }
 0xa44   :  { %v8510_v3 = vpop.f32.mrf.mxu1 }
 0xa45   :  { %v1046_v4 = vpop.xlane.xlu0 %1045 }
 0xa46   :  { %v7249_v5 = vpop.f32.mrf.mxu1  ;;  %7853 = vrcp.f32 %v1046_v4 }
 0xa48   :  { %v8512_v6 = vpop.f32.mrf.mxu1 }
 0xa4a   :  { %v7259_v7 = vpop.f32.mrf.mxu1 }
 0xa4c   :  { %v2073_v8 = vpop.f32.mrf.mxu1 }
 0xa4d   :  { %v2087_v9 = vsel %vm304_vm2, %v2073_v8, -inf }
 0xa4e   :  { %v7279_v10 = vpop.f32.mrf.mxu1  ;;  %2088 = vmax.xlane.f32.xlu1 %v2087_v9 }
 0xa4f   :  { %v7850_v11 = vpop.eup %7849 }
 0xa50   :  { %v1050_v12 = vmul.f32 %v7850_v11, %v7846_v53  ;;  %v2078_v13 = vpop.f32.mrf.mxu1  ;;  %v7852_v15 = vpop.eup %7851 }
 0xa51   :  { %v2090_v16 = vsel %vm304_vm2, %v2078_v13, -inf  ;;  %v1051_v20 = vmul.f32 %v7852_v15, %v8450_v17  ;;  %v26_v17 = vld [vmem:[%s9439_s4 + $0x8] sm:$0xff] }
 0xa52   :  { %v7282_v18 = vpop.f32.mrf.mxu1  ;;  %2091 = vmax.xlane.f32.xlu0 %v2090_v16  ;;  %7202 = vmatmul.mubr.msk.f32.vlgmr.msra.gmra.mxu0 %vm403_vm3, %v1050_v12 }
 0xa53   :  { %7204 = vmatprep.mubr.msk.f32.mxu0 %vm8050_vm1, %v8049_v14  ;;  %v7854_v31 = vpop.eup %7853  ;;  %7229 = vmatpush3.msra.mxu0 %v26_v17 }
 0xa54   :  { %v2083_v19 = vpop.f32.mrf.mxu1  ;;  %v1052_v40 = vmul.f32 %v7854_v31, %v7848_v58  ;;  %7250 = vmatprep.subr.mxu0 %v8049_v14 }
 0xa55   :  { %v2093_v32 = vsel %vm304_vm2, %v2083_v19, -inf }
 0xa56   :  { %v7285_v34 = vpop.f32.mrf.mxu1  ;;  %2094 = vmax.xlane.f32.xlu1 %v2093_v32  ;;  %7205 = vmatmul.mubr.msk.f32.gmra.mxu0 %vm403_vm3, %v1051_v20 }
 0xa57   :  { %7207 = vmatprep.mubr.msk.f32.mxu0 %vm8050_vm1, %v8049_v14 }
 0xa5a   :  { %7208 = vmatmul.mubr.msk.f32.gmra.mxu0 %vm403_vm3, %v1052_v40 }
 0xa5b   :  { %7230 = vmatprep.mubr.msk.f32.mxu0 %vm8050_vm1, %v8049_v14 }
 0xa67   :  { %1864 = vrot.lane.b32.xlu1 %v8194_v27, %s8060_s13 }
 0xa68   :  { %1862 = vrot.lane.b32.xlu0 %v8200_v29, %s8060_s13 }
 0xa6b   :  { %1860 = vrot.lane.b32.xlu1 %v8184_v23, %s8060_s13 }
 0xa6f   :  { %2120 = vrot.lane.b32.xlu1 %v8188_v25, %s8061_s14 }
 0xa73   :  { %1856 = vrot.lane.b32.xlu1 %v8203_v30, %s8060_s13 }
 0xad7   :  { %v2089_v47 = vpop.xlane.xlu1 %2088 }
 0xad8   :  { %v2096_v49 = vsub.f32 %v2073_v8, %v2089_v47 }
 0xada   :  { %v2099_v52 = vmul.f32 1.442695, %v2096_v49 }
 0xadb   :  { %v2092_v33 = vpop.xlane.xlu0 %2091 }
 0xadc   :  { %7855 = vpow2.f32 %v2099_v52  ;;  %v2097_v54 = vsub.f32 %v2078_v13, %v2092_v33 }
 0xade   :  { %v2101_v57 = vmul.f32 1.442695, %v2097_v54 }
 0xadf   :  { %v2095_v38 = vpop.xlane.xlu1 %2094 }
 0xae0   :  { %7857 = vpow2.f32 %v2101_v57  ;;  %v2098_v59 = vsub.f32 %v2083_v19, %v2095_v38 }
 0xae2   :  { %v2103_v63 = vmul.f32 1.442695, %v2098_v59 }
 0xae3   :  { %v1865_v42 = vpop.permute.xlu1 %1864 }
 0xae4   :  { %7859 = vpow2.f32 %v2103_v63 }
 0xae7   :  { %v8541_v48 = vpop.permute.xlu1 %1860 }
 0xae9   :  { %v7856_v50 = vpop.eup %7855 }
 0xaea   :  { %v2105_v51 = vsel %vm304_vm2, %v7856_v50, 0.0 }
 0xaeb   :  { %v2121_v53 = vpop.permute.xlu1 %2120  ;;  %2106 = vadd.xlane.f32.xlu0 %v2105_v51 }
 0xaec   :  { %7287 = vmatpush3.msra.mxu1 %v2121_v53 }
 0xaed   :  { %v7858_v56 = vpop.eup %7857  ;;  %7312 = vmatprep.subr.mxu1 %v8049_v14 }
 0xaee   :  { %v2108_v58 = vsel %vm304_vm2, %v7858_v56, 0.0 }
 0xaef   :  { %2109 = vadd.xlane.f32.xlu1 %v2108_v58 }
 0xaf1   :  { %v7860_v8 = vpop.eup %7859 }
 0xb00   :  { %2310 = vrot.lane.b32.xlu1 %v8190_v26, %s8059_s11 }
 0xb01   :  { %1854 = vrot.lane.b32.xlu0 %v8186_v24, %s8060_s13 }
 0xb12   :  { %v1358_v37 = vpop.f32.mrf.mxu0 }
 0xb13   :  { %v1359_v1 = vadd.f32 %v1358_v37, %v8423_v41 }
 0xb14   :  { %v7203_v60 = vpop.f32.mrf.mxu0 }
 0xb15   :  { %7231 = vmatmul.mubr.msk.f32.vlgmr.msra.gmra.mxu0 %vm304_vm2, %v1359_v1 }
 0xb16   :  { %v1363_v2 = vpop.f32.mrf.mxu0  ;;  %7233 = vmatprep.mubr.msk.f32.mxu0 %vm8050_vm1, %v8049_v14  ;;  %7251 = vmatpush3.msra.mxu0 %v26_v17 }
 0xb17   :  { %v1364_v4 = vadd.f32 %v1363_v2, %v8425_v55  ;;  %7260 = vmatprep.subr.mxu0 %v8049_v14  ;;  %v2111_v55 = vsel %vm304_vm2, %v7860_v8, 0.0 }
 0xb18   :  { %v7206_v5 = vpop.f32.mrf.mxu0 }
 0xb19   :  { %7234 = vmatmul.mubr.msk.f32.gmra.mxu0 %vm304_vm2, %v1364_v4 }
 0xb1a   :  { %v1368_v7 = vpop.f32.mrf.mxu0  ;;  %7236 = vmatprep.mubr.msk.f32.mxu0 %vm8050_vm1, %v8049_v14 }
 0xb1b   :  { %v1369_v41 = vadd.f32 %v1368_v7, %v8429_v62  ;;  %v1863_v62 = vpop.permute.xlu0 %1862 }
 0xb1c   :  { %v7209_v9 = vpop.f32.mrf.mxu0 }
 0xb1d   :  { %7237 = vmatmul.mubr.msk.f32.gmra.mxu0 %vm304_vm2, %v1369_v41 }
 0xb1e   :  { %7252 = vmatprep.mubr.msk.f32.mxu0 %vm8050_vm1, %v8049_v14 }
 0xb20   :  { %2112 = vadd.xlane.f32.xlu0 %v2111_v55 }
 0xb21   :  { %7253 = vmatmul.mubr.msk.f32.vlgmr.msra.gmra.mxu0 %vm304_vm2, %v8504_v61  ;;  %v1857_v61 = vpop.permute.xlu1 %1856 }
 0xb22   :  { %7261 = vmatpush3.xpose.msk.msra.mxu0 %vm304_vm2, %v1865_v42  ;;  %7266 = vmatprep.mubr.msk.f32.mxu0 %vm8050_vm1, %v8049_v14 }
 0xb23   :  { %7262 = vmatprep.subr.mxu0 %v8049_v14 }
 0xb26   :  { %7263 = vmatpush3.xpose.msk.msra.mxu0 %vm304_vm2, %v1863_v62 }
 0xb27   :  { %7264 = vmatprep.subr.mxu0 %v8049_v14 }
 0xb2a   :  { %7265 = vmatpush3.xpose.msk.msra.mxu0 %vm304_vm2, %v8541_v48 }
 0xb2b   :  { %7297 = vmatprep.subr.mxu0 %v8049_v14 }
 0xb36   :  { %1858 = vrot.lane.b32.xlu0 %v8196_v28, %s8060_s13 }
 0xb74   :  { %v2107_v10 = vpop.xlane.xlu0 %2106 }
 0xb75   :  { %7861 = vrcp.f32 %v2107_v10 }
 0xb78   :  { %v2110_v11 = vpop.xlane.xlu1 %2109  ;;  %v1855_v12 = vpop.permute.xlu0 %1854 }
 0xb79   :  { %7863 = vrcp.f32 %v2110_v11  ;;  %7267 = vmatmul.mubr.msk.f32.vlgmr.msra.gmra.mxu0 %vm304_vm2, %v1855_v12 }
 0xb7a   :  { %7269 = vmatprep.mubr.msk.f32.mxu0 %vm8050_vm1, %v8049_v14 }
 0xb7c   :  { %v2311_v34 = vpop.permute.xlu1 %2310 }
 0xb7d   :  { %7270 = vmatmul.mubr.msk.f32.gmra.mxu0 %vm304_vm2, %v1857_v61 }
 0xb7e   :  { %7272 = vmatprep.mubr.msk.f32.mxu0 %vm8050_vm1, %v8049_v14 }
 0xb82   :  { %v7862_v13 = vpop.eup %7861 }
 0xb83   :  { %v2117_v15 = vmul.f32 %v7862_v13, %v7856_v50 }
 0xb85   :  { %7289 = vmatmul.mubr.msk.f32.vlgmr.msra.gmra.mxu1 %vm304_vm2, %v2117_v15 }
 0xb86   :  { %v7864_v16 = vpop.eup %7863  ;;  %7313 = vmatpush3.xpose.msk.msra.mxu1 %vm304_vm2, %v1865_v42  ;;  %7291 = vmatprep.mubr.msk.f32.mxu1 %vm8050_vm1, %v8049_v14 }
 0xb87   :  { %7314 = vmatprep.subr.mxu1 %v8049_v14  ;;  %v2118_v18 = vmul.f32 %v7864_v16, %v7858_v56 }
 0xb89   :  { %7292 = vmatmul.mubr.msk.f32.gmra.mxu1 %vm304_vm2, %v2118_v18 }
 0xb8a   :  { %7315 = vmatpush3.xpose.msk.msra.mxu1 %vm304_vm2, %v1863_v62  ;;  %7294 = vmatprep.mubr.msk.f32.mxu1 %vm8050_vm1, %v8049_v14 }
 0xb8b   :  { %7316 = vmatprep.subr.mxu1 %v8049_v14 }
 0xb8e   :  { %7317 = vmatpush3.xpose.msk.msra.mxu1 %vm304_vm2, %v8541_v48 }
 0xb8f   :  { %7330 = vmatprep.subr.mxu1 %v8049_v14 }
 0xba9   :  { %v2113_v19 = vpop.xlane.xlu0 %2112 }
 0xbaa   :  { %7865 = vrcp.f32 %v2113_v19 }
 0xbad   :  { %v1859_v20 = vpop.permute.xlu0 %1858 }
 0xbae   :  { %7273 = vmatmul.mubr.msk.f32.gmra.mxu0 %vm304_vm2, %v1859_v20 }
 0xbaf   :  { %7303 = vmatprep.mubr.msk.f32.mxu0 %vm8050_vm1, %v8049_v14 }
 0xbb7   :  { %v7866_v31 = vpop.eup %7865 }
 0xbb8   :  { %v2119_v32 = vmul.f32 %v7866_v31, %v7860_v8 }
 0xbba   :  { %7295 = vmatmul.mubr.msk.f32.gmra.mxu1 %vm304_vm2, %v2119_v32 }
 0xbbb   :  { %7318 = vmatprep.mubr.msk.f32.mxu1 %vm8050_vm1, %v8049_v14 }
 0xbbe   :  { %7319 = vmatmul.mubr.msk.f32.vlgmr.msra.gmra.mxu1 %vm304_vm2, %v2311_v34 }
 0xbbf   :  { %7332 = vmatprep.mubr.msk.f32.mxu1 %vm8050_vm1, %v8049_v14 }
 0xbd5   :  { %v8605_v40 = vpop.f32.mrf.mxu0 }
 0xbd7   :  { %v7232_v17 = vpop.f32.mrf.mxu0 }
 0xbd9   :  { %v8607_v47 = vpop.f32.mrf.mxu0 }
 0xbdb   :  { %v7235_v49 = vpop.f32.mrf.mxu0 }
 0xbdd   :  { %v8609_v52 = vpop.f32.mrf.mxu0 }
 0xbdf   :  { %v7238_v33 = vpop.f32.mrf.mxu0 }
 0xbe1   :  { %v8611_v54 = vpop.f32.mrf.mxu0 }
 0xbe3   :  { %v7254_v57 = vpop.f32.mrf.mxu0 }
 0xc39   :  { %v1944_v38 = vpop.f32.mrf.mxu0 }
 0xc3a   :  { %v1958_v42 = vsel %vm403_vm3, %v1944_v38, -inf }
 0xc3b   :  { %1959 = vmax.xlane.f32.xlu0 %v1958_v42  ;;  %v7268_v48 = vpop.f32.mrf.mxu0 }
 0xc3d   :  { %v1949_v50 = vpop.f32.mrf.mxu0 }
 0xc3e   :  { %v1961_v51 = vsel %vm403_vm3, %v1949_v50, -inf }
 0xc3f   :  { %1962 = vmax.xlane.f32.xlu1 %v1961_v51  ;;  %v7271_v53 = vpop.f32.mrf.mxu0 }
 0xc45   :  { %v8615_v56 = vpop.f32.mrf.mxu1 }
 0xc47   :  { %v7290_v58 = vpop.f32.mrf.mxu1 }
 0xc49   :  { %v8617_v59 = vpop.f32.mrf.mxu1 }
 0xc4b   :  { %v7293_v63 = vpop.f32.mrf.mxu1 }
 0xc6e   :  { %v1954_v37 = vpop.f32.mrf.mxu0 }
 0xc6f   :  { %v1964_v1 = vsel %vm403_vm3, %v1954_v37, -inf }
 0xc70   :  { %1965 = vmax.xlane.f32.xlu0 %v1964_v1  ;;  %v7274_v60 = vpop.f32.mrf.mxu0 }
 0xc7a   :  { %v8620_v2 = vpop.f32.mrf.mxu1 }
 0xc7c   :  { %v7296_v4 = vpop.f32.mrf.mxu1 }
 0xc7e   :  { %v2380_v5 = vpop.f32.mrf.mxu1 }
 0xc7f   :  { %v2384_v7 = vsel %vm403_vm3, %v2380_v5, -inf }
 0xc80   :  { %v7320_v41 = vpop.f32.mrf.mxu1  ;;  %2385 = vmax.xlane.f32.xlu0 %v2384_v7 }
 0xc81   :  { %v27_v41 = vld [vmem:[%s9439_s4 + $0x10] sm:$0xff] }
 0xc82   :  { %7331 = vmatpush3.msra.mxu1 %v27_v41 }
 0xc83   :  { %7346 = vmatprep.subr.mxu1 %v8049_v14 }
 0xcc4   :  { %v1960_v8 = vpop.xlane.xlu0 %1959 }
 0xcc5   :  { %v1967_v9 = vsub.f32 %v1944_v38, %v1960_v8 }
 0xcc7   :  { %v1970_v55 = vmul.f32 1.442695, %v1967_v9 }
 0xcc8   :  { %v1963_v62 = vpop.xlane.xlu1 %1962 }
 0xcc9   :  { %7867 = vpow2.f32 %v1970_v55  ;;  %v1968_v61 = vsub.f32 %v1949_v50, %v1963_v62 }
 0xccb   :  { %v1972_v10 = vmul.f32 1.442695, %v1968_v61 }
 0xccd   :  { %7869 = vpow2.f32 %v1972_v10 }
 0xcd6   :  { %v7868_v11 = vpop.eup %7867 }
 0xcd7   :  { %v1976_v12 = vsel %vm403_vm3, %v7868_v11, 0.0 }
 0xcd8   :  { %1977 = vadd.xlane.f32.xlu1 %v1976_v12 }
 0xcda   :  { %v7870_v13 = vpop.eup %7869 }
 0xcdb   :  { %v1979_v15 = vsel %vm403_vm3, %v7870_v13, 0.0 }
 0xcdc   :  { %1980 = vadd.xlane.f32.xlu0 %v1979_v15 }
 0xcf9   :  { %v1966_v16 = vpop.xlane.xlu0 %1965 }
 0xcfa   :  { %v1969_v18 = vsub.f32 %v1954_v37, %v1966_v16 }
 0xcfc   :  { %v1974_v19 = vmul.f32 1.442695, %v1969_v18 }
 0xcfe   :  { %7871 = vpow2.f32 %v1974_v19  ;;  %v1695_v19 = vadd.f32 %v8506_v39, %v8605_v40 }
 0xd09   :  { %v2386_v20 = vpop.xlane.xlu0 %2385 }
 0xd0a   :  { %v2387_v31 = vsub.f32 %v2380_v5, %v2386_v20 }
 0xd0b   :  { %v7872_v32 = vpop.eup %7871 }
 0xd0c   :  { %v2388_v34 = vmul.f32 1.442695, %v2387_v31  ;;  %v1982_v17 = vsel %vm403_vm3, %v7872_v32, 0.0 }
 0xd0d   :  { %1983 = vadd.xlane.f32.xlu1 %v1982_v17 }
 0xd0e   :  { %7873 = vpow2.f32 %v2388_v34  ;;  %v1700_v34 = vadd.f32 %v8508_v0, %v8607_v47 }
 0xd1b   :  { %v7874_v49 = vpop.eup %7873 }
 0xd1c   :  { %v2390_v33 = vsel %vm403_vm3, %v7874_v49, 0.0 }
 0xd1d   :  { %2391 = vadd.xlane.f32.xlu0 %v2390_v33 }
 0xd1e   :  { %2216 = vrot.lane.b32.xlu1 %v8194_v27, %s8058_s10 }
 0xd22   :  { %2212 = vrot.lane.b32.xlu1 %v8184_v23, %s8058_s10 }
 0xd26   :  { %2777 = vrot.lane.b32.xlu1 %v8188_v25, %s8062_s17 }
 0xd2a   :  { %2773 = vrot.lane.b32.xlu1 %v8203_v30, %s8063_s18 }
 0xd33   :  { %2214 = vrot.lane.b32.xlu0 %v8200_v29, %s8058_s10 }
 0xd37   :  { %2771 = vrot.lane.b32.xlu0 %v8186_v24, %s8063_s18 }
 0xd3b   :  { %2775 = vrot.lane.b32.xlu0 %v8196_v28, %s8063_s18 }
 0xd61   :  { %v1978_v57 = vpop.xlane.xlu1 %1977 }
 0xd62   :  { %7875 = vrcp.f32 %v1978_v57  ;;  %v1705_v57 = vadd.f32 %v8510_v3, %v8609_v52 }
 0xd65   :  { %v1981_v48 = vpop.xlane.xlu0 %1980 }
 0xd66   :  { %7877 = vrcp.f32 %v1981_v48 }
 0xd6f   :  { %v7876_v51 = vpop.eup %7875 }
 0xd70   :  { %v1988_v58 = vmul.f32 %v7876_v51, %v7868_v11 }
 0xd73   :  { %v7878_v37 = vpop.eup %7877 }
 0xd74   :  { %v1989_v1 = vmul.f32 %v7878_v37, %v7870_v13 }
 0xd96   :  { %v1984_v38 = vpop.xlane.xlu1 %1983 }
 0xd97   :  { %7879 = vrcp.f32 %v1984_v38 }
 0xd9a   :  { %v2217_v42 = vpop.permute.xlu1 %2216 }
 0xd9b   :  { %7298 = vmatpush3.msra.mxu0 %v2217_v42 }
 0xd9c   :  { %7299 = vmatprep.subr.mxu0 %v8049_v14 }
 0xd9e   :  { %v2213_v63 = vpop.permute.xlu1 %2212 }
 0xda2   :  { %v2778_v15 = vpop.permute.xlu1 %2777 }
 0xda4   :  { %v7880_v60 = vpop.eup %7879 }
 0xda5   :  { %v1990_v4 = vmul.f32 %v7880_v60, %v7872_v32 }
 0xda6   :  { %v2392_v50 = vpop.xlane.xlu0 %2391 }
 0xda7   :  { %7881 = vrcp.f32 %v2392_v50 }
 0xdaa   :  { %v2215_v53 = vpop.permute.xlu0 %2214 }
 0xdab   :  { %7300 = vmatpush3.msra.mxu0 %v2215_v53 }
 0xdac   :  { %7301 = vmatprep.subr.mxu0 %v8049_v14 }
 0xdad   :  { %7302 = vmatpush3.msra.mxu0 %v2213_v63 }
 0xdae   :  { %7304 = vmatmul.mubr.msk.f32.vlgmr.msra.gmra.mxu0 %vm403_vm3, %v1988_v58  ;;  %7321 = vmatprep.subr.mxu0 %v8049_v14  ;;  %v2772_v16 = vpop.permute.xlu0 %2771 }
 0xdaf   :  { %7322 = vmatpush3.msra.mxu0 %v2217_v42  ;;  %7306 = vmatprep.mubr.msk.f32.mxu0 %vm8050_vm1, %v8049_v14  ;;  %v1851_v42 = vadd.f32 %v8512_v6, %v8611_v54 }
 0xdb0   :  { %7323 = vmatprep.subr.mxu0 %v8049_v14 }
 0xdb1   :  { %7324 = vmatpush3.msra.mxu0 %v2215_v53 }
 0xdb2   :  { %7307 = vmatmul.mubr.msk.f32.gmra.mxu0 %vm403_vm3, %v1989_v1  ;;  %7325 = vmatprep.subr.mxu0 %v8049_v14  ;;  %v2776_v18 = vpop.permute.xlu0 %2775 }
 0xdb3   :  { %7326 = vmatpush3.msra.mxu0 %v2213_v63  ;;  %7309 = vmatprep.mubr.msk.f32.mxu0 %vm8050_vm1, %v8049_v14 }
 0xdb4   :  { %7341 = vmatprep.subr.mxu0 %v8049_v14  ;;  %v7882_v5 = vpop.eup %7881 }
 0xdb5   :  { %v2394_v7 = vmul.f32 %v7882_v5, %v7874_v49 }
 0xdb6   :  { %7310 = vmatmul.mubr.msk.f32.gmra.mxu0 %vm403_vm3, %v1990_v4 }
 0xdb7   :  { %7327 = vmatprep.mubr.msk.f32.mxu0 %vm8050_vm1, %v8049_v14 }
 0xdba   :  { %7328 = vmatmul.mubr.msk.f32.vlgmr.msra.gmra.mxu0 %vm403_vm3, %v2394_v7 }
 0xdbb   :  { %7343 = vmatprep.mubr.msk.f32.mxu0 %vm8050_vm1, %v8049_v14  ;;  %7342 = vmatpush3.msra.mxu0 %v27_v41 }
 0xdbc   :  { %7361 = vmatprep.subr.mxu0 %v8049_v14 }
 0xe6e   :  { %v2296_v8 = vpop.f32.mrf.mxu0 }
 0xe6f   :  { %v2297_v9 = vadd.f32 %v2296_v8, %v8615_v56 }
 0xe70   :  { %v7305_v55 = vpop.f32.mrf.mxu0 }
 0xe71   :  { %7333 = vmatmul.mubr.msk.f32.vlgmr.msra.gmra.mxu1 %vm304_vm2, %v2297_v9 }
 0xe72   :  { %v2301_v62 = vpop.f32.mrf.mxu0  ;;  %7335 = vmatprep.mubr.msk.f32.mxu1 %vm8050_vm1, %v8049_v14 }
 0xe73   :  { %v2302_v61 = vadd.f32 %v2301_v62, %v8617_v59 }
 0xe74   :  { %v7308_v10 = vpop.f32.mrf.mxu0 }
 0xe75   :  { %7336 = vmatmul.mubr.msk.f32.gmra.mxu1 %vm304_vm2, %v2302_v61 }
 0xe76   :  { %v2306_v11 = vpop.f32.mrf.mxu0  ;;  %7338 = vmatprep.mubr.msk.f32.mxu1 %vm8050_vm1, %v8049_v14 }
 0xe77   :  { %v2307_v12 = vadd.f32 %v2306_v11, %v8620_v2  ;;  %v2774_v2 = vpop.permute.xlu1 %2773 }
 0xe78   :  { %v7311_v13 = vpop.f32.mrf.mxu0 }
 0xe79   :  { %7339 = vmatmul.mubr.msk.f32.gmra.mxu1 %vm304_vm2, %v2307_v12 }
 0xe7a   :  { %v2464_v56 = vpop.f32.mrf.mxu0  ;;  %7352 = vmatprep.mubr.msk.f32.mxu1 %vm8050_vm1, %v8049_v14 }
 0xe7b   :  { %7344 = vmatmul.mubr.msk.f32.vlgmr.msra.gmra.mxu0 %vm304_vm2, %v2464_v56 }
 0xe7c   :  { %7362 = vmatpush3.xpose.msk.msra.mxu0 %vm304_vm2, %v2778_v15  ;;  %v7329_v59 = vpop.f32.mrf.mxu0  ;;  %7363 = vmatprep.mubr.msk.f32.mxu0 %vm8050_vm1, %v8049_v14 }
 0xe7d   :  { %7372 = vmatprep.subr.mxu0 %v8049_v14 }
 0xe7f   :  { %7364 = vmatmul.mubr.msk.f32.vlgmr.msra.gmra.mxu0 %vm304_vm2, %v2772_v16 }
 0xe80   :  { %7366 = vmatprep.mubr.msk.f32.mxu0 %vm8050_vm1, %v8049_v14 }
 0xe83   :  { %7367 = vmatmul.mubr.msk.f32.gmra.mxu0 %vm304_vm2, %v2774_v2 }
 0xe84   :  { %7369 = vmatprep.mubr.msk.f32.mxu0 %vm8050_vm1, %v8049_v14 }
 0xe87   :  { %7370 = vmatmul.mubr.msk.f32.gmra.mxu0 %vm304_vm2, %v2776_v18 }
 0xe88   :  { %7374 = vmatprep.mubr.msk.f32.mxu0 %vm8050_vm1, %v8049_v14 }
 0xf31   :  { %v2543_v20 = vpop.f32.mrf.mxu1 }
 0xf32   :  { %v8692_v31 = vadd.f32 %v2543_v20, %v1695_v19 }
 0xf33   :  { %v7334_v32 = vpop.f32.mrf.mxu1 }
 0xf35   :  { %v2548_v17 = vpop.f32.mrf.mxu1 }
 0xf36   :  { %v8696_v49 = vadd.f32 %v2548_v17, %v1700_v34 }
 0xf37   :  { %v7337_v33 = vpop.f32.mrf.mxu1 }
 0xf39   :  { %v2553_v38 = vpop.f32.mrf.mxu1 }
 0xf3a   :  { %v8702_v48 = vadd.f32 %v2553_v38, %v1705_v57 }
 0xf3b   :  { %v7340_v39 = vpop.f32.mrf.mxu1  ;;  %v2629_v40 = vpop.f32.mrf.mxu0 }
 0xf3c   :  { %v8704_v50 = vadd.f32 %v2629_v40, %v1851_v42 }
 0xf3d   :  { %v7345_v51 = vpop.f32.mrf.mxu0 }
 0xf3f   :  { %v2853_v53 = vpop.f32.mrf.mxu0 }
 0xf40   :  { %v2867_v0 = vsel %vm304_vm2, %v2853_v53, -inf }
 0xf41   :  { %2868 = vmax.xlane.f32.xlu1 %v2867_v0  ;;  %v7365_v47 = vpop.f32.mrf.mxu0 }
 0xf43   :  { %v2858_v58 = vpop.f32.mrf.mxu0 }
 0xf44   :  { %v2870_v63 = vsel %vm304_vm2, %v2858_v58, -inf }
 0xf45   :  { %2871 = vmax.xlane.f32.xlu0 %v2870_v63  ;;  %v7368_v3 = vpop.f32.mrf.mxu0 }
 0xf47   :  { %v2863_v52 = vpop.f32.mrf.mxu0 }
 0xf48   :  { %v2873_v6 = vsel %vm304_vm2, %v2863_v52, -inf }
 0xf49   :  { %2874 = vmax.xlane.f32.xlu0 %v2873_v6  ;;  %v7371_v54 = vpop.f32.mrf.mxu0 }
 0xf52   :  { %2642 = vrot.lane.b32.xlu1 %v8200_v29, %s8064_s21 }
 0xf56   :  { %2640 = vrot.lane.b32.xlu1 %v8184_v23, %s8064_s21 }
 0xf5a   :  { %2634 = vrot.lane.b32.xlu1 %v8186_v24, %s8064_s21 }
 0xf5f   :  { %2644 = vrot.lane.b32.xlu0 %v8194_v27, %s8064_s21 }
 0xf63   :  { %2900 = vrot.lane.b32.xlu0 %v8188_v25, %s8065_s22 }
 0xfca   :  { %v2869_v37 = vpop.xlane.xlu1 %2868 }
 0xfcb   :  { %v2876_v1 = vsub.f32 %v2853_v53, %v2869_v37 }
 0xfcd   :  { %v2879_v60 = vmul.f32 1.442695, %v2876_v1 }
 0xfce   :  { %v2872_v4 = vpop.xlane.xlu0 %2871  ;;  %v2643_v9 = vpop.permute.xlu1 %2642 }
 0xfcf   :  { %7883 = vpow2.f32 %v2879_v60  ;;  %v2877_v5 = vsub.f32 %v2858_v58, %v2872_v4 }
 0xfd1   :  { %v2881_v7 = vmul.f32 1.442695, %v2877_v5 }
 0xfd2   :  { %v2875_v41 = vpop.xlane.xlu0 %2874  ;;  %v2641_v25 = vpop.permute.xlu1 %2640 }
 0xfd3   :  { %7885 = vpow2.f32 %v2881_v7  ;;  %v2878_v8 = vsub.f32 %v2863_v52, %v2875_v41 }
 0xfd5   :  { %v2883_v55 = vmul.f32 1.442695, %v2878_v8 }
 0xfd6   :  { %v2645_v24 = vpop.permute.xlu0 %2644  ;;  %v2635_v12 = vpop.permute.xlu1 %2634 }
 0xfd7   :  { %7887 = vpow2.f32 %v2883_v55  ;;  %7347 = vmatpush3.xpose.msk.msra.mxu1 %vm304_vm2, %v2645_v24 }
 0xfd8   :  { %7348 = vmatprep.subr.mxu1 %v8049_v14 }
 0xfda   :  { %v2901_v62 = vpop.permute.xlu0 %2900 }
 0xfdb   :  { %7349 = vmatpush3.xpose.msk.msra.mxu1 %vm304_vm2, %v2643_v9  ;;  %7373 = vmatpush3.msra.mxu0 %v2901_v62 }
 0xfdc   :  { %v7884_v61 = vpop.eup %7883  ;;  %7350 = vmatprep.subr.mxu1 %v8049_v14  ;;  %7398 = vmatprep.subr.mxu0 %v8049_v14 }
 0xfdd   :  { %v2885_v10 = vsel %vm304_vm2, %v7884_v61, 0.0 }
 0xfde   :  { %2886 = vadd.xlane.f32.xlu1 %v2885_v10 }
 0xfdf   :  { %7351 = vmatpush3.xpose.msk.msra.mxu1 %vm304_vm2, %v2641_v25 }
 0xfe0   :  { %v7886_v11 = vpop.eup %7885  ;;  %7383 = vmatprep.subr.mxu1 %v8049_v14 }
 0xfe1   :  { %v2888_v13 = vsel %vm304_vm2, %v7886_v11, 0.0 }
 0xfe2   :  { %2889 = vadd.xlane.f32.xlu0 %v2888_v13  ;;  %7353 = vmatmul.mubr.msk.f32.vlgmr.msra.gmra.mxu1 %vm304_vm2, %v2635_v12 }
 0xfe3   :  { %7355 = vmatprep.mubr.msk.f32.mxu1 %vm8050_vm1, %v8049_v14 }
 0xfe4   :  { %v7888_v56 = vpop.eup %7887 }
 0xfe5   :  { %v2891_v15 = vsel %vm304_vm2, %v7888_v56, 0.0 }
 0xfe6   :  { %2892 = vadd.xlane.f32.xlu1 %v2891_v15 }
 0xff7   :  { %2638 = vrot.lane.b32.xlu1 %v8196_v28, %s8064_s21 }
 0xff8   :  { %2636 = vrot.lane.b32.xlu0 %v8203_v30, %s8064_s21 }
 0xffc   :  { %3090 = vrot.lane.b32.xlu0 %v8190_v26, %s8062_s17 }
0x1067   :  { %v2887_v59 = vpop.xlane.xlu1 %2886 }
0x1068   :  { %7889 = vrcp.f32 %v2887_v59 }
0x106b   :  { %v2890_v16 = vpop.xlane.xlu0 %2889 }
0x106c   :  { %7891 = vrcp.f32 %v2890_v16 }
0x106f   :  { %v2893_v2 = vpop.xlane.xlu1 %2892  ;;  %v2637_v18 = vpop.permute.xlu0 %2636 }
0x1070   :  { %7893 = vrcp.f32 %v2893_v2  ;;  %7356 = vmatmul.mubr.msk.f32.gmra.mxu1 %vm304_vm2, %v2637_v18 }
0x1071   :  { %7358 = vmatprep.mubr.msk.f32.mxu1 %vm8050_vm1, %v8049_v14 }
0x1073   :  { %v2639_v19 = vpop.permute.xlu1 %2638  ;;  %v3091_v17 = vpop.permute.xlu0 %3090 }
0x1074   :  { %7359 = vmatmul.mubr.msk.f32.gmra.mxu1 %vm304_vm2, %v2639_v19 }
0x1075   :  { %v7890_v28 = vpop.eup %7889  ;;  %7389 = vmatprep.mubr.msk.f32.mxu1 %vm8050_vm1, %v8049_v14 }
0x1076   :  { %v2897_v26 = vmul.f32 %v7890_v28, %v7884_v61 }
0x1078   :  { %7375 = vmatmul.mubr.msk.f32.vlgmr.msra.gmra.mxu0 %vm304_vm2, %v2897_v26 }
0x1079   :  { %v7892_v30 = vpop.eup %7891  ;;  %7399 = vmatpush3.xpose.msk.msra.mxu0 %vm304_vm2, %v2645_v24  ;;  %7377 = vmatprep.mubr.msk.f32.mxu0 %vm8050_vm1, %v8049_v14 }
0x107a   :  { %7400 = vmatprep.subr.mxu0 %v8049_v14  ;;  %v2898_v20 = vmul.f32 %v7892_v30, %v7886_v11 }
0x107c   :  { %7378 = vmatmul.mubr.msk.f32.gmra.mxu0 %vm304_vm2, %v2898_v20 }
0x107d   :  { %v7894_v32 = vpop.eup %7893  ;;  %7401 = vmatpush3.xpose.msk.msra.mxu0 %vm304_vm2, %v2643_v9  ;;  %7380 = vmatprep.mubr.msk.f32.mxu0 %vm8050_vm1, %v8049_v14 }
0x107e   :  { %7402 = vmatprep.subr.mxu0 %v8049_v14  ;;  %v2899_v34 = vmul.f32 %v7894_v32, %v7888_v56 }
0x1080   :  { %7381 = vmatmul.mubr.msk.f32.gmra.mxu0 %vm304_vm2, %v2899_v34 }
0x1081   :  { %7403 = vmatpush3.xpose.msk.msra.mxu0 %vm304_vm2, %v2641_v25  ;;  %7404 = vmatprep.mubr.msk.f32.mxu0 %vm8050_vm1, %v8049_v14 }
0x1082   :  { %7416 = vmatprep.subr.mxu0 %v8049_v14 }
0x1084   :  { %7405 = vmatmul.mubr.msk.f32.vlgmr.msra.gmra.mxu0 %vm304_vm2, %v3091_v17 }
0x1085   :  { %7418 = vmatprep.mubr.msk.f32.mxu0 %vm8050_vm1, %v8049_v14 }
0x10a2   :  { %v2724_v33 = vpop.f32.mrf.mxu1 }
0x10a3   :  { %v2738_v57 = vsel %vm403_vm3, %v2724_v33, -inf }
0x10a4   :  { %2739 = vmax.xlane.f32.xlu1 %v2738_v57  ;;  %v7354_v38 = vpop.f32.mrf.mxu1 }
0x10a5   :  { %v28_v38 = vld [vmem:[%s9439_s4 + $0x18] sm:$0xff] }
0x10a6   :  { %7417 = vmatpush3.msra.mxu0 %v28_v38 }
0x10a7   :  { %7432 = vmatprep.subr.mxu0 %v8049_v14 }
0x112d   :  { %v2740_v42 = vpop.xlane.xlu1 %2739 }
0x112e   :  { %v2747_v39 = vsub.f32 %v2724_v33, %v2740_v42 }
0x1130   :  { %v2750_v40 = vmul.f32 1.442695, %v2747_v39  ;;  %v2729_v51 = vpop.f32.mrf.mxu1 }
0x1131   :  { %v2741_v53 = vsel %vm403_vm3, %v2729_v51, -inf }
0x1132   :  { %7895 = vpow2.f32 %v2750_v40  ;;  %2742 = vmax.xlane.f32.xlu0 %v2741_v53  ;;  %v7357_v0 = vpop.f32.mrf.mxu1 }
0x1134   :  { %v2734_v47 = vpop.f32.mrf.mxu1 }
0x1135   :  { %v2744_v58 = vsel %vm403_vm3, %v2734_v47, -inf }
0x1136   :  { %2745 = vmax.xlane.f32.xlu0 %v2744_v58  ;;  %v7360_v63 = vpop.f32.mrf.mxu1 }
0x1138   :  { %v8765_v3 = vpop.f32.mrf.mxu0 }
0x113a   :  { %v7376_v52 = vpop.f32.mrf.mxu0 }
0x113c   :  { %v8767_v6 = vpop.f32.mrf.mxu0 }
0x113e   :  { %v7379_v54 = vpop.f32.mrf.mxu0 }
0x113f   :  { %v7896_v37 = vpop.eup %7895 }
0x1140   :  { %v8769_v1 = vpop.f32.mrf.mxu0  ;;  %v2756_v60 = vsel %vm403_vm3, %v7896_v37, 0.0 }
0x1141   :  { %2757 = vadd.xlane.f32.xlu0 %v2756_v60 }
0x1142   :  { %v7382_v4 = vpop.f32.mrf.mxu0 }
0x1144   :  { %v3160_v5 = vpop.f32.mrf.mxu0 }
0x1145   :  { %v3164_v7 = vsel %vm403_vm3, %v3160_v5, -inf }
0x1146   :  { %3165 = vmax.xlane.f32.xlu1 %v3164_v7  ;;  %v7406_v41 = vpop.f32.mrf.mxu0 }
0x11bb   :  { %v2743_v8 = vpop.xlane.xlu0 %2742 }
0x11bc   :  { %v2748_v9 = vsub.f32 %v2729_v51, %v2743_v8 }
0x11be   :  { %v2752_v55 = vmul.f32 1.442695, %v2748_v9 }
0x11bf   :  { %v2746_v24 = vpop.xlane.xlu0 %2745 }
0x11c0   :  { %7897 = vpow2.f32 %v2752_v55  ;;  %v2749_v62 = vsub.f32 %v2734_v47, %v2746_v24 }
0x11c2   :  { %v2754_v25 = vmul.f32 1.442695, %v2749_v62 }
0x11c4   :  { %7899 = vpow2.f32 %v2754_v25 }
0x11cd   :  { %v7898_v61 = vpop.eup %7897 }
0x11ce   :  { %v2759_v10 = vsel %vm403_vm3, %v7898_v61, 0.0 }
0x11cf   :  { %2760 = vadd.xlane.f32.xlu1 %v2759_v10  ;;  %v3166_v13 = vpop.xlane.xlu1 %3165 }
0x11d0   :  { %v3167_v56 = vsub.f32 %v3160_v5, %v3166_v13 }
0x11d1   :  { %v7900_v11 = vpop.eup %7899 }
0x11d2   :  { %v2762_v12 = vsel %vm403_vm3, %v7900_v11, 0.0  ;;  %v3168_v15 = vmul.f32 1.442695, %v3167_v56 }
0x11d3   :  { %2763 = vadd.xlane.f32.xlu0 %v2762_v12 }
0x11d4   :  { %7901 = vpow2.f32 %v3168_v15 }
0x11e0   :  { %2994 = vrot.lane.b32.xlu1 %v8200_v29, %s8063_s18 }
0x11e1   :  { %v7902_v59 = vpop.eup %7901 }
0x11e2   :  { %v3170_v16 = vsel %vm403_vm3, %v7902_v59, 0.0 }
0x11e9   :  { %2996 = vrot.lane.b32.xlu0 %v8194_v27, %s8063_s18  ;;  %v2758_v27 = vpop.xlane.xlu0 %2757 }
0x11ea   :  { %7903 = vrcp.f32 %v2758_v27 }
0x11ed   :  { %3557 = vrot.lane.b32.xlu0 %v8252_v44, %s8051_s29 }
0x11f1   :  { %3552 = vrot.lane.b32.xlu0 %v8182_v22, %s8052_s1 }
0x11f7   :  { %v7904_v28 = vpop.eup %7903 }
0x11f8   :  { %v2768_v26 = vmul.f32 %v7904_v28, %v7896_v37 }
0x1204   :  { %3171 = vadd.xlane.f32.xlu1 %v3170_v16 }
0x1215   :  { %2992 = vrot.lane.b32.xlu1 %v8184_v23, %s8063_s18 }
0x1219   :  { %3550 = vrot.lane.b32.xlu1 %v8240_v35, %s8052_s1 }
0x121d   :  { %3554 = vrot.lane.b32.xlu1 %v8180_v21, %s8052_s1 }
0x1258   :  { %v2761_v29 = vpop.xlane.xlu1 %2760 }
0x1259   :  { %7905 = vrcp.f32 %v2761_v29 }
0x125c   :  { %v2764_v2 = vpop.xlane.xlu0 %2763  ;;  %v2995_v19 = vpop.permute.xlu1 %2994 }
0x125d   :  { %7907 = vrcp.f32 %v2764_v2 }
0x1260   :  { %v2997_v18 = vpop.permute.xlu0 %2996 }
0x1261   :  { %7384 = vmatpush3.msra.mxu1 %v2997_v18 }
0x1262   :  { %7385 = vmatprep.subr.mxu1 %v8049_v14 }
0x1263   :  { %7386 = vmatpush3.msra.mxu1 %v2995_v19 }
0x1264   :  { %7387 = vmatprep.subr.mxu1 %v8049_v14  ;;  %v3558_v52 = vpop.permute.xlu0 %3557 }
0x1266   :  { %v7906_v20 = vpop.eup %7905 }
0x1267   :  { %v2769_v32 = vmul.f32 %v7906_v20, %v7898_v61 }
0x1268   :  { %v3553_v37 = vpop.permute.xlu0 %3552 }
0x126a   :  { %v7908_v34 = vpop.eup %7907 }
0x126b   :  { %v2770_v17 = vmul.f32 %v7908_v34, %v7900_v11 }
0x128d   :  { %v3172_v23 = vpop.xlane.xlu1 %3171 }
0x128e   :  { %7909 = vrcp.f32 %v3172_v23 }
0x1291   :  { %v2993_v30 = vpop.permute.xlu1 %2992 }
0x1292   :  { %7388 = vmatpush3.msra.mxu1 %v2993_v30 }
0x1293   :  { %7390 = vmatmul.mubr.msk.f32.vlgmr.msra.gmra.mxu1 %vm403_vm3, %v2768_v26  ;;  %7407 = vmatprep.subr.mxu1 %v8049_v14 }
0x1294   :  { %7408 = vmatpush3.msra.mxu1 %v2997_v18  ;;  %7392 = vmatprep.mubr.msk.f32.mxu1 %vm8050_vm1, %v8049_v14 }
0x1295   :  { %7409 = vmatprep.subr.mxu1 %v8049_v14  ;;  %v3551_v54 = vpop.permute.xlu1 %3550 }
0x1296   :  { %7410 = vmatpush3.msra.mxu1 %v2995_v19 }
0x1297   :  { %7393 = vmatmul.mubr.msk.f32.gmra.mxu1 %vm403_vm3, %v2769_v32  ;;  %7411 = vmatprep.subr.mxu1 %v8049_v14 }
0x1298   :  { %7412 = vmatpush3.msra.mxu1 %v2993_v30  ;;  %7395 = vmatprep.mubr.msk.f32.mxu1 %vm8050_vm1, %v8049_v14 }
0x1299   :  { %7427 = vmatprep.subr.mxu1 %v8049_v14 }
0x129b   :  { %v7910_v33 = vpop.eup %7909  ;;  %7396 = vmatmul.mubr.msk.f32.gmra.mxu1 %vm403_vm3, %v2770_v17 }
0x129c   :  { %v3174_v57 = vmul.f32 %v7910_v33, %v7902_v59  ;;  %7413 = vmatprep.mubr.msk.f32.mxu1 %vm8050_vm1, %v8049_v14 }
0x129f   :  { %7414 = vmatmul.mubr.msk.f32.vlgmr.msra.gmra.mxu1 %vm403_vm3, %v3174_v57 }
0x12a0   :  { %7429 = vmatprep.mubr.msk.f32.mxu1 %vm8050_vm1, %v8049_v14  ;;  %7428 = vmatpush3.msra.mxu1 %v28_v38 }
0x12a1   :  { %7447 = vmatprep.subr.mxu1 %v8049_v14 }
0x1353   :  { %v3076_v42 = vpop.f32.mrf.mxu1 }
0x1354   :  { %v3077_v39 = vadd.f32 %v3076_v42, %v8765_v3 }
0x1355   :  { %v7391_v40 = vpop.f32.mrf.mxu1 }
0x1356   :  { %7419 = vmatmul.mubr.msk.f32.vlgmr.msra.gmra.mxu0 %vm304_vm2, %v3077_v39 }
0x1357   :  { %7433 = vmatpush3.xpose.msk.msra.mxu0 %vm304_vm2, %v8254_v45  ;;  %v3081_v51 = vpop.f32.mrf.mxu1  ;;  %7421 = vmatprep.mubr.msk.f32.mxu0 %vm8050_vm1, %v8049_v14 }
0x1358   :  { %v3082_v53 = vadd.f32 %v3081_v51, %v8767_v6  ;;  %7434 = vmatprep.subr.mxu0 %v8049_v14 }
0x1359   :  { %v7394_v0 = vpop.f32.mrf.mxu1 }
0x135a   :  { %7422 = vmatmul.mubr.msk.f32.gmra.mxu0 %vm304_vm2, %v3082_v53 }
0x135b   :  { %7435 = vmatpush3.xpose.msk.msra.mxu0 %vm304_vm2, %v8256_v46  ;;  %v3086_v47 = vpop.f32.mrf.mxu1  ;;  %7424 = vmatprep.mubr.msk.f32.mxu0 %vm8050_vm1, %v8049_v14 }
0x135c   :  { %v3087_v58 = vadd.f32 %v3086_v47, %v8769_v1  ;;  %7436 = vmatprep.subr.mxu0 %v8049_v14  ;;  %v3555_v1 = vpop.permute.xlu1 %3554 }
0x135d   :  { %v7397_v63 = vpop.f32.mrf.mxu1 }
0x135e   :  { %7425 = vmatmul.mubr.msk.f32.gmra.mxu0 %vm304_vm2, %v3087_v58 }
0x135f   :  { %7437 = vmatpush3.xpose.msk.msra.mxu0 %vm304_vm2, %v8250_v43  ;;  %v3244_v3 = vpop.f32.mrf.mxu1  ;;  %7438 = vmatprep.mubr.msk.f32.mxu0 %vm8050_vm1, %v8049_v14 }
0x1360   :  { %7430 = vmatmul.mubr.msk.f32.vlgmr.msra.gmra.mxu1 %vm304_vm2, %v3244_v3  ;;  %7469 = vmatprep.subr.mxu0 %v8049_v14 }
0x1361   :  { %7448 = vmatpush3.xpose.msk.msra.mxu1 %vm304_vm2, %v3558_v52  ;;  %v7415_v6 = vpop.f32.mrf.mxu1  ;;  %7449 = vmatprep.mubr.msk.f32.mxu1 %vm8050_vm1, %v8049_v14 }
0x1362   :  { %7439 = vmatmul.mubr.msk.f32.vlgmr.msra.gmra.mxu0 %vm304_vm2, %v8240_v35  ;;  %7458 = vmatprep.subr.mxu1 %v8049_v14 }
0x1363   :  { %7441 = vmatprep.mubr.msk.f32.mxu0 %vm8050_vm1, %v8049_v14 }
0x1364   :  { %7450 = vmatmul.mubr.msk.f32.vlgmr.msra.gmra.mxu1 %vm304_vm2, %v3551_v54 }
0x1365   :  { %7452 = vmatprep.mubr.msk.f32.mxu1 %vm8050_vm1, %v8049_v14 }
0x1366   :  { %7442 = vmatmul.mubr.msk.f32.gmra.mxu0 %vm304_vm2, %v8182_v22 }
0x1367   :  { %7444 = vmatprep.mubr.msk.f32.mxu0 %vm8050_vm1, %v8049_v14 }
0x1368   :  { %7453 = vmatmul.mubr.msk.f32.gmra.mxu1 %vm304_vm2, %v3553_v37 }
0x1369   :  { %7455 = vmatprep.mubr.msk.f32.mxu1 %vm8050_vm1, %v8049_v14 }
0x136a   :  { %7445 = vmatmul.mubr.msk.f32.gmra.mxu0 %vm304_vm2, %v8180_v21 }
0x136b   :  { %7475 = vmatprep.mubr.msk.f32.mxu0 %vm8050_vm1, %v8049_v14 }
0x136c   :  { %7456 = vmatmul.mubr.msk.f32.gmra.mxu1 %vm304_vm2, %v3555_v1 }
0x136d   :  { %7460 = vmatprep.mubr.msk.f32.mxu1 %vm8050_vm1, %v8049_v14 }
0x1416   :  { %v3323_v60 = vpop.f32.mrf.mxu0 }
0x1417   :  { %v3337_v4 = vadd.f32 %v3323_v60, %v8692_v31 }
0x1418   :  { %v7420_v5 = vpop.f32.mrf.mxu0 }
0x1419   :  { %3416 = vst.msk [vmem:[#allocation2 + $0x8] sm:$0xff] %vm3414_vm4, %v3337_v4 }
0x141a   :  { %v3328_v7 = vpop.f32.mrf.mxu0 }
0x141b   :  { %v3338_v41 = vadd.f32 %v3328_v7, %v8696_v49 }
0x141c   :  { %v7423_v8 = vpop.f32.mrf.mxu0 }
0x141d   :  { %3417 = vst.msk [vmem:[#allocation2 + $0x10] sm:$0xff] %vm3414_vm4, %v3338_v41 }
0x141e   :  { %v3333_v9 = vpop.f32.mrf.mxu0 }
0x141f   :  { %v3339_v55 = vadd.f32 %v3333_v9, %v8702_v48 }
0x1420   :  { %v7426_v24 = vpop.f32.mrf.mxu0  ;;  %v3409_v62 = vpop.f32.mrf.mxu1 }
0x1421   :  { %3418 = vst.msk [vmem:[#allocation2 + $0x18] sm:$0xff] %vm3414_vm4, %v3339_v55  ;;  %v3413_v25 = vadd.f32 %v3409_v62, %v8704_v50 }
0x1422   :  { %v7431_v61 = vpop.f32.mrf.mxu1  ;;  %v8867_v31 = vpop.f32.mrf.mxu0 }
0x1423   :  { %3415 = vst.msk [vmem:[#allocation2] sm:$0xff] %vm3414_vm4, %v3413_v25  ;;  %v3517_v40 = vsel %vm403_vm3, %v8867_v31, -inf }
0x1424   :  { %v7440_v10 = vpop.f32.mrf.mxu0  ;;  %v3633_v11 = vpop.f32.mrf.mxu1 }
0x1425   :  { %v3647_v49 = vsel %vm304_vm2, %v3633_v11, -inf }
0x1426   :  { %3648 = vmax.xlane.f32.xlu0 %v3647_v49  ;;  %v8871_v12 = vpop.f32.mrf.mxu0  ;;  %v7451_v13 = vpop.f32.mrf.mxu1 }
0x1427   :  { %v3520_v51 = vsel %vm403_vm3, %v8871_v12, -inf }
0x1428   :  { %v7443_v48 = vpop.f32.mrf.mxu0  ;;  %v3638_v56 = vpop.f32.mrf.mxu1 }
0x1429   :  { %v3650_v15 = vsel %vm304_vm2, %v3638_v56, -inf }
0x142a   :  { %3651 = vmax.xlane.f32.xlu1 %v3650_v15  ;;  %v8874_v59 = vpop.f32.mrf.mxu0  ;;  %v7454_v50 = vpop.f32.mrf.mxu1 }
0x142b   :  { %v3523_v53 = vsel %vm403_vm3, %v8874_v59, -inf }
0x142c   :  { %v7446_v16 = vpop.f32.mrf.mxu0  ;;  %v3643_v27 = vpop.f32.mrf.mxu1 }
0x142d   :  { %v3653_v29 = vsel %vm304_vm2, %v3643_v27, -inf }
0x142e   :  { %3654 = vmax.xlane.f32.xlu0 %v3653_v29  ;;  %v7457_v2 = vpop.f32.mrf.mxu1 }
0x14af   :  { %v3649_v18 = vpop.xlane.xlu0 %3648 }
0x14b0   :  { %v3656_v19 = vsub.f32 %v3633_v11, %v3649_v18 }
0x14b2   :  { %v3659_v23 = vmul.f32 1.442695, %v3656_v19 }
0x14b3   :  { %v3652_v28 = vpop.xlane.xlu1 %3651 }
0x14b4   :  { %7911 = vpow2.f32 %v3659_v23  ;;  %v3657_v26 = vsub.f32 %v3638_v56, %v3652_v28 }
0x14b6   :  { %v3661_v30 = vmul.f32 1.442695, %v3657_v26 }
0x14b7   :  { %v3655_v20 = vpop.xlane.xlu0 %3654 }
0x14b8   :  { %7913 = vpow2.f32 %v3661_v30  ;;  %v3658_v32 = vsub.f32 %v3643_v27, %v3655_v20 }
0x14ba   :  { %v3663_v34 = vmul.f32 1.442695, %v3658_v32 }
0x14bc   :  { %7915 = vpow2.f32 %v3663_v34 }
0x14c1   :  { %v7912_v17 = vpop.eup %7911 }
0x14c2   :  { %v3665_v33 = vsel %vm304_vm2, %v7912_v17, 0.0 }
0x14c3   :  { %3666 = vadd.xlane.f32.xlu0 %v3665_v33 }
0x14c5   :  { %v7914_v57 = vpop.eup %7913 }
0x14c6   :  { %v3668_v38 = vsel %vm304_vm2, %v7914_v57, 0.0 }
0x14c7   :  { %3669 = vadd.xlane.f32.xlu1 %v3668_v38 }
0x14c9   :  { %v7916_v42 = vpop.eup %7915 }
0x14ca   :  { %v3671_v39 = vsel %vm304_vm2, %v7916_v42, 0.0 }
0x14cb   :  { %3672 = vadd.xlane.f32.xlu0 %v3671_v39 }
0x14d8   :  { %3680 = vrot.lane.b32.xlu1 %v8252_v44, %s8053_s30 }
0x14e1   :  { %3871 = vrot.lane.b32.xlu0 %v8242_v36, %s8051_s29 }
0x14fc   :  { %3518 = vmax.xlane.f32.xlu1 %v3517_v40 }
0x1500   :  { %3521 = vmax.xlane.f32.xlu0 %v3520_v51  ;;  %3524 = vmax.xlane.f32.xlu1 %v3523_v53 }
0x154c   :  { %v3667_v0 = vpop.xlane.xlu0 %3666 }
0x154d   :  { %7917 = vrcp.f32 %v3667_v0 }
0x1550   :  { %v3670_v47 = vpop.xlane.xlu1 %3669 }
0x1551   :  { %7919 = vrcp.f32 %v3670_v47 }
0x1554   :  { %v3673_v58 = vpop.xlane.xlu0 %3672  ;;  %v3681_v63 = vpop.permute.xlu1 %3680 }
0x1555   :  { %7921 = vrcp.f32 %v3673_v58  ;;  %7459 = vmatpush3.msra.mxu1 %v3681_v63 }
0x1556   :  { %7484 = vmatprep.subr.mxu1 %v8049_v14 }
0x1558   :  { %v3872_v60 = vpop.permute.xlu0 %3871 }
0x155a   :  { %v7918_v3 = vpop.eup %7917 }
0x155b   :  { %v3677_v52 = vmul.f32 %v7918_v3, %v7912_v17 }
0x155d   :  { %7461 = vmatmul.mubr.msk.f32.vlgmr.msra.gmra.mxu1 %vm304_vm2, %v3677_v52 }
0x155e   :  { %v7920_v6 = vpop.eup %7919  ;;  %7485 = vmatpush3.xpose.msk.msra.mxu1 %vm304_vm2, %v8254_v45  ;;  %7463 = vmatprep.mubr.msk.f32.mxu1 %vm8050_vm1, %v8049_v14 }
0x155f   :  { %7486 = vmatprep.subr.mxu1 %v8049_v14  ;;  %v3678_v54 = vmul.f32 %v7920_v6, %v7914_v57 }
0x1561   :  { %7464 = vmatmul.mubr.msk.f32.gmra.mxu1 %vm304_vm2, %v3678_v54 }
0x1562   :  { %v7922_v37 = vpop.eup %7921  ;;  %7487 = vmatpush3.xpose.msk.msra.mxu1 %vm304_vm2, %v8256_v46  ;;  %7466 = vmatprep.mubr.msk.f32.mxu1 %vm8050_vm1, %v8049_v14 }
0x1563   :  { %7488 = vmatprep.subr.mxu1 %v8049_v14  ;;  %v3679_v1 = vmul.f32 %v7922_v37, %v7916_v42 }
0x1565   :  { %7467 = vmatmul.mubr.msk.f32.gmra.mxu1 %vm304_vm2, %v3679_v1 }
0x1566   :  { %7489 = vmatpush3.xpose.msk.msra.mxu1 %vm304_vm2, %v8250_v43  ;;  %7490 = vmatprep.mubr.msk.f32.mxu1 %vm8050_vm1, %v8049_v14 }
0x1567   :  { %7502 = vmatprep.subr.mxu1 %v8049_v14 }
0x1569   :  { %7491 = vmatmul.mubr.msk.f32.vlgmr.msra.gmra.mxu1 %vm304_vm2, %v3872_v60 }
0x156a   :  { %7508 = vmatprep.mubr.msk.f32.mxu1 %vm8050_vm1, %v8049_v14 }
0x1585   :  { %v3519_v4 = vpop.xlane.xlu1 %3518 }
0x1586   :  { %v3526_v5 = vsub.f32 %v8867_v31, %v3519_v4 }
0x1588   :  { %v3529_v7 = vmul.f32 1.442695, %v3526_v5 }
0x1589   :  { %v3525_v41 = vpop.xlane.xlu1 %3524  ;;  %v3522_v61 = vpop.xlane.xlu0 %3521 }
0x158a   :  { %7923 = vpow2.f32 %v3529_v7  ;;  %v3528_v8 = vsub.f32 %v8874_v59, %v3525_v41  ;;  %v3527_v31 = vsub.f32 %v8871_v12, %v3522_v61 }
0x158c   :  { %v3533_v9 = vmul.f32 1.442695, %v3528_v8  ;;  %v3531_v10 = vmul.f32 1.442695, %v3527_v31 }
0x158e   :  { %7925 = vpow2.f32 %v3533_v9 }
0x158f   :  { %7927 = vpow2.f32 %v3531_v10 }
0x1597   :  { %v7924_v55 = vpop.eup %7923 }
0x1598   :  { %v3535_v24 = vsel %vm403_vm3, %v7924_v55, 0.0 }
0x1599   :  { %3536 = vadd.xlane.f32.xlu1 %v3535_v24 }
0x159b   :  { %v8915_v62 = vpop.eup %7925 }
0x159c   :  { %v3541_v25 = vsel %vm403_vm3, %v8915_v62, 0.0  ;;  %v7928_v29 = vpop.eup %7927 }
0x159d   :  { %3542 = vadd.xlane.f32.xlu1 %v3541_v25  ;;  %v3538_v12 = vsel %vm403_vm3, %v7928_v29, 0.0 }
0x15ae   :  { %3776 = vrot.lane.b32.xlu1 %v8254_v45, %s8052_s1 }
0x15b2   :  { %3772 = vrot.lane.b32.xlu1 %v8250_v43, %s8052_s1 }
0x15b6   :  { %4172 = vrot.lane.b32.xlu1 %v8252_v44, %s8054_s6 }
0x15ba   :  { %4168 = vrot.lane.b32.xlu1 %v8182_v22, %s8055_s7 }
0x161d   :  { %v8928_v11 = vpop.f32.mrf.mxu1 }
0x161f   :  { %v7462_v49 = vpop.f32.mrf.mxu1 }
0x1621   :  { %v8930_v13 = vpop.f32.mrf.mxu1 }
0x1622   :  { %v3537_v48 = vpop.xlane.xlu1 %3536 }
0x1623   :  { %v7465_v56 = vpop.f32.mrf.mxu1 }
0x1625   :  { %v8932_v15 = vpop.f32.mrf.mxu1 }
0x1626   :  { %v3543_v59 = vpop.xlane.xlu1 %3542 }
0x1627   :  { %v7468_v50 = vpop.f32.mrf.mxu1 }
0x1629   :  { %v3941_v16 = vpop.f32.mrf.mxu1 }
0x162a   :  { %v3945_v27 = vsel %vm403_vm3, %v3941_v16, -inf  ;;  %v3777_v2 = vpop.permute.xlu1 %3776 }
0x162b   :  { %v7492_v18 = vpop.f32.mrf.mxu1  ;;  %3946 = vmax.xlane.f32.xlu0 %v3945_v27  ;;  %7470 = vmatpush3.msra.mxu0 %v3777_v2 }
0x162c   :  { %7471 = vmatprep.subr.mxu0 %v8049_v14 }
0x162e   :  { %v3773_v57 = vpop.permute.xlu1 %3772 }
0x162f   :  { %3539 = vadd.xlane.f32.xlu0 %v3538_v12 }
0x1632   :  { %v4173_v0 = vpop.permute.xlu1 %4172 }
0x1636   :  { %v4169_v58 = vpop.permute.xlu1 %4168 }
0x16b4   :  { %v3947_v19 = vpop.xlane.xlu0 %3946 }
0x16b5   :  { %v3948_v23 = vsub.f32 %v3941_v16, %v3947_v19 }
0x16b7   :  { %v3949_v28 = vmul.f32 1.442695, %v3948_v23 }
0x16b8   :  { %v3540_v20 = vpop.xlane.xlu0 %3539 }
0x16b9   :  { %7929 = vpow2.f32 %v3949_v28 }
0x16ba   :  { %7931 = vrcp.f32 %v3537_v48 }
0x16bb   :  { %7933 = vrcp.f32 %v3540_v20 }
0x16bc   :  { %7935 = vrcp.f32 %v3543_v59 }
0x16c6   :  { %v7930_v26 = vpop.eup %7929 }
0x16c7   :  { %v3951_v30 = vsel %vm403_vm3, %v7930_v26, 0.0  ;;  %v7932_v34 = vpop.eup %7931 }
0x16c8   :  { %3952 = vadd.xlane.f32.xlu0 %v3951_v30  ;;  %v3547_v33 = vmul.f32 %v7932_v34, %v7924_v55  ;;  %v7934_v38 = vpop.eup %7933 }
0x16c9   :  { %v3548_v42 = vmul.f32 %v7934_v38, %v7928_v29  ;;  %v7936_v39 = vpop.eup %7935 }
0x16ca   :  { %v3549_v40 = vmul.f32 %v7936_v39, %v8915_v62 }
0x16de   :  { %3774 = vrot.lane.b32.xlu0 %v8256_v46, %s8052_s1 }
0x16e2   :  { %4166 = vrot.lane.b32.xlu0 %v8240_v35, %s8055_s7 }
0x16e6   :  { %4170 = vrot.lane.b32.xlu0 %v8180_v21, %s8055_s7 }
0x1751   :  { %v3953_v32 = vpop.xlane.xlu0 %3952 }
0x1752   :  { %7937 = vrcp.f32 %v3953_v32 }
0x1755   :  { %v3775_v17 = vpop.permute.xlu0 %3774 }
0x1756   :  { %7472 = vmatpush3.msra.mxu0 %v3775_v17 }
0x1757   :  { %7473 = vmatprep.subr.mxu0 %v8049_v14 }
0x1758   :  { %7474 = vmatpush3.msra.mxu0 %v3773_v57 }
0x1759   :  { %7476 = vmatmul.mubr.msk.f32.vlgmr.msra.gmra.mxu0 %vm403_vm3, %v3547_v33  ;;  %7493 = vmatprep.subr.mxu0 %v8049_v14  ;;  %v4167_v47 = vpop.permute.xlu0 %4166 }
0x175a   :  { %7494 = vmatpush3.msra.mxu0 %v3777_v2  ;;  %7478 = vmatprep.mubr.msk.f32.mxu0 %vm8050_vm1, %v8049_v14 }
0x175b   :  { %7495 = vmatprep.subr.mxu0 %v8049_v14 }
0x175c   :  { %7496 = vmatpush3.msra.mxu0 %v3775_v17 }
0x175d   :  { %7479 = vmatmul.mubr.msk.f32.gmra.mxu0 %vm403_vm3, %v3548_v42  ;;  %7497 = vmatprep.subr.mxu0 %v8049_v14  ;;  %v4171_v63 = vpop.permute.xlu0 %4170 }
0x175e   :  { %7498 = vmatpush3.msra.mxu0 %v3773_v57  ;;  %7481 = vmatprep.mubr.msk.f32.mxu0 %vm8050_vm1, %v8049_v14 }
0x175f   :  { %7517 = vmatprep.subr.mxu0 %v8049_v14  ;;  %v7938_v51 = vpop.eup %7937 }
0x1760   :  { %v3955_v53 = vmul.f32 %v7938_v51, %v7930_v26 }
0x1761   :  { %7482 = vmatmul.mubr.msk.f32.gmra.mxu0 %vm403_vm3, %v3549_v40 }
0x1762   :  { %7499 = vmatprep.mubr.msk.f32.mxu0 %vm8050_vm1, %v8049_v14 }
0x1765   :  { %7500 = vmatmul.mubr.msk.f32.vlgmr.msra.gmra.mxu0 %vm403_vm3, %v3955_v53 }
0x1766   :  { %7518 = vmatpush3.xpose.msk.msra.mxu0 %vm304_vm2, %v4173_v0  ;;  %7519 = vmatprep.mubr.msk.f32.mxu0 %vm8050_vm1, %v8049_v14 }
0x1767   :  { %7528 = vmatprep.subr.mxu0 %v8049_v14 }
0x1769   :  { %7520 = vmatmul.mubr.msk.f32.vlgmr.msra.gmra.mxu0 %vm304_vm2, %v4167_v47  ;;  %v9038_v47 = vld [vmem:[%s9439_s4 + $0x8] sm:$0xff] }
0x176a   :  { %7522 = vmatprep.mubr.msk.f32.mxu0 %vm8050_vm1, %v8049_v14 }
0x176d   :  { %7523 = vmatmul.mubr.msk.f32.gmra.mxu0 %vm304_vm2, %v4169_v58 }
0x176e   :  { %7525 = vmatprep.mubr.msk.f32.mxu0 %vm8050_vm1, %v8049_v14 }
0x1771   :  { %7526 = vmatmul.mubr.msk.f32.gmra.mxu0 %vm304_vm2, %v4171_v63 }
0x1772   :  { %7530 = vmatprep.mubr.msk.f32.mxu0 %vm8050_vm1, %v8049_v14 }
0x1819   :  { %v8973_v3 = vpop.f32.mrf.mxu0 }
0x181b   :  { %v7477_v52 = vpop.f32.mrf.mxu0 }
0x181d   :  { %v8975_v6 = vpop.f32.mrf.mxu0 }
0x181f   :  { %v7480_v54 = vpop.f32.mrf.mxu0 }
0x1821   :  { %v8977_v37 = vpop.f32.mrf.mxu0 }
0x1823   :  { %v7483_v1 = vpop.f32.mrf.mxu0 }
0x1825   :  { %v8979_v60 = vpop.f32.mrf.mxu0 }
0x1827   :  { %v7501_v4 = vpop.f32.mrf.mxu0 }
0x1829   :  { %v4248_v5 = vpop.f32.mrf.mxu0 }
0x182a   :  { %v4262_v7 = vsel %vm304_vm2, %v4248_v5, -inf }
0x182b   :  { %4263 = vmax.xlane.f32.xlu1 %v4262_v7  ;;  %v7521_v41 = vpop.f32.mrf.mxu0 }
0x182d   :  { %v4253_v8 = vpop.f32.mrf.mxu0 }
0x182e   :  { %v4265_v9 = vsel %vm304_vm2, %v4253_v8, -inf }
0x182f   :  { %4266 = vmax.xlane.f32.xlu0 %v4265_v9  ;;  %v7524_v55 = vpop.f32.mrf.mxu0 }
0x1831   :  { %v4258_v24 = vpop.f32.mrf.mxu0 }
0x1832   :  { %v4268_v62 = vsel %vm304_vm2, %v4258_v24, -inf }
0x1833   :  { %4269 = vmax.xlane.f32.xlu0 %v4268_v62  ;;  %v7527_v25 = vpop.f32.mrf.mxu0 }
0x183c   :  { %4037 = vrot.lane.b32.xlu1 %v8256_v46, %s8056_s8 }
0x1840   :  { %4035 = vrot.lane.b32.xlu1 %v8250_v43, %s8056_s8 }
0x1844   :  { %4029 = vrot.lane.b32.xlu1 %v8240_v35, %s8056_s8 }
0x1849   :  { %4039 = vrot.lane.b32.xlu0 %v8254_v45, %s8056_s8 }
0x184d   :  { %4295 = vrot.lane.b32.xlu0 %v8252_v44, %s8057_s9 }
0x18b4   :  { %v4264_v61 = vpop.xlane.xlu1 %4263 }
0x18b5   :  { %v4271_v31 = vsub.f32 %v4248_v5, %v4264_v61 }
0x18b7   :  { %v4274_v10 = vmul.f32 1.442695, %v4271_v31 }
0x18b8   :  { %v4267_v49 = vpop.xlane.xlu0 %4266  ;;  %v4038_v16 = vpop.permute.xlu1 %4037 }
0x18b9   :  { %7939 = vpow2.f32 %v4274_v10  ;;  %v4272_v48 = vsub.f32 %v4253_v8, %v4267_v49 }
0x18bb   :  { %v4276_v56 = vmul.f32 1.442695, %v4272_v48 }
0x18bc   :  { %v4270_v59 = vpop.xlane.xlu0 %4269  ;;  %v4036_v18 = vpop.permute.xlu1 %4035 }
0x18bd   :  { %7941 = vpow2.f32 %v4276_v56  ;;  %v4273_v50 = vsub.f32 %v4258_v24, %v4270_v59 }
0x18bf   :  { %v4278_v27 = vmul.f32 1.442695, %v4273_v50 }
0x18c0   :  { %v4040_v29 = vpop.permute.xlu0 %4039  ;;  %v4030_v28 = vpop.permute.xlu1 %4029 }
0x18c1   :  { %7943 = vpow2.f32 %v4278_v27  ;;  %7503 = vmatpush3.xpose.msk.msra.mxu1 %vm304_vm2, %v4040_v29 }
0x18c2   :  { %7504 = vmatprep.subr.mxu1 %v8049_v14 }
0x18c4   :  { %v4296_v2 = vpop.permute.xlu0 %4295 }
0x18c5   :  { %7505 = vmatpush3.xpose.msk.msra.mxu1 %vm304_vm2, %v4038_v16  ;;  %7529 = vmatpush3.msra.mxu0 %v4296_v2 }
0x18c6   :  { %v7940_v12 = vpop.eup %7939  ;;  %7506 = vmatprep.subr.mxu1 %v8049_v14  ;;  %7554 = vmatprep.subr.mxu0 %v8049_v14 }
0x18c7   :  { %v4280_v19 = vsel %vm304_vm2, %v7940_v12, 0.0 }
0x18c8   :  { %4281 = vadd.xlane.f32.xlu1 %v4280_v19 }
0x18c9   :  { %7507 = vmatpush3.xpose.msk.msra.mxu1 %vm304_vm2, %v4036_v18 }
0x18ca   :  { %v7942_v23 = vpop.eup %7941  ;;  %7539 = vmatprep.subr.mxu1 %v8049_v14 }
0x18cb   :  { %v4283_v26 = vsel %vm304_vm2, %v7942_v23, 0.0 }
0x18cc   :  { %4284 = vadd.xlane.f32.xlu0 %v4283_v26  ;;  %7509 = vmatmul.mubr.msk.f32.vlgmr.msra.gmra.mxu1 %vm304_vm2, %v4030_v28 }
0x18cd   :  { %7511 = vmatprep.mubr.msk.f32.mxu1 %vm8050_vm1, %v8049_v14 }
0x18ce   :  { %v7944_v30 = vpop.eup %7943 }
0x18cf   :  { %v4286_v20 = vsel %vm304_vm2, %v7944_v30, 0.0 }
0x18d0   :  { %4287 = vadd.xlane.f32.xlu1 %v4286_v20 }
0x18e1   :  { %4033 = vrot.lane.b32.xlu1 %v8180_v21, %s8056_s8 }
0x18e2   :  { %4031 = vrot.lane.b32.xlu0 %v8182_v22, %s8056_s8 }
0x18e6   :  { %4485 = vrot.lane.b32.xlu0 %v8242_v36, %s8054_s6 }
0x1951   :  { %v4282_v32 = vpop.xlane.xlu1 %4281 }
0x1952   :  { %7945 = vrcp.f32 %v4282_v32 }
0x1955   :  { %v4285_v34 = vpop.xlane.xlu0 %4284 }
0x1956   :  { %7947 = vrcp.f32 %v4285_v34 }
0x1959   :  { %v4288_v17 = vpop.xlane.xlu1 %4287  ;;  %v4032_v33 = vpop.permute.xlu0 %4031 }
0x195a   :  { %7949 = vrcp.f32 %v4288_v17  ;;  %7512 = vmatmul.mubr.msk.f32.gmra.mxu1 %vm304_vm2, %v4032_v33 }
0x195b   :  { %7514 = vmatprep.mubr.msk.f32.mxu1 %vm8050_vm1, %v8049_v14 }
0x195d   :  { %v4034_v57 = vpop.permute.xlu1 %4033  ;;  %v4486_v0 = vpop.permute.xlu0 %4485 }
0x195e   :  { %7515 = vmatmul.mubr.msk.f32.gmra.mxu1 %vm304_vm2, %v4034_v57 }
0x195f   :  { %v7946_v38 = vpop.eup %7945  ;;  %7545 = vmatprep.mubr.msk.f32.mxu1 %vm8050_vm1, %v8049_v14 }
0x1960   :  { %v4292_v42 = vmul.f32 %v7946_v38, %v7940_v12 }
0x1962   :  { %7531 = vmatmul.mubr.msk.f32.vlgmr.msra.gmra.mxu0 %vm304_vm2, %v4292_v42 }
0x1963   :  { %v7948_v39 = vpop.eup %7947  ;;  %7555 = vmatpush3.xpose.msk.msra.mxu0 %vm304_vm2, %v4040_v29  ;;  %7533 = vmatprep.mubr.msk.f32.mxu0 %vm8050_vm1, %v8049_v14 }
0x1964   :  { %7556 = vmatprep.subr.mxu0 %v8049_v14  ;;  %v4293_v40 = vmul.f32 %v7948_v39, %v7942_v23 }
0x1966   :  { %7534 = vmatmul.mubr.msk.f32.gmra.mxu0 %vm304_vm2, %v4293_v40 }
0x1967   :  { %v7950_v51 = vpop.eup %7949  ;;  %7557 = vmatpush3.xpose.msk.msra.mxu0 %vm304_vm2, %v4038_v16  ;;  %7536 = vmatprep.mubr.msk.f32.mxu0 %vm8050_vm1, %v8049_v14 }
0x1968   :  { %7558 = vmatprep.subr.mxu0 %v8049_v14  ;;  %v4294_v53 = vmul.f32 %v7950_v51, %v7944_v30 }
0x196a   :  { %7537 = vmatmul.mubr.msk.f32.gmra.mxu0 %vm304_vm2, %v4294_v53 }
0x196b   :  { %7559 = vmatpush3.xpose.msk.msra.mxu0 %vm304_vm2, %v4036_v18  ;;  %7560 = vmatprep.mubr.msk.f32.mxu0 %vm8050_vm1, %v8049_v14 }
0x196c   :  { %7572 = vmatprep.subr.mxu0 %v8049_v14 }
0x196e   :  { %7561 = vmatmul.mubr.msk.f32.vlgmr.msra.gmra.mxu0 %vm304_vm2, %v4486_v0 }
0x196f   :  { %7573 = vmatpush3.msra.mxu0 %v9038_v47  ;;  %7574 = vmatprep.mubr.msk.f32.mxu0 %vm8050_vm1, %v8049_v14 }
0x1970   :  { %7594 = vmatprep.subr.mxu0 %v8049_v14 }
0x198c   :  { %v4119_v58 = vpop.f32.mrf.mxu1 }
0x198d   :  { %v4133_v63 = vsel %vm403_vm3, %v4119_v58, -inf }
0x198e   :  { %4134 = vmax.xlane.f32.xlu1 %v4133_v63  ;;  %v7510_v52 = vpop.f32.mrf.mxu1 }
0x1a17   :  { %v4135_v54 = vpop.xlane.xlu1 %4134 }
0x1a18   :  { %v4142_v1 = vsub.f32 %v4119_v58, %v4135_v54 }
0x1a1a   :  { %v4145_v4 = vmul.f32 1.442695, %v4142_v1  ;;  %v4124_v5 = vpop.f32.mrf.mxu1 }
0x1a1b   :  { %v4136_v7 = vsel %vm403_vm3, %v4124_v5, -inf }
0x1a1c   :  { %7951 = vpow2.f32 %v4145_v4  ;;  %4137 = vmax.xlane.f32.xlu0 %v4136_v7  ;;  %v7513_v41 = vpop.f32.mrf.mxu1  ;;  %v3857_v7 = vadd.f32 %v8973_v3, %v8928_v11  ;;  %v3867_v11 = vadd.f32 %v8977_v37, %v8932_v15 }
0x1a1d   :  { %v3862_v41 = vadd.f32 %v8975_v6, %v8930_v13 }
0x1a1e   :  { %v4129_v8 = vpop.f32.mrf.mxu1 }
0x1a1f   :  { %v4139_v9 = vsel %vm403_vm3, %v4129_v8, -inf }
0x1a20   :  { %4140 = vmax.xlane.f32.xlu0 %v4139_v9  ;;  %v7516_v55 = vpop.f32.mrf.mxu1 }
0x1a22   :  { %v9047_v24 = vpop.f32.mrf.mxu0 }
0x1a24   :  { %v7532_v62 = vpop.f32.mrf.mxu0 }
0x1a26   :  { %v9049_v25 = vpop.f32.mrf.mxu0 }
0x1a28   :  { %v7535_v61 = vpop.f32.mrf.mxu0 }
0x1a29   :  { %v7952_v31 = vpop.eup %7951 }
0x1a2a   :  { %v9051_v10 = vpop.f32.mrf.mxu0  ;;  %v4151_v49 = vsel %vm403_vm3, %v7952_v31, 0.0 }
0x1a2b   :  { %4152 = vadd.xlane.f32.xlu0 %v4151_v49 }
0x1a2c   :  { %v7538_v48 = vpop.f32.mrf.mxu0 }
0x1a2e   :  { %v4555_v56 = vpop.f32.mrf.mxu0 }
0x1a2f   :  { %v4559_v59 = vsel %vm403_vm3, %v4555_v56, -inf }
0x1a30   :  { %4560 = vmax.xlane.f32.xlu1 %v4559_v59  ;;  %v7562_v50 = vpop.f32.mrf.mxu0 }
0x1aa5   :  { %v4138_v16 = vpop.xlane.xlu0 %4137 }
0x1aa6   :  { %v4143_v27 = vsub.f32 %v4124_v5, %v4138_v16  ;;  %v8024_v5 = vld [vmem:[%s9439_s4] sm:$0xff] }
0x1aa8   :  { %v4147_v29 = vmul.f32 1.442695, %v4143_v27 }
0x1aa9   :  { %v4141_v2 = vpop.xlane.xlu0 %4140 }
0x1aaa   :  { %7953 = vpow2.f32 %v4147_v29  ;;  %v4144_v18 = vsub.f32 %v4129_v8, %v4141_v2 }
0x1aac   :  { %v4149_v12 = vmul.f32 1.442695, %v4144_v18 }
0x1aae   :  { %7955 = vpow2.f32 %v4149_v12 }
0x1ab4   :  { %v4153_v33 = vpop.xlane.xlu0 %4152 }
0x1ab7   :  { %v7954_v19 = vpop.eup %7953 }
0x1ab8   :  { %v4154_v23 = vsel %vm403_vm3, %v7954_v19, 0.0 }
0x1ab9   :  { %4155 = vadd.xlane.f32.xlu1 %v4154_v23  ;;  %v4561_v30 = vpop.xlane.xlu1 %4560 }
0x1aba   :  { %v4562_v20 = vsub.f32 %v4555_v56, %v4561_v30 }
0x1abb   :  { %v7956_v28 = vpop.eup %7955 }
0x1abc   :  { %v4157_v26 = vsel %vm403_vm3, %v7956_v28, 0.0  ;;  %v4563_v32 = vmul.f32 1.442695, %v4562_v20 }
0x1abd   :  { %4158 = vadd.xlane.f32.xlu0 %v4157_v26 }
0x1abe   :  { %7957 = vpow2.f32 %v4563_v32 }
0x1abf   :  { %7959 = vrcp.f32 %v4153_v33 }
0x1aca   :  { %4389 = vrot.lane.b32.xlu1 %v8256_v46, %s8055_s7 }
0x1acb   :  { %v7958_v34 = vpop.eup %7957 }
0x1acc   :  { %v4565_v17 = vsel %vm403_vm3, %v7958_v34, 0.0  ;;  %v7960_v51 = vpop.eup %7959 }
0x1acd   :  { %v4163_v53 = vmul.f32 %v7960_v51, %v7952_v31 }
0x1ad3   :  { %4391 = vrot.lane.b32.xlu0 %v8254_v45, %s8055_s7 }
0x1ad7   :  { %5110 = vrot.lane.b32.xlu0 %v8252_v44, %s8059_s11 }
0x1adb   :  { %5106 = vrot.lane.b32.xlu0 %v8182_v22, %s8058_s10 }
0x1aee   :  { %4566 = vadd.xlane.f32.xlu1 %v4565_v17 }
0x1aff   :  { %4387 = vrot.lane.b32.xlu1 %v8250_v43, %s8055_s7 }
0x1b03   :  { %5104 = vrot.lane.b32.xlu1 %v8240_v35, %s8058_s10 }
0x1b07   :  { %5108 = vrot.lane.b32.xlu1 %v8180_v21, %s8058_s10 }
0x1b42   :  { %v4156_v57 = vpop.xlane.xlu1 %4155 }
0x1b43   :  { %7961 = vrcp.f32 %v4156_v57 }
0x1b46   :  { %v4159_v38 = vpop.xlane.xlu0 %4158  ;;  %v4390_v39 = vpop.permute.xlu1 %4389 }
0x1b47   :  { %7963 = vrcp.f32 %v4159_v38 }
0x1b4a   :  { %v4392_v42 = vpop.permute.xlu0 %4391 }
0x1b4b   :  { %7540 = vmatpush3.msra.mxu1 %v4392_v42 }
0x1b4c   :  { %7541 = vmatprep.subr.mxu1 %v8049_v14 }
0x1b4d   :  { %7542 = vmatpush3.msra.mxu1 %v4390_v39 }
0x1b4e   :  { %7543 = vmatprep.subr.mxu1 %v8049_v14  ;;  %v5111_v3 = vpop.permute.xlu0 %5110 }
0x1b50   :  { %v7962_v58 = vpop.eup %7961 }
0x1b51   :  { %v4164_v63 = vmul.f32 %v7962_v58, %v7954_v19 }
0x1b52   :  { %v5107_v15 = vpop.permute.xlu0 %5106 }
0x1b54   :  { %v7964_v52 = vpop.eup %7963 }
0x1b55   :  { %v4165_v54 = vmul.f32 %v7964_v52, %v7956_v28 }
0x1b77   :  { %v4567_v40 = vpop.xlane.xlu1 %4566 }
0x1b78   :  { %7965 = vrcp.f32 %v4567_v40 }
0x1b7b   :  { %v4388_v0 = vpop.permute.xlu1 %4387 }
0x1b7c   :  { %7544 = vmatpush3.msra.mxu1 %v4388_v0 }
0x1b7d   :  { %7546 = vmatmul.mubr.msk.f32.vlgmr.msra.gmra.mxu1 %vm403_vm3, %v4163_v53  ;;  %7563 = vmatprep.subr.mxu1 %v8049_v14 }
0x1b7e   :  { %7564 = vmatpush3.msra.mxu1 %v4392_v42  ;;  %7548 = vmatprep.mubr.msk.f32.mxu1 %vm8050_vm1, %v8049_v14 }
0x1b7f   :  { %7565 = vmatprep.subr.mxu1 %v8049_v14  ;;  %v5105_v13 = vpop.permute.xlu1 %5104 }
0x1b80   :  { %7566 = vmatpush3.msra.mxu1 %v4390_v39 }
0x1b81   :  { %7549 = vmatmul.mubr.msk.f32.gmra.mxu1 %vm403_vm3, %v4164_v63  ;;  %7567 = vmatprep.subr.mxu1 %v8049_v14 }
0x1b82   :  { %7568 = vmatpush3.msra.mxu1 %v4388_v0  ;;  %7551 = vmatprep.mubr.msk.f32.mxu1 %vm8050_vm1, %v8049_v14 }
0x1b83   :  { %7583 = vmatprep.subr.mxu1 %v8049_v14  ;;  %v5109_v6 = vpop.permute.xlu1 %5108 }
0x1b85   :  { %v7966_v1 = vpop.eup %7965  ;;  %7552 = vmatmul.mubr.msk.f32.gmra.mxu1 %vm403_vm3, %v4165_v54 }
0x1b86   :  { %v4569_v4 = vmul.f32 %v7966_v1, %v7958_v34  ;;  %7569 = vmatprep.mubr.msk.f32.mxu1 %vm8050_vm1, %v8049_v14 }
0x1b89   :  { %7570 = vmatmul.mubr.msk.f32.vlgmr.msra.gmra.mxu1 %vm403_vm3, %v4569_v4 }
0x1b8a   :  { %7584 = vmatpush3.msra.mxu1 %v8024_v5  ;;  %7585 = vmatprep.mubr.msk.f32.mxu1 %vm8050_vm1, %v8049_v14 }
0x1b8b   :  { %7599 = vmatprep.subr.mxu1 %v8049_v14 }
0x1b8d   :  { %7586 = vmatmul.mubr.msk.f32.vlgmr.msra.gmra.mxu1 %vm304_vm2, %v3857_v7 }
0x1b8e   :  { %7588 = vmatprep.mubr.msk.f32.mxu1 %vm8050_vm1, %v8049_v14  ;;  %7600 = vmatpush3.msra.mxu1 %v8024_v5 }
0x1b8f   :  { %7619 = vmatprep.subr.mxu1 %v8049_v14 }
0x1b91   :  { %7589 = vmatmul.mubr.msk.f32.gmra.mxu1 %vm304_vm2, %v3862_v41 }
0x1b92   :  { %7591 = vmatprep.mubr.msk.f32.mxu1 %vm8050_vm1, %v8049_v14 }
0x1b95   :  { %7592 = vmatmul.mubr.msk.f32.gmra.mxu1 %vm304_vm2, %v3867_v11 }
0x1b96   :  { %7601 = vmatprep.mubr.msk.f32.mxu1 %vm8050_vm1, %v8049_v14 }
0x1b99   :  { %7602 = vmatmul.mubr.msk.f32.vlgmr.msra.gmra.mxu1 %vm304_vm2, %v8979_v60 }
0x1b9a   :  { %7620 = vmatpush3.xpose.msk.msra.mxu1 %vm304_vm2, %v5111_v3  ;;  %7621 = vmatprep.mubr.msk.f32.mxu1 %vm8050_vm1, %v8049_v14 }
0x1b9b   :  { %7630 = vmatprep.subr.mxu1 %v8049_v14 }
0x1b9d   :  { %7622 = vmatmul.mubr.msk.f32.vlgmr.msra.gmra.mxu1 %vm304_vm2, %v5105_v13 }
0x1b9e   :  { %7624 = vmatprep.mubr.msk.f32.mxu1 %vm8050_vm1, %v8049_v14 }
0x1ba1   :  { %7625 = vmatmul.mubr.msk.f32.gmra.mxu1 %vm304_vm2, %v5107_v15 }
0x1ba2   :  { %7627 = vmatprep.mubr.msk.f32.mxu1 %vm8050_vm1, %v8049_v14 }
0x1ba5   :  { %7628 = vmatmul.mubr.msk.f32.gmra.mxu1 %vm304_vm2, %v5109_v6 }
0x1ba6   :  { %7632 = vmatprep.mubr.msk.f32.mxu1 %vm8050_vm1, %v8049_v14 }
0x1c3d   :  { %v4471_v37 = vpop.f32.mrf.mxu1 }
0x1c3e   :  { %v4472_v60 = vadd.f32 %v4471_v37, %v9047_v24 }
0x1c3f   :  { %v7547_v8 = vpop.f32.mrf.mxu1 }
0x1c40   :  { %7575 = vmatmul.mubr.msk.f32.vlgmr.msra.gmra.mxu0 %vm304_vm2, %v4472_v60 }
0x1c41   :  { %v4476_v9 = vpop.f32.mrf.mxu1  ;;  %7577 = vmatprep.mubr.msk.f32.mxu0 %vm8050_vm1, %v8049_v14  ;;  %7595 = vmatpush3.msra.mxu0 %v9038_v47 }
0x1c42   :  { %v4477_v55 = vadd.f32 %v4476_v9, %v9049_v25  ;;  %7604 = vmatprep.subr.mxu0 %v8049_v14 }
0x1c43   :  { %v7550_v62 = vpop.f32.mrf.mxu1 }
0x1c44   :  { %7578 = vmatmul.mubr.msk.f32.gmra.mxu0 %vm304_vm2, %v4477_v55 }
0x1c45   :  { %v4481_v61 = vpop.f32.mrf.mxu1  ;;  %7580 = vmatprep.mubr.msk.f32.mxu0 %vm8050_vm1, %v8049_v14 }
0x1c46   :  { %v4482_v24 = vadd.f32 %v4481_v61, %v9051_v10 }
0x1c47   :  { %v7553_v31 = vpop.f32.mrf.mxu1 }
0x1c48   :  { %7581 = vmatmul.mubr.msk.f32.gmra.mxu0 %vm304_vm2, %v4482_v24 }
0x1c49   :  { %v4639_v49 = vpop.f32.mrf.mxu1  ;;  %7596 = vmatprep.mubr.msk.f32.mxu0 %vm8050_vm1, %v8049_v14 }
0x1c4b   :  { %v7571_v47 = vpop.f32.mrf.mxu1 }
0x1c4c   :  { %7597 = vmatmul.mubr.msk.f32.vlgmr.msra.gmra.mxu0 %vm304_vm2, %v4639_v49 }
0x1c4d   :  { %v9140_v25 = vpop.f32.mrf.mxu1  ;;  %7610 = vmatprep.mubr.msk.f32.mxu0 %vm8050_vm1, %v8049_v14 }
0x1c4f   :  { %v7587_v48 = vpop.f32.mrf.mxu1 }
0x1c51   :  { %v9144_v56 = vpop.f32.mrf.mxu1 }
0x1c53   :  { %v7590_v59 = vpop.f32.mrf.mxu1 }
0x1c55   :  { %v9146_v10 = vpop.f32.mrf.mxu1 }
0x1c57   :  { %v7593_v50 = vpop.f32.mrf.mxu1 }
0x1c58   :  { %v9215_v50 = vld [vmem:[%s9439_s4 + $0x10] sm:$0xff] }
0x1c59   :  { %v9148_v16 = vpop.f32.mrf.mxu1 }
0x1c5b   :  { %v7603_v27 = vpop.f32.mrf.mxu1 }
0x1c5d   :  { %v5186_v29 = vpop.f32.mrf.mxu1 }
0x1c5e   :  { %v5200_v2 = vsel %vm304_vm2, %v5186_v29, -inf }
0x1c5f   :  { %5201 = vmax.xlane.f32.xlu0 %v5200_v2  ;;  %v7623_v18 = vpop.f32.mrf.mxu1 }
0x1c61   :  { %v5191_v12 = vpop.f32.mrf.mxu1 }
0x1c62   :  { %v5203_v19 = vsel %vm304_vm2, %v5191_v12, -inf }
0x1c63   :  { %5204 = vmax.xlane.f32.xlu1 %v5203_v19  ;;  %v7626_v23 = vpop.f32.mrf.mxu1 }
0x1c65   :  { %v5196_v28 = vpop.f32.mrf.mxu1 }
0x1c66   :  { %v5206_v26 = vsel %vm304_vm2, %v5196_v28, -inf }
0x1c67   :  { %5207 = vmax.xlane.f32.xlu0 %v5206_v26  ;;  %v7629_v30 = vpop.f32.mrf.mxu1 }
0x1c74   :  { %4977 = vrot.lane.b32.xlu1 %v8254_v45, %s8060_s13 }
0x1c78   :  { %4973 = vrot.lane.b32.xlu1 %v8250_v43, %s8060_s13 }
0x1c7c   :  { %5233 = vrot.lane.b32.xlu1 %v8252_v44, %s8061_s14 }
0x1c7d   :  { %4975 = vrot.lane.b32.xlu0 %v8256_v46, %s8060_s13 }
0x1c80   :  { %4969 = vrot.lane.b32.xlu1 %v8182_v22, %s8060_s13 }
0x1ce8   :  { %v5202_v20 = vpop.xlane.xlu0 %5201 }
0x1ce9   :  { %v5209_v32 = vsub.f32 %v5186_v29, %v5202_v20 }
0x1ceb   :  { %v5212_v34 = vmul.f32 1.442695, %v5209_v32 }
0x1cec   :  { %v5205_v17 = vpop.xlane.xlu1 %5204 }
0x1ced   :  { %7967 = vpow2.f32 %v5212_v34  ;;  %v5210_v33 = vsub.f32 %v5191_v12, %v5205_v17 }
0x1cef   :  { %v5214_v57 = vmul.f32 1.442695, %v5210_v33 }
0x1cf0   :  { %v5208_v38 = vpop.xlane.xlu0 %5207  ;;  %v4978_v42 = vpop.permute.xlu1 %4977 }
0x1cf1   :  { %7969 = vpow2.f32 %v5214_v57  ;;  %7605 = vmatpush3.xpose.msk.msra.mxu0 %vm304_vm2, %v4978_v42  ;;  %v5211_v3 = vsub.f32 %v5196_v28, %v5208_v38 }
0x1cf2   :  { %7606 = vmatprep.subr.mxu0 %v8049_v14 }
0x1cf3   :  { %v5216_v13 = vmul.f32 1.442695, %v5211_v3 }
0x1cf4   :  { %v4976_v39 = vpop.permute.xlu0 %4975  ;;  %v4974_v40 = vpop.permute.xlu1 %4973 }
0x1cf5   :  { %7607 = vmatpush3.xpose.msk.msra.mxu0 %vm304_vm2, %v4976_v39  ;;  %7971 = vpow2.f32 %v5216_v13 }
0x1cf6   :  { %7608 = vmatprep.subr.mxu0 %v8049_v14 }
0x1cf8   :  { %v5234_v51 = vpop.permute.xlu1 %5233 }
0x1cf9   :  { %7609 = vmatpush3.xpose.msk.msra.mxu0 %vm304_vm2, %v4974_v40  ;;  %7631 = vmatpush3.msra.mxu1 %v5234_v51 }
0x1cfa   :  { %v7968_v53 = vpop.eup %7967  ;;  %7656 = vmatprep.subr.mxu1 %v8049_v14  ;;  %7641 = vmatprep.subr.mxu0 %v8049_v14 }
0x1cfb   :  { %v5218_v0 = vsel %vm304_vm2, %v7968_v53, 0.0 }
0x1cfc   :  { %5219 = vadd.xlane.f32.xlu0 %v5218_v0  ;;  %v4970_v37 = vpop.permute.xlu1 %4969 }
0x1cfe   :  { %v7970_v58 = vpop.eup %7969 }
0x1cff   :  { %v5221_v63 = vsel %vm304_vm2, %v7970_v58, 0.0 }
0x1d00   :  { %5222 = vadd.xlane.f32.xlu1 %v5221_v63  ;;  %v9172_v52 = vpop.f32.mrf.mxu0 }
0x1d02   :  { %v7576_v54 = vpop.f32.mrf.mxu0  ;;  %v7972_v15 = vpop.eup %7971 }
0x1d03   :  { %v5224_v6 = vsel %vm304_vm2, %v7972_v15, 0.0 }
0x1d04   :  { %v9174_v1 = vpop.f32.mrf.mxu0 }
0x1d06   :  { %v7579_v4 = vpop.f32.mrf.mxu0 }
0x1d08   :  { %v9176_v5 = vpop.f32.mrf.mxu0 }
0x1d0a   :  { %v7582_v7 = vpop.f32.mrf.mxu0 }
0x1d0c   :  { %v9178_v41 = vpop.f32.mrf.mxu0 }
0x1d0e   :  { %v7598_v11 = vpop.f32.mrf.mxu0 }
0x1d11   :  { %5423 = vrot.lane.b32.xlu1 %v8242_v36, %s8059_s11 }
0x1d12   :  { %4967 = vrot.lane.b32.xlu0 %v8240_v35, %s8060_s13 }
0x1d31   :  { %5225 = vadd.xlane.f32.xlu0 %v5224_v6 }
0x1d47   :  { %4971 = vrot.lane.b32.xlu0 %v8180_v21, %s8060_s13 }
0x1d85   :  { %v5220_v60 = vpop.xlane.xlu0 %5219 }
0x1d86   :  { %7973 = vrcp.f32 %v5220_v60 }
0x1d89   :  { %v4968_v8 = vpop.permute.xlu0 %4967  ;;  %v5223_v9 = vpop.xlane.xlu1 %5222 }
0x1d8a   :  { %7975 = vrcp.f32 %v5223_v9  ;;  %7611 = vmatmul.mubr.msk.f32.vlgmr.msra.gmra.mxu0 %vm304_vm2, %v4968_v8 }
0x1d8b   :  { %7613 = vmatprep.mubr.msk.f32.mxu0 %vm8050_vm1, %v8049_v14 }
0x1d8d   :  { %v5424_v59 = vpop.permute.xlu1 %5423 }
0x1d8e   :  { %7614 = vmatmul.mubr.msk.f32.gmra.mxu0 %vm304_vm2, %v4970_v37 }
0x1d8f   :  { %7616 = vmatprep.mubr.msk.f32.mxu0 %vm8050_vm1, %v8049_v14 }
0x1d93   :  { %v7974_v55 = vpop.eup %7973 }
0x1d94   :  { %v5230_v62 = vmul.f32 %v7974_v55, %v7968_v53 }
0x1d96   :  { %7633 = vmatmul.mubr.msk.f32.vlgmr.msra.gmra.mxu1 %vm304_vm2, %v5230_v62 }
0x1d97   :  { %v7976_v61 = vpop.eup %7975  ;;  %7657 = vmatpush3.xpose.msk.msra.mxu1 %vm304_vm2, %v4978_v42  ;;  %7635 = vmatprep.mubr.msk.f32.mxu1 %vm8050_vm1, %v8049_v14 }
0x1d98   :  { %7658 = vmatprep.subr.mxu1 %v8049_v14  ;;  %v5231_v24 = vmul.f32 %v7976_v61, %v7970_v58 }
0x1d9a   :  { %7636 = vmatmul.mubr.msk.f32.gmra.mxu1 %vm304_vm2, %v5231_v24 }
0x1d9b   :  { %7659 = vmatpush3.xpose.msk.msra.mxu1 %vm304_vm2, %v4976_v39  ;;  %7638 = vmatprep.mubr.msk.f32.mxu1 %vm8050_vm1, %v8049_v14 }
0x1d9c   :  { %7660 = vmatprep.subr.mxu1 %v8049_v14 }
0x1d9f   :  { %7661 = vmatpush3.xpose.msk.msra.mxu1 %vm304_vm2, %v4974_v40 }
0x1da0   :  { %7674 = vmatprep.subr.mxu1 %v8049_v14 }
0x1dba   :  { %v5226_v31 = vpop.xlane.xlu0 %5225 }
0x1dbb   :  { %7977 = vrcp.f32 %v5226_v31 }
0x1dbe   :  { %v4972_v49 = vpop.permute.xlu0 %4971 }
0x1dbf   :  { %7617 = vmatmul.mubr.msk.f32.gmra.mxu0 %vm304_vm2, %v4972_v49 }
0x1dc0   :  { %7647 = vmatprep.mubr.msk.f32.mxu0 %vm8050_vm1, %v8049_v14 }
0x1dc8   :  { %v7978_v47 = vpop.eup %7977 }
0x1dc9   :  { %v5232_v48 = vmul.f32 %v7978_v47, %v7972_v15 }
0x1dcb   :  { %7639 = vmatmul.mubr.msk.f32.gmra.mxu1 %vm304_vm2, %v5232_v48 }
0x1dcc   :  { %7662 = vmatprep.mubr.msk.f32.mxu1 %vm8050_vm1, %v8049_v14 }
0x1dcf   :  { %7663 = vmatmul.mubr.msk.f32.vlgmr.msra.gmra.mxu1 %vm304_vm2, %v5424_v59 }
0x1dd0   :  { %7675 = vmatpush3.msra.mxu1 %v9215_v50  ;;  %7676 = vmatprep.mubr.msk.f32.mxu1 %vm8050_vm1, %v8049_v14 }
0x1dd1   :  { %7690 = vmatprep.subr.mxu1 %v8049_v14 }
0x1e4a   :  { %v5057_v27 = vpop.f32.mrf.mxu0 }
0x1e4b   :  { %v5071_v29 = vsel %vm403_vm3, %v5057_v27, -inf }
0x1e4c   :  { %5072 = vmax.xlane.f32.xlu0 %v5071_v29  ;;  %v7612_v2 = vpop.f32.mrf.mxu0 }
0x1e4e   :  { %v5062_v18 = vpop.f32.mrf.mxu0 }
0x1e4f   :  { %v5074_v12 = vsel %vm403_vm3, %v5062_v18, -inf }
0x1e50   :  { %5075 = vmax.xlane.f32.xlu1 %v5074_v12  ;;  %v7615_v19 = vpop.f32.mrf.mxu0 }
0x1e56   :  { %v9223_v23 = vpop.f32.mrf.mxu1 }
0x1e58   :  { %v7634_v28 = vpop.f32.mrf.mxu1 }
0x1e5a   :  { %v9225_v26 = vpop.f32.mrf.mxu1 }
0x1e5c   :  { %v7637_v30 = vpop.f32.mrf.mxu1 }
0x1e7f   :  { %v5067_v20 = vpop.f32.mrf.mxu0 }
0x1e80   :  { %v5077_v32 = vsel %vm403_vm3, %v5067_v20, -inf }
0x1e81   :  { %5078 = vmax.xlane.f32.xlu0 %v5077_v32  ;;  %v7618_v34 = vpop.f32.mrf.mxu0 }
0x1e8b   :  { %v9228_v17 = vpop.f32.mrf.mxu1 }
0x1e8d   :  { %v7640_v33 = vpop.f32.mrf.mxu1 }
0x1e8f   :  { %v5493_v57 = vpop.f32.mrf.mxu1 }
0x1e90   :  { %v5497_v38 = vsel %vm403_vm3, %v5493_v57, -inf }
0x1e91   :  { %v7664_v42 = vpop.f32.mrf.mxu1  ;;  %5498 = vmax.xlane.f32.xlu0 %v5497_v38 }
0x1ed5   :  { %v5073_v39 = vpop.xlane.xlu0 %5072 }
0x1ed6   :  { %v5080_v40 = vsub.f32 %v5057_v27, %v5073_v39 }
0x1ed8   :  { %v5083_v51 = vmul.f32 1.442695, %v5080_v40 }
0x1ed9   :  { %v5076_v53 = vpop.xlane.xlu1 %5075 }
0x1eda   :  { %7979 = vpow2.f32 %v5083_v51  ;;  %v5081_v0 = vsub.f32 %v5062_v18, %v5076_v53  ;;  %v4808_v53 = vadd.f32 %v9140_v25, %v9172_v52 }
0x1edc   :  { %v5085_v58 = vmul.f32 1.442695, %v5081_v0 }
0x1ede   :  { %7981 = vpow2.f32 %v5085_v58 }
0x1ee7   :  { %v7980_v63 = vpop.eup %7979 }
0x1ee8   :  { %v5089_v54 = vsel %vm403_vm3, %v7980_v63, 0.0 }
0x1ee9   :  { %5090 = vadd.xlane.f32.xlu1 %v5089_v54  ;;  %v4813_v54 = vadd.f32 %v9144_v56, %v9174_v1 }
0x1eeb   :  { %v7982_v4 = vpop.eup %7981 }
0x1eec   :  { %v5092_v7 = vsel %vm403_vm3, %v7982_v4, 0.0 }
0x1eed   :  { %5093 = vadd.xlane.f32.xlu0 %v5092_v7 }
0x1f0a   :  { %v5079_v11 = vpop.xlane.xlu0 %5078 }
0x1f0b   :  { %v5082_v3 = vsub.f32 %v5067_v20, %v5079_v11 }
0x1f0d   :  { %v5087_v13 = vmul.f32 1.442695, %v5082_v3  ;;  %v4818_v3 = vadd.f32 %v9146_v10, %v9176_v5 }
0x1f0f   :  { %7983 = vpow2.f32 %v5087_v13 }
0x1f1a   :  { %v5499_v15 = vpop.xlane.xlu0 %5498 }
0x1f1b   :  { %v5500_v6 = vsub.f32 %v5493_v57, %v5499_v15  ;;  %v4964_v15 = vadd.f32 %v9148_v16, %v9178_v41 }
0x1f1c   :  { %v7984_v37 = vpop.eup %7983 }
0x1f1d   :  { %v5501_v60 = vmul.f32 1.442695, %v5500_v6  ;;  %v5095_v8 = vsel %vm403_vm3, %v7984_v37, 0.0 }
0x1f1e   :  { %5096 = vadd.xlane.f32.xlu1 %v5095_v8 }
0x1f1f   :  { %7985 = vpow2.f32 %v5501_v60 }
0x1f2c   :  { %v7986_v9 = vpop.eup %7985 }
0x1f2d   :  { %v5503_v55 = vsel %vm403_vm3, %v7986_v9, 0.0 }
0x1f2e   :  { %5504 = vadd.xlane.f32.xlu0 %v5503_v55 }
0x1f2f   :  { %5329 = vrot.lane.b32.xlu1 %v8254_v45, %s8058_s10 }
0x1f33   :  { %5325 = vrot.lane.b32.xlu1 %v8250_v43, %s8058_s10 }
0x1f37   :  { %5890 = vrot.lane.b32.xlu1 %v8252_v44, %s8062_s17 }
0x1f3b   :  { %5886 = vrot.lane.b32.xlu1 %v8182_v22, %s8063_s18 }
0x1f44   :  { %5327 = vrot.lane.b32.xlu0 %v8256_v46, %s8058_s10 }
0x1f48   :  { %5884 = vrot.lane.b32.xlu0 %v8240_v35, %s8063_s18 }
0x1f4c   :  { %5888 = vrot.lane.b32.xlu0 %v8180_v21, %s8063_s18 }
0x1f72   :  { %v5091_v62 = vpop.xlane.xlu1 %5090 }
0x1f73   :  { %7987 = vrcp.f32 %v5091_v62 }
0x1f76   :  { %v5094_v31 = vpop.xlane.xlu0 %5093 }
0x1f77   :  { %7989 = vrcp.f32 %v5094_v31 }
0x1f80   :  { %v7988_v47 = vpop.eup %7987 }
0x1f81   :  { %v5101_v59 = vmul.f32 %v7988_v47, %v7980_v63 }
0x1f84   :  { %v7990_v29 = vpop.eup %7989 }
0x1f85   :  { %v5102_v2 = vmul.f32 %v7990_v29, %v7982_v4 }
0x1fa7   :  { %v5097_v61 = vpop.xlane.xlu1 %5096 }
0x1fa8   :  { %7991 = vrcp.f32 %v5097_v61 }
0x1fab   :  { %v5330_v24 = vpop.permute.xlu1 %5329 }
0x1fac   :  { %7642 = vmatpush3.msra.mxu0 %v5330_v24 }
0x1fad   :  { %7643 = vmatprep.subr.mxu0 %v8049_v14 }
0x1faf   :  { %v5326_v27 = vpop.permute.xlu1 %5325 }
0x1fb3   :  { %v5891_v39 = vpop.permute.xlu1 %5890 }
0x1fb5   :  { %v7992_v18 = vpop.eup %7991 }
0x1fb6   :  { %v5103_v12 = vmul.f32 %v7992_v18, %v7984_v37 }
0x1fb7   :  { %v5505_v49 = vpop.xlane.xlu0 %5504 }
0x1fb8   :  { %7993 = vrcp.f32 %v5505_v49 }
0x1fbb   :  { %v5328_v48 = vpop.permute.xlu0 %5327 }
0x1fbc   :  { %7644 = vmatpush3.msra.mxu0 %v5328_v48 }
0x1fbd   :  { %7645 = vmatprep.subr.mxu0 %v8049_v14 }
0x1fbe   :  { %7646 = vmatpush3.msra.mxu0 %v5326_v27 }
0x1fbf   :  { %7648 = vmatmul.mubr.msk.f32.vlgmr.msra.gmra.mxu0 %vm403_vm3, %v5101_v59  ;;  %7665 = vmatprep.subr.mxu0 %v8049_v14  ;;  %v5885_v40 = vpop.permute.xlu0 %5884 }
0x1fc0   :  { %7666 = vmatpush3.msra.mxu0 %v5330_v24  ;;  %7650 = vmatprep.mubr.msk.f32.mxu0 %vm8050_vm1, %v8049_v14 }
0x1fc1   :  { %7667 = vmatprep.subr.mxu0 %v8049_v14 }
0x1fc2   :  { %7668 = vmatpush3.msra.mxu0 %v5328_v48 }
0x1fc3   :  { %7651 = vmatmul.mubr.msk.f32.gmra.mxu0 %vm403_vm3, %v5102_v2  ;;  %7669 = vmatprep.subr.mxu0 %v8049_v14  ;;  %v5889_v51 = vpop.permute.xlu0 %5888 }
0x1fc4   :  { %7670 = vmatpush3.msra.mxu0 %v5326_v27  ;;  %7653 = vmatprep.mubr.msk.f32.mxu0 %vm8050_vm1, %v8049_v14 }
0x1fc5   :  { %7685 = vmatprep.subr.mxu0 %v8049_v14  ;;  %v7994_v19 = vpop.eup %7993 }
0x1fc6   :  { %v5507_v28 = vmul.f32 %v7994_v19, %v7986_v9 }
0x1fc7   :  { %7654 = vmatmul.mubr.msk.f32.gmra.mxu0 %vm403_vm3, %v5103_v12 }
0x1fc8   :  { %7671 = vmatprep.mubr.msk.f32.mxu0 %vm8050_vm1, %v8049_v14 }
0x1fcb   :  { %7672 = vmatmul.mubr.msk.f32.vlgmr.msra.gmra.mxu0 %vm403_vm3, %v5507_v28 }
0x1fcc   :  { %7686 = vmatpush3.msra.mxu0 %v9215_v50  ;;  %7687 = vmatprep.mubr.msk.f32.mxu0 %vm8050_vm1, %v8049_v14 }
0x1fcd   :  { %7705 = vmatprep.subr.mxu0 %v8049_v14 }
0x207f   :  { %v5409_v30 = vpop.f32.mrf.mxu0 }
0x2080   :  { %v5410_v20 = vadd.f32 %v5409_v30, %v9223_v23 }
0x2081   :  { %v7649_v32 = vpop.f32.mrf.mxu0 }
0x2082   :  { %7677 = vmatmul.mubr.msk.f32.vlgmr.msra.gmra.mxu1 %vm304_vm2, %v5410_v20 }
0x2083   :  { %v5414_v34 = vpop.f32.mrf.mxu0  ;;  %7679 = vmatprep.mubr.msk.f32.mxu1 %vm8050_vm1, %v8049_v14 }
0x2084   :  { %v5415_v33 = vadd.f32 %v5414_v34, %v9225_v26 }
0x2085   :  { %v7652_v57 = vpop.f32.mrf.mxu0 }
0x2086   :  { %7680 = vmatmul.mubr.msk.f32.gmra.mxu1 %vm304_vm2, %v5415_v33 }
0x2087   :  { %v5419_v50 = vpop.f32.mrf.mxu0  ;;  %7682 = vmatprep.mubr.msk.f32.mxu1 %vm8050_vm1, %v8049_v14 }
0x2088   :  { %v5420_v38 = vadd.f32 %v5419_v50, %v9228_v17  ;;  %v5887_v17 = vpop.permute.xlu1 %5886 }
0x2089   :  { %v7655_v42 = vpop.f32.mrf.mxu0 }
0x208a   :  { %7683 = vmatmul.mubr.msk.f32.gmra.mxu1 %vm304_vm2, %v5420_v38 }
0x208b   :  { %v5577_v23 = vpop.f32.mrf.mxu0  ;;  %7696 = vmatprep.mubr.msk.f32.mxu1 %vm8050_vm1, %v8049_v14 }
0x208c   :  { %7688 = vmatmul.mubr.msk.f32.vlgmr.msra.gmra.mxu0 %vm304_vm2, %v5577_v23 }
0x208d   :  { %7706 = vmatpush3.xpose.msk.msra.mxu0 %vm304_vm2, %v5891_v39  ;;  %v7673_v26 = vpop.f32.mrf.mxu0  ;;  %7707 = vmatprep.mubr.msk.f32.mxu0 %vm8050_vm1, %v8049_v14 }
0x208e   :  { %7716 = vmatprep.subr.mxu0 %v8049_v14 }
0x2090   :  { %7708 = vmatmul.mubr.msk.f32.vlgmr.msra.gmra.mxu0 %vm304_vm2, %v5885_v40  ;;  %v9368_v40 = vld [vmem:[%s9439_s4 + $0x18] sm:$0xff]  ;;  %s8066_s4 = smov [#allocation2]  }
0x2091   :  { %7710 = vmatprep.mubr.msk.f32.mxu0 %vm8050_vm1, %v8049_v14  ;;  %s6537_s30 = sshll.u32 %s8066_s4, 4  ;;  %s6538_s30 = int_to_ptr.vmem [resolvable:$true] %s6537_s30 }
0x2092   :  { %s8027_s6 = scalar_lea.vmem %s6538_s30, 1024  ;;  %p8032_p1 = scmp.lt.s32.totalorder %s6538_s30, %s6538_s30 }
0x2093   :  { %p8028_p0 = scmp.ne.s32.totalorder %s6538_s30, %s8027_s6  ;;  %p8033_p2 = scmp.lt.s32.totalorder %s8027_s6, %s8027_s6 }
0x2094   :  { %7711 = vmatmul.mubr.msk.f32.gmra.mxu0 %vm304_vm2, %v5887_v17 }
0x2095   :  { %7713 = vmatprep.mubr.msk.f32.mxu0 %vm8050_vm1, %v8049_v14  ;;  %p8034_p3 = por %p8033_p2, %p8032_p1 }
0x2097   :  { %p8035_p4 = pnand %p8034_p3, %p8028_p0 }
0x2098   :  { %7714 = vmatmul.mubr.msk.f32.gmra.mxu0 %vm304_vm2, %v5889_v51 }
0x2099   :  { %7718 = vmatprep.mubr.msk.f32.mxu0 %vm8050_vm1, %v8049_v14 }
0x2142   :  { %v5656_v0 = vpop.f32.mrf.mxu1 }
0x2143   :  { %v9297_v58 = vadd.f32 %v5656_v0, %v4808_v53 }
0x2144   :  { %v7678_v63 = vpop.f32.mrf.mxu1 }
0x2146   :  { %v5661_v4 = vpop.f32.mrf.mxu1 }
0x2147   :  { %v9301_v7 = vadd.f32 %v5661_v4, %v4813_v54 }
0x2148   :  { %v7681_v11 = vpop.f32.mrf.mxu1 }
0x214a   :  { %v5666_v13 = vpop.f32.mrf.mxu1 }
0x214b   :  { %v9307_v6 = vadd.f32 %v5666_v13, %v4818_v3 }
0x214c   :  { %v7684_v25 = vpop.f32.mrf.mxu1  ;;  %v5742_v52 = vpop.f32.mrf.mxu0 }
0x214d   :  { %v9309_v37 = vadd.f32 %v5742_v52, %v4964_v15 }
0x214e   :  { %v7689_v60 = vpop.f32.mrf.mxu0 }
0x2150   :  { %v5966_v8 = vpop.f32.mrf.mxu0 }
0x2151   :  { %v5980_v56 = vsel %vm304_vm2, %v5966_v8, -inf }
0x2152   :  { %5981 = vmax.xlane.f32.xlu1 %v5980_v56  ;;  %v7709_v1 = vpop.f32.mrf.mxu0 }
0x2154   :  { %v5971_v9 = vpop.f32.mrf.mxu0 }
0x2155   :  { %v5983_v55 = vsel %vm304_vm2, %v5971_v9, -inf }
0x2156   :  { %5984 = vmax.xlane.f32.xlu0 %v5983_v55  ;;  %v7712_v10 = vpop.f32.mrf.mxu0 }
0x2158   :  { %v5976_v5 = vpop.f32.mrf.mxu0 }
0x2159   :  { %v5986_v16 = vsel %vm304_vm2, %v5976_v5, -inf }
0x215a   :  { %5987 = vmax.xlane.f32.xlu0 %v5986_v16  ;;  %v7715_v41 = vpop.f32.mrf.mxu0 }
0x2163   :  { %5755 = vrot.lane.b32.xlu1 %v8256_v46, %s8064_s21 }
0x2167   :  { %5753 = vrot.lane.b32.xlu1 %v8250_v43, %s8064_s21 }
0x216b   :  { %5747 = vrot.lane.b32.xlu1 %v8240_v35, %s8064_s21 }
0x2170   :  { %5757 = vrot.lane.b32.xlu0 %v8254_v45, %s8064_s21 }
0x2174   :  { %6013 = vrot.lane.b32.xlu0 %v8252_v44, %s8065_s22 }
0x21db   :  { %v5982_v62 = vpop.xlane.xlu1 %5981 }
0x21dc   :  { %v5989_v61 = vsub.f32 %v5966_v8, %v5982_v62 }
0x21de   :  { %v5992_v24 = vmul.f32 1.442695, %v5989_v61 }
0x21df   :  { %v5985_v31 = vpop.xlane.xlu0 %5984  ;;  %v5756_v27 = vpop.permute.xlu1 %5755 }
0x21e0   :  { %7995 = vpow2.f32 %v5992_v24  ;;  %v5990_v49 = vsub.f32 %v5971_v9, %v5985_v31 }
0x21e2   :  { %v5994_v47 = vmul.f32 1.442695, %v5990_v49 }
0x21e3   :  { %v5988_v48 = vpop.xlane.xlu0 %5987  ;;  %v5754_v44 = vpop.permute.xlu1 %5753 }
0x21e4   :  { %7997 = vpow2.f32 %v5994_v47  ;;  %v5991_v59 = vsub.f32 %v5976_v5, %v5988_v48 }
0x21e6   :  { %v5996_v29 = vmul.f32 1.442695, %v5991_v59 }
0x21e7   :  { %v5758_v2 = vpop.permute.xlu0 %5757  ;;  %v5748_v28 = vpop.permute.xlu1 %5747 }
0x21e8   :  { %7999 = vpow2.f32 %v5996_v29  ;;  %7691 = vmatpush3.xpose.msk.msra.mxu1 %vm304_vm2, %v5758_v2 }
0x21e9   :  { %7692 = vmatprep.subr.mxu1 %v8049_v14 }
0x21eb   :  { %v6014_v35 = vpop.permute.xlu0 %6013 }
0x21ec   :  { %7693 = vmatpush3.xpose.msk.msra.mxu1 %vm304_vm2, %v5756_v27  ;;  %7717 = vmatpush3.msra.mxu0 %v6014_v35 }
0x21ed   :  { %v7996_v18 = vpop.eup %7995  ;;  %7694 = vmatprep.subr.mxu1 %v8049_v14  ;;  %7742 = vmatprep.subr.mxu0 %v8049_v14 }
0x21ee   :  { %v5998_v12 = vsel %vm304_vm2, %v7996_v18, 0.0 }
0x21ef   :  { %5999 = vadd.xlane.f32.xlu1 %v5998_v12 }
0x21f0   :  { %7695 = vmatpush3.xpose.msk.msra.mxu1 %vm304_vm2, %v5754_v44 }
0x21f1   :  { %v7998_v19 = vpop.eup %7997  ;;  %7727 = vmatprep.subr.mxu1 %v8049_v14 }
0x21f2   :  { %v6001_v30 = vsel %vm304_vm2, %v7998_v19, 0.0 }
0x21f3   :  { %6002 = vadd.xlane.f32.xlu0 %v6001_v30  ;;  %7697 = vmatmul.mubr.msk.f32.vlgmr.msra.gmra.mxu1 %vm304_vm2, %v5748_v28 }
0x21f4   :  { %7699 = vmatprep.mubr.msk.f32.mxu1 %vm8050_vm1, %v8049_v14 }
0x21f5   :  { %v8000_v20 = vpop.eup %7999 }
0x21f6   :  { %v6004_v32 = vsel %vm304_vm2, %v8000_v20, 0.0 }
0x21f7   :  { %6005 = vadd.xlane.f32.xlu1 %v6004_v32 }
0x2208   :  { %5751 = vrot.lane.b32.xlu1 %v8180_v21, %s8064_s21 }
0x2209   :  { %5749 = vrot.lane.b32.xlu0 %v8182_v22, %s8064_s21 }
0x220d   :  { %6203 = vrot.lane.b32.xlu0 %v8242_v36, %s8062_s17 }
0x2278   :  { %v6000_v34 = vpop.xlane.xlu1 %5999 }
0x2279   :  { %8001 = vrcp.f32 %v6000_v34 }
0x227c   :  { %v6003_v33 = vpop.xlane.xlu0 %6002 }
0x227d   :  { %8003 = vrcp.f32 %v6003_v33 }
0x2280   :  { %v6006_v57 = vpop.xlane.xlu1 %6005  ;;  %v5750_v50 = vpop.permute.xlu0 %5749 }
0x2281   :  { %8005 = vrcp.f32 %v6006_v57  ;;  %7700 = vmatmul.mubr.msk.f32.gmra.mxu1 %vm304_vm2, %v5750_v50 }
0x2282   :  { %7702 = vmatprep.mubr.msk.f32.mxu1 %vm8050_vm1, %v8049_v14 }
0x2284   :  { %v5752_v38 = vpop.permute.xlu1 %5751  ;;  %v6204_v26 = vpop.permute.xlu0 %6203 }
0x2285   :  { %7703 = vmatmul.mubr.msk.f32.gmra.mxu1 %vm304_vm2, %v5752_v38 }
0x2286   :  { %v8002_v21 = vpop.eup %8001  ;;  %7733 = vmatprep.mubr.msk.f32.mxu1 %vm8050_vm1, %v8049_v14 }
0x2287   :  { %v6010_v22 = vmul.f32 %v8002_v21, %v7996_v18 }
0x2289   :  { %7719 = vmatmul.mubr.msk.f32.vlgmr.msra.gmra.mxu0 %vm304_vm2, %v6010_v22 }
0x228a   :  { %v8004_v36 = vpop.eup %8003  ;;  %7743 = vmatpush3.xpose.msk.msra.mxu0 %vm304_vm2, %v5758_v2  ;;  %7721 = vmatprep.mubr.msk.f32.mxu0 %vm8050_vm1, %v8049_v14 }
0x228b   :  { %7744 = vmatprep.subr.mxu0 %v8049_v14  ;;  %v6011_v42 = vmul.f32 %v8004_v36, %v7998_v19 }
0x228d   :  { %7722 = vmatmul.mubr.msk.f32.gmra.mxu0 %vm304_vm2, %v6011_v42 }
0x228e   :  { %v8006_v23 = vpop.eup %8005  ;;  %7745 = vmatpush3.xpose.msk.msra.mxu0 %vm304_vm2, %v5756_v27  ;;  %7724 = vmatprep.mubr.msk.f32.mxu0 %vm8050_vm1, %v8049_v14 }
0x228f   :  { %7746 = vmatprep.subr.mxu0 %v8049_v14  ;;  %v6012_v39 = vmul.f32 %v8006_v23, %v8000_v20 }
0x2291   :  { %7725 = vmatmul.mubr.msk.f32.gmra.mxu0 %vm304_vm2, %v6012_v39 }
0x2292   :  { %7747 = vmatpush3.xpose.msk.msra.mxu0 %vm304_vm2, %v5754_v44  ;;  %7748 = vmatprep.mubr.msk.f32.mxu0 %vm8050_vm1, %v8049_v14 }
0x2293   :  { %7760 = vmatprep.subr.mxu0 %v8049_v14 }
0x2295   :  { %7749 = vmatmul.mubr.msk.f32.vlgmr.msra.gmra.mxu0 %vm304_vm2, %v6204_v26 }
0x2296   :  { %7761 = vmatpush3.msra.mxu0 %v9368_v40  ;;  %7762 = vmatprep.mubr.msk.f32.mxu0 %vm8050_vm1, %v8049_v14 }
0x22b3   :  { %v5837_v17 = vpop.f32.mrf.mxu1 }
0x22b4   :  { %v5851_v51 = vsel %vm403_vm3, %v5837_v17, -inf }
0x22b5   :  { %5852 = vmax.xlane.f32.xlu1 %v5851_v51  ;;  %v7698_v53 = vpop.f32.mrf.mxu1 }
0x233e   :  { %v5853_v0 = vpop.xlane.xlu1 %5852 }
0x233f   :  { %v5860_v63 = vsub.f32 %v5837_v17, %v5853_v0 }
0x2341   :  { %v5863_v54 = vmul.f32 1.442695, %v5860_v63  ;;  %v5842_v4 = vpop.f32.mrf.mxu1 }
0x2342   :  { %v5854_v11 = vsel %vm403_vm3, %v5842_v4, -inf }
0x2343   :  { %8007 = vpow2.f32 %v5863_v54  ;;  %5855 = vmax.xlane.f32.xlu0 %v5854_v11  ;;  %v7701_v3 = vpop.f32.mrf.mxu1 }
0x2345   :  { %v5847_v13 = vpop.f32.mrf.mxu1 }
0x2346   :  { %v5857_v15 = vsel %vm403_vm3, %v5847_v13, -inf }
0x2347   :  { %5858 = vmax.xlane.f32.xlu0 %v5857_v15  ;;  %v7704_v25 = vpop.f32.mrf.mxu1 }
0x2349   :  { %v9376_v52 = vpop.f32.mrf.mxu0 }
0x234b   :  { %v7720_v60 = vpop.f32.mrf.mxu0 }
0x234d   :  { %v9378_v8 = vpop.f32.mrf.mxu0 }
0x234f   :  { %v7723_v56 = vpop.f32.mrf.mxu0 }
0x2350   :  { %v8008_v1 = vpop.eup %8007 }
0x2351   :  { %v9380_v9 = vpop.f32.mrf.mxu0  ;;  %v5869_v55 = vsel %vm403_vm3, %v8008_v1, 0.0 }
0x2352   :  { %5870 = vadd.xlane.f32.xlu0 %v5869_v55 }
0x2353   :  { %v7726_v10 = vpop.f32.mrf.mxu0 }
0x2355   :  { %v6273_v5 = vpop.f32.mrf.mxu0 }
0x2356   :  { %v6277_v16 = vsel %vm403_vm3, %v6273_v5, -inf }
0x2357   :  { %6278 = vmax.xlane.f32.xlu1 %v6277_v16  ;;  %v7750_v41 = vpop.f32.mrf.mxu0 }
0x23cc   :  { %v5856_v62 = vpop.xlane.xlu0 %5855 }
0x23cd   :  { %v5861_v61 = vsub.f32 %v5842_v4, %v5856_v62 }
0x23cf   :  { %v5865_v24 = vmul.f32 1.442695, %v5861_v61 }
0x23d0   :  { %v5859_v31 = vpop.xlane.xlu0 %5858 }
0x23d1   :  { %8009 = vpow2.f32 %v5865_v24  ;;  %v5862_v49 = vsub.f32 %v5847_v13, %v5859_v31 }
0x23d3   :  { %v5867_v47 = vmul.f32 1.442695, %v5862_v49 }
0x23d5   :  { %8011 = vpow2.f32 %v5867_v47 }
0x23db   :  { %v5871_v19 = vpop.xlane.xlu0 %5870 }
0x23de   :  { %v8010_v48 = vpop.eup %8009 }
0x23df   :  { %v5872_v59 = vsel %vm403_vm3, %v8010_v48, 0.0 }
0x23e0   :  { %5873 = vadd.xlane.f32.xlu1 %v5872_v59  ;;  %v6279_v2 = vpop.xlane.xlu1 %6278 }
0x23e1   :  { %v6280_v35 = vsub.f32 %v6273_v5, %v6279_v2 }
0x23e2   :  { %v8012_v27 = vpop.eup %8011 }
0x23e3   :  { %v5875_v29 = vsel %vm403_vm3, %v8012_v27, 0.0  ;;  %v6281_v44 = vmul.f32 1.442695, %v6280_v35 }
0x23e4   :  { %5876 = vadd.xlane.f32.xlu0 %v5875_v29 }
0x23e5   :  { %8013 = vpow2.f32 %v6281_v44 }
0x23e6   :  { %8015 = vrcp.f32 %v5871_v19 }
0x23f1   :  { %6107 = vrot.lane.b32.xlu1 %v8256_v46, %s8063_s18 }
0x23f2   :  { %v8014_v18 = vpop.eup %8013 }
0x23f3   :  { %v6283_v12 = vsel %vm403_vm3, %v8014_v18, 0.0  ;;  %v8016_v32 = vpop.eup %8015 }
0x23f4   :  { %v5881_v34 = vmul.f32 %v8016_v32, %v8008_v1 }
0x23fa   :  { %6109 = vrot.lane.b32.xlu0 %v8254_v45, %s8063_s18 }
0x2415   :  { %6284 = vadd.xlane.f32.xlu1 %v6283_v12 }
0x2426   :  { %6105 = vrot.lane.b32.xlu1 %v8250_v43, %s8063_s18 }
0x2469   :  { %v5874_v28 = vpop.xlane.xlu1 %5873 }
0x246a   :  { %8017 = vrcp.f32 %v5874_v28 }
0x246d   :  { %v5877_v30 = vpop.xlane.xlu0 %5876  ;;  %v6108_v46 = vpop.permute.xlu1 %6107 }
0x246e   :  { %8019 = vrcp.f32 %v5877_v30 }
0x2471   :  { %v6110_v20 = vpop.permute.xlu0 %6109 }
0x2472   :  { %7728 = vmatpush3.msra.mxu1 %v6110_v20 }
0x2473   :  { %7729 = vmatprep.subr.mxu1 %v8049_v14 }
0x2474   :  { %7730 = vmatpush3.msra.mxu1 %v6108_v46 }
0x2475   :  { %7731 = vmatprep.subr.mxu1 %v8049_v14 }
0x2477   :  { %v8018_v43 = vpop.eup %8017 }
0x2478   :  { %v5882_v57 = vmul.f32 %v8018_v43, %v8010_v48 }
0x247b   :  { %v8020_v50 = vpop.eup %8019 }
0x247c   :  { %v5883_v38 = vmul.f32 %v8020_v50, %v8012_v27 }
0x249e   :  { %v6285_v45 = vpop.xlane.xlu1 %6284 }
0x249f   :  { %8021 = vrcp.f32 %v6285_v45 }
0x24a2   :  { %v6106_v33 = vpop.permute.xlu1 %6105 }
0x24a3   :  { %7732 = vmatpush3.msra.mxu1 %v6106_v33 }
0x24a4   :  { %7734 = vmatmul.mubr.msk.f32.vlgmr.msra.gmra.mxu1 %vm403_vm3, %v5881_v34  ;;  %7751 = vmatprep.subr.mxu1 %v8049_v14 }
0x24a5   :  { %7752 = vmatpush3.msra.mxu1 %v6110_v20  ;;  %7736 = vmatprep.mubr.msk.f32.mxu1 %vm8050_vm1, %v8049_v14 }
0x24a6   :  { %7753 = vmatprep.subr.mxu1 %v8049_v14 }
0x24a7   :  { %7754 = vmatpush3.msra.mxu1 %v6108_v46 }
0x24a8   :  { %7737 = vmatmul.mubr.msk.f32.gmra.mxu1 %vm403_vm3, %v5882_v57  ;;  %7755 = vmatprep.subr.mxu1 %v8049_v14 }
0x24a9   :  { %7756 = vmatpush3.msra.mxu1 %v6106_v33  ;;  %7739 = vmatprep.mubr.msk.f32.mxu1 %vm8050_vm1, %v8049_v14 }
0x24aa   :  { %7771 = vmatprep.subr.mxu1 %v8049_v14 }
0x24ac   :  { %v8022_v21 = vpop.eup %8021  ;;  %7740 = vmatmul.mubr.msk.f32.gmra.mxu1 %vm403_vm3, %v5883_v38 }
0x24ad   :  { %v6287_v22 = vmul.f32 %v8022_v21, %v8014_v18  ;;  %7757 = vmatprep.mubr.msk.f32.mxu1 %vm8050_vm1, %v8049_v14 }
0x24b0   :  { %7758 = vmatmul.mubr.msk.f32.vlgmr.msra.gmra.mxu1 %vm403_vm3, %v6287_v22 }
0x24b1   :  { %7772 = vmatpush3.msra.mxu1 %v9368_v40  ;;  %7773 = vmatprep.mubr.msk.f32.mxu1 %vm8050_vm1, %v8049_v14 }
0x2564   :  { %v6189_v36 = vpop.f32.mrf.mxu1 }
0x2565   :  { %v6190_v42 = vadd.f32 %v6189_v36, %v9376_v52 }
0x2566   :  { %v7735_v23 = vpop.f32.mrf.mxu1 }
0x2567   :  { %7763 = vmatmul.mubr.msk.f32.vlgmr.msra.gmra.mxu0 %vm304_vm2, %v6190_v42 }
0x2568   :  { %v6194_v39 = vpop.f32.mrf.mxu1  ;;  %7765 = vmatprep.mubr.msk.f32.mxu0 %vm8050_vm1, %v8049_v14 }
0x2569   :  { %v6195_v26 = vadd.f32 %v6194_v39, %v9378_v8 }
0x256a   :  { %v7738_v17 = vpop.f32.mrf.mxu1 }
0x256b   :  { %7766 = vmatmul.mubr.msk.f32.gmra.mxu0 %vm304_vm2, %v6195_v26 }
0x256c   :  { %v6199_v51 = vpop.f32.mrf.mxu1  ;;  %7768 = vmatprep.mubr.msk.f32.mxu0 %vm8050_vm1, %v8049_v14 }
0x256d   :  { %v6200_v40 = vadd.f32 %v6199_v51, %v9380_v9 }
0x256e   :  { %v7741_v53 = vpop.f32.mrf.mxu1 }
0x256f   :  { %7769 = vmatmul.mubr.msk.f32.gmra.mxu0 %vm304_vm2, %v6200_v40 }
0x2570   :  { %v6357_v0 = vpop.f32.mrf.mxu1 }
0x2571   :  { %7774 = vmatmul.mubr.msk.f32.vlgmr.msra.gmra.mxu1 %vm304_vm2, %v6357_v0 }
0x2572   :  { %v7759_v63 = vpop.f32.mrf.mxu1 }
0x2627   :  { %v6436_v54 = vpop.f32.mrf.mxu0 }
0x2628   :  { %v6450_v4 = vadd.f32 %v6436_v54, %v9297_v58 }
0x2629   :  { %v7764_v11 = vpop.f32.mrf.mxu0 }
0x262a   :  { %6529 = vst.msk [vmem:[#allocation2 + $0x28] sm:$0xff] %vm3414_vm4, %v6450_v4 }
0x262b   :  { %v6441_v3 = vpop.f32.mrf.mxu0 }
0x262c   :  { %v6451_v13 = vadd.f32 %v6441_v3, %v9301_v7 }
0x262d   :  { %v7767_v15 = vpop.f32.mrf.mxu0 }
0x262e   :  { %6530 = vst.msk [vmem:[#allocation2 + $0x30] sm:$0xff] %vm3414_vm4, %v6451_v13 }
0x262f   :  { %v6446_v14 = vpop.f32.mrf.mxu0 }
0x2630   :  { %v6452_v25 = vadd.f32 %v6446_v14, %v9307_v6 }
0x2631   :  { %v7770_v52 = vpop.f32.mrf.mxu0  ;;  %v6522_v60 = vpop.f32.mrf.mxu1 }
0x2632   :  { %6531 = vst.msk [vmem:[#allocation2 + $0x38] sm:$0xff] %vm3414_vm4, %v6452_v25  ;;  %v6526_v58 = vadd.f32 %v6522_v60, %v9309_v37 }
0x2633   :  { %v7775_v8 = vpop.f32.mrf.mxu1 }
0x2634   :  { %6528 = vst.msk [vmem:[#allocation2 + $0x20] sm:$0xff] %vm3414_vm4, %v6526_v58 }
0x2635   :  { %8038 = shalt.err (!%p8035_p4)
}
0x2636   :  { %s8067_s7 = smov 128  }
0x2637   :  { %6543 = dma.vmem_to_hbm [thread:$0]  %s6538_s30, 1024, %s9440_s5, [#allocation3], %s8067_s7, %s8067_s7, %s8065_s22  }
0x2638   :  { %8047 = dma.done.wait [#allocation3], 1024  }
0x2639   :  { %8048 = vsyncadd [#allocation3], 4294966272 }
0x263a   :  { %6547 = vsyncpa [#allocation3], 1 }

</bundles_post_ra>
